<compile_context>
chip_gen: v6e
topology: v6e:2x2x1
jax: 0.10.0
libtpu: 0.0.40
codegen_flags: <defaults>
</compile_context>

<pallas_src>
import functools
import math
import string

import jax
import jax.numpy as jnp
from jax.experimental import pallas as pl
from jax.experimental.pallas import tpu as pltpu

_LANE = 128
_SUBLANE = 8


def _round_up(x, m):
    return -(-x // m) * m


# ----------------------------------------------------------------------------
# Fused Pallas kernel
# ----------------------------------------------------------------------------
def _char_rnn_kernel(*refs, n_layers, hidden_pad, seq_len, batch_pad, mm_dtype):
    """Fused CharRNN forward (LSTM stack + FC head).

    Ref order (all whole-array VMEM blocks):
      inputs : x_tm (T*Bp, D0p) mm_dtype,
               [w_ih_t (Dp,4Hp), w_hh_t (Hp,4Hp), b (1,4Hp) f32] * n_layers,
               h0 (L,Bp,Hp) f32, c0 (L,Bp,Hp) f32,
               fc_w_t (Hp,Vp) mm_dtype, fc_b (1,Vp) f32
      outputs: logits (T*Bp, Vp) f32, h_n (L,Bp,Hp) f32, c_n (L,Bp,Hp) f32
      scratch: ybuf  (T*Bp, Hp)   f32  -- current layer's outputs, time-major
               xproj (T*Bp, 4*Hp) f32  -- hoisted input projection + bias

    Gate activation: the i/f/o weight & bias columns are pre-scaled by 1/2 in
    the wrapper and the g block is left unscaled, so one jnp.tanh over
    (Bp, 4Hp) gives tanh(z_g) for the g gate and 2*sigmoid(z)-1 for i/f/o; a
    cheap per-block FMA (0.5*t + 0.5) recovers the sigmoids.
    """
    Hp, T, Bp = hidden_pad, seq_len, batch_pad

    it = iter(refs)
    x_ref = next(it)
    layer_refs = [(next(it), next(it), next(it)) for _ in range(n_layers)]
    h0_ref, c0_ref = next(it), next(it)
    fcw_ref, fcb_ref = next(it), next(it)
    logits_ref, hn_ref, cn_ref = next(it), next(it), next(it)
    ybuf_ref, xproj_ref = next(it), next(it)

    for layer in range(n_layers):
        wih_t_ref, whh_t_ref, b_ref = layer_refs[layer]

        # Hoisted input projection + fused bias for the whole sequence: one
        # (T*Bp, Dp) @ (Dp, 4Hp) matmul instead of T tiny ones.  Kept in a
        # VMEM scratch (not a long-lived vreg value).
        layer_in = (x_ref[...] if layer == 0
                    else ybuf_ref[...].astype(mm_dtype))
        xproj_ref[...] = (
            jnp.dot(layer_in, wih_t_ref[...],
                    preferred_element_type=jnp.float32)
            + b_ref[...]
        )

        h = h0_ref[layer]                         # (Bp, Hp) f32
        c = c0_ref[layer]                         # (Bp, Hp) f32

        # Fully unrolled time loop (T small & static): static, (8,128)-aligned
        # slice offsets and cross-step scheduling visibility for the LLO.
        for t in range(T):
            gates = xproj_ref[t * Bp:(t + 1) * Bp, :] + jnp.dot(
                h.astype(mm_dtype), whh_t_ref[...],
                preferred_element_type=jnp.float32)           # (Bp, 4Hp) f32
            th = jnp.tanh(gates)                  # single EUP pass over 4Hp
            i_g = 0.5 * th[:, 0 * Hp:1 * Hp] + 0.5            # sigmoid(z_i)
            f_g = 0.5 * th[:, 1 * Hp:2 * Hp] + 0.5            # sigmoid(z_f)
            g_g = th[:, 2 * Hp:3 * Hp]                        # tanh(z_g)
            o_g = 0.5 * th[:, 3 * Hp:4 * Hp] + 0.5            # sigmoid(z_o)
            c = f_g * c + i_g * g_g
            h = o_g * jnp.tanh(c)
            ybuf_ref[t * Bp:(t + 1) * Bp, :] = h   # whole (8,128)-tile store

        hn_ref[layer] = h
        cn_ref[layer] = c
        # nn.LSTM inter-layer dropout: identity in eval mode.

    # FC head over all (T*Bp) rows at once; output lane-padded to 128 so the
    # stores are lane-dense (wrapper slices the valid columns).
    logits_ref[...] = (
        jnp.dot(ybuf_ref[...].astype(mm_dtype), fcw_ref[...],
                preferred_element_type=jnp.float32)
        + fcb_ref[...]
    )


# ----------------------------------------------------------------------------
# One-time parameter preparation (hoisted out of the per-call path)
# ----------------------------------------------------------------------------
def prepare_params(params, *, n_layers, n_hidden, vocab,
                   mm_dtype=jnp.bfloat16):
    """Transpose to matmul layout, pad each gate block to 128 lanes and the
    contraction dims to full tiles, fuse b_ih+b_hh, pre-scale the i/f/o
    blocks by 1/2 (single-tanh gate activation), and cast matmul operands to
    `mm_dtype` (bf16 for v6e/v7x MXU; biases / elementwise math stay f32)."""
    H = n_hidden
    Hp = _round_up(H, _LANE)
    Vp = _round_up(vocab, _LANE)
    D0p = _round_up(vocab, _LANE)
    gate_scale = (0.5, 0.5, 1.0, 0.5)   # i, f, g, o (PyTorch gate order)

    def pack_w(w, rows_pad):
        w_t = jnp.transpose(w).astype(jnp.float32)            # (Din, 4H)
        din = w_t.shape[0]
        blocks = []
        for g in range(4):
            blk = w_t[:, g * H:(g + 1) * H] * gate_scale[g]
            blocks.append(jnp.pad(blk, ((0, rows_pad - din), (0, Hp - H))))
        return jnp.concatenate(blocks, axis=1).astype(mm_dtype)

    def pack_b(b):
        blocks = []
        for g in range(4):
            blk = b[g * H:(g + 1) * H] * gate_scale[g]
            blocks.append(jnp.pad(blk, (0, Hp - H)))
        return jnp.concatenate(blocks)[None, :].astype(jnp.float32)

    lstm = []
    for layer in range(n_layers):
        w_ih, w_hh, b_ih, b_hh = params["lstm"][layer]
        din_pad = D0p if layer == 0 else Hp
        lstm.append((pack_w(w_ih, din_pad),
                     pack_w(w_hh, Hp),
                     pack_b((b_ih + b_hh).astype(jnp.float32))))

    fc_w, fc_b = params["fc"]
    fc_w_t = jnp.pad(jnp.transpose(fc_w).astype(jnp.float32),
                     ((0, Hp - H), (0, Vp - vocab))).astype(mm_dtype)
    fc_b_p = jnp.pad(fc_b.astype(jnp.float32), (0, Vp - vocab))[None, :]
    return {"lstm": lstm, "fc": (fc_w_t, fc_b_p)}


# ----------------------------------------------------------------------------
# Wrapper (matches CharRNN.forward, eval mode)
# ----------------------------------------------------------------------------
def char_rnn_forward(prepared, x, hidden, *, n_layers, n_hidden):
    """x (B, T, V) batch_first one-hot floats, hidden = (h0, c0), each
    (n_layers, B, H). Returns (logits (B*T, V), (h_n, c_n))."""
    h0, c0 = hidden
    B, T, V = x.shape
    H = n_hidden
    lstm = prepared["lstm"]
    fc_w_t, fc_b = prepared["fc"]

    D0p = lstm[0][0].shape[0]            # padded layer-0 input width
    Hp = lstm[0][1].shape[0]             # padded per-gate / hidden width
    Vp = fc_w_t.shape[1]                 # padded vocab width (lane-dense FC)
    Bp = _round_up(B, _SUBLANE)          # padded batch rows (8 sublanes)
    mm_dtype = fc_w_t.dtype

    # Time-major, batch/feature padded, matmul dtype: row index = t*Bp + b.
    x_tm = jnp.transpose(x, (1, 0, 2))                              # (T,B,V)
    x_tm = jnp.pad(x_tm, ((0, 0), (0, Bp - B), (0, D0p - V)))
    x_tm = x_tm.reshape(T * Bp, D0p).astype(mm_dtype)

    h0p = jnp.pad(h0.astype(jnp.float32), ((0, 0), (0, Bp - B), (0, Hp - H)))
    c0p = jnp.pad(c0.astype(jnp.float32), ((0, 0), (0, Bp - B), (0, Hp - H)))

    args = [x_tm]
    for layer in range(n_layers):
        args += list(lstm[layer])
    args += [h0p, c0p, fc_w_t, fc_b]

    out_shapes = (
        jax.ShapeDtypeStruct((T * Bp, Vp), jnp.float32),
        jax.ShapeDtypeStruct((n_layers, Bp, Hp), jnp.float32),
        jax.ShapeDtypeStruct((n_layers, Bp, Hp), jnp.float32),
    )
    scratch_shapes = [
        pltpu.VMEM((T * Bp, Hp), jnp.float32),        # layer outputs
        pltpu.VMEM((T * Bp, 4 * Hp), jnp.float32),    # hoisted input proj
    ]

    # Explicit VMEM budget (with headroom) from the actual buffer sizes —
    # don't rely on the default scoped limit (matters on v7x's 64 MiB part).
    vmem_bytes = sum(a.size * a.dtype.itemsize for a in args) + 4 * (
        T * Bp * Vp + 2 * n_layers * Bp * Hp          # f32 outputs
        + T * Bp * Hp + T * Bp * 4 * Hp)              # f32 scratch
    vmem_limit = int(max(2 * vmem_bytes, 4 * 1024 * 1024))

    kernel = functools.partial(
        _char_rnn_kernel, n_layers=n_layers, hidden_pad=Hp,
        seq_len=T, batch_pad=Bp, mm_dtype=mm_dtype)

    vmem_spec = pl.BlockSpec(memory_space=pltpu.MemorySpace.VMEM)
    logits_tm, h_n, c_n = pl.pallas_call(
        kernel,
        out_shape=out_shapes,
        in_specs=[vmem_spec] * len(args),
        out_specs=(vmem_spec, vmem_spec, vmem_spec),
        scratch_shapes=scratch_shapes,
        compiler_params=pltpu.CompilerParams(vmem_limit_bytes=vmem_limit),
    )(*args)

    # Reorder rows from time-major (t, b) to PyTorch's batch_first (b, t) and
    # drop batch / vocab / hidden padding: matches
    # r_output.contiguous().view(-1, H) @ fc.
    logits = (logits_tm.reshape(T, Bp, Vp)[:, :B, :V]
              .transpose(1, 0, 2).reshape(B * T, V))
    return logits, (h_n[:, :B, :H], c_n[:, :B, :H])


# ----------------------------------------------------------------------------
# Pure-JAX reference (mirrors the PyTorch forward) for an in-script check
# ----------------------------------------------------------------------------
def _reference_forward(params, x, hidden, *, n_layers, n_hidden):
    h0, c0 = hidden
    B, T, V = x.shape
    hp = jax.lax.Precision.HIGHEST
    layer_in = x
    hs, cs = [], []
    for layer in range(n_layers):
        w_ih, w_hh, b_ih, b_hh = params["lstm"][layer]
        h, c = h0[layer], c0[layer]
        outs = []
        for t in range(T):
            gates = (jnp.dot(layer_in[:, t, :], w_ih.T, precision=hp)
                     + jnp.dot(h, w_hh.T, precision=hp) + b_ih + b_hh)
            i = jax.nn.sigmoid(gates[:, 0 * n_hidden:1 * n_hidden])
            f = jax.nn.sigmoid(gates[:, 1 * n_hidden:2 * n_hidden])
            g = jnp.tanh(gates[:, 2 * n_hidden:3 * n_hidden])
            o = jax.nn.sigmoid(gates[:, 3 * n_hidden:4 * n_hidden])
            c = f * c + i * g
            h = o * jnp.tanh(c)
            outs.append(h)
        layer_in = jnp.stack(outs, axis=1)          # (B, T, H)
        hs.append(h)
        cs.append(c)
    out = layer_in.reshape(-1, n_hidden)
    fc_w, fc_b = params["fc"]
    logits = jnp.dot(out, fc_w.T, precision=hp) + fc_b
    return logits, (jnp.stack(hs), jnp.stack(cs))


# ----------------------------------------------------------------------------
# Deterministic parameter construction (same shapes / init range as PyTorch)
# ----------------------------------------------------------------------------
def make_params(key, vocab, n_hidden, n_layers):
    k = 1.0 / math.sqrt(n_hidden)
    params = {"lstm": []}
    for layer in range(n_layers):
        din = vocab if layer == 0 else n_hidden
        key, k1, k2, k3, k4 = jax.random.split(key, 5)
        w_ih = jax.random.uniform(k1, (4 * n_hidden, din), jnp.float32, -k, k)
        w_hh = jax.random.uniform(k2, (4 * n_hidden, n_hidden), jnp.float32, -k, k)
        b_ih = jax.random.uniform(k3, (4 * n_hidden,), jnp.float32, -k, k)
        b_hh = jax.random.uniform(k4, (4 * n_hidden,), jnp.float32, -k, k)
        params["lstm"].append((w_ih, w_hh, b_ih, b_hh))
    key, k1, k2 = jax.random.split(key, 3)
    fc_w = jax.random.uniform(k1, (vocab, n_hidden), jnp.float32, -k, k)
    fc_b = jax.random.uniform(k2, (vocab,), jnp.float32, -k, k)
    params["fc"] = (fc_w, fc_b)
    return params


# ----------------------------------------------------------------------------
# Main
# ----------------------------------------------------------------------------
if __name__ == "__main__":
    tokens = string.ascii_lowercase + string.digits      # vocab of 36 chars
    vocab = len(tokens)
    n_hidden = 32
    n_layers = 2
    batch = 2
    seq = 8

    key = jax.random.PRNGKey(0)
    key, pkey, xkey = jax.random.split(key, 3)
    params = make_params(pkey, vocab, n_hidden, n_layers)

    # One-hot encoded character input, as fed to CharRNN.forward.
    idx = jax.random.randint(xkey, (batch, seq), 0, vocab)
    x = jax.nn.one_hot(idx, vocab, dtype=jnp.float32)     # (B, T, V)

    # init_hidden(batch_size): zeros of shape (n_layers, B, H)
    h0 = jnp.zeros((n_layers, batch, n_hidden), jnp.float32)
    c0 = jnp.zeros((n_layers, batch, n_hidden), jnp.float32)

    # One-time weight prep (transpose/pad/gate-prescale/bf16), outside the
    # per-call path.  mm_dtype=bf16 keeps gate/cell math in f32 (v5e-safe).
    prepared = prepare_params(params, n_layers=n_layers, n_hidden=n_hidden,
                              vocab=vocab, mm_dtype=jnp.bfloat16)

    fwd = jax.jit(functools.partial(char_rnn_forward,
                                    n_layers=n_layers, n_hidden=n_hidden))
    logits, (h_n, c_n) = fwd(prepared, x, (h0, c0))
    jax.block_until_ready((logits, h_n, c_n))

    assert logits.shape == (batch * seq, vocab)
    assert h_n.shape == (n_layers, batch, n_hidden)
    assert c_n.shape == (n_layers, batch, n_hidden)

    # Numerical check against the pure-JAX f32 reference of the PyTorch
    # forward (tolerance loosened for bf16 matmul operands).
    ref_logits, (ref_h, ref_c) = _reference_forward(
        params, x, (h0, c0), n_layers=n_layers, n_hidden=n_hidden)
    assert jnp.allclose(logits, ref_logits, atol=2e-2, rtol=2e-2)
    assert jnp.allclose(h_n, ref_h, atol=2e-2, rtol=2e-2)
    assert jnp.allclose(c_n, ref_c, atol=2e-2, rtol=2e-2)

    print("KERNEL_OK")
</pallas_src>

<mosaic_0001>
module attributes {stable_mosaic.version = 11 : i64} {
  func.func @_char_rnn_kernel(%arg0: memref<64x128xbf16, #tpu.memory_space<vmem>>, %arg1: memref<128x512xbf16, #tpu.memory_space<vmem>>, %arg2: memref<128x512xbf16, #tpu.memory_space<vmem>>, %arg3: memref<1x512xf32, #tpu.memory_space<vmem>>, %arg4: memref<128x512xbf16, #tpu.memory_space<vmem>>, %arg5: memref<128x512xbf16, #tpu.memory_space<vmem>>, %arg6: memref<1x512xf32, #tpu.memory_space<vmem>>, %arg7: memref<2x8x128xf32, #tpu.memory_space<vmem>>, %arg8: memref<2x8x128xf32, #tpu.memory_space<vmem>>, %arg9: memref<128x128xbf16, #tpu.memory_space<vmem>>, %arg10: memref<1x128xf32, #tpu.memory_space<vmem>>, %arg11: memref<64x128xf32, #tpu.memory_space<vmem>>, %arg12: memref<2x8x128xf32, #tpu.memory_space<vmem>>, %arg13: memref<2x8x128xf32, #tpu.memory_space<vmem>>, %arg14: memref<64x128xf32, #tpu.memory_space<vmem>>, %arg15: memref<64x512xf32, #tpu.memory_space<vmem>>) attributes {dimension_semantics = [], scalar_prefetch = 0 : i64, scratch_operands = 2 : i64, tpu.core_type = #tpu.core_type<tc>} {
    %c0 = arith.constant 0 : index
    %c0_0 = arith.constant 0 : index
    %0 = vector.load %arg0[%c0, %c0_0] : memref<64x128xbf16, #tpu.memory_space<vmem>>, vector<64x128xbf16>
    %c0_1 = arith.constant 0 : index
    %c0_2 = arith.constant 0 : index
    %1 = vector.load %arg1[%c0_1, %c0_2] : memref<128x512xbf16, #tpu.memory_space<vmem>>, vector<128x512xbf16>
    %cst = arith.constant dense<0.000000e+00> : vector<64x512xf32>
    %2 = tpu.matmul %0, %1, %cst {dimension_numbers = #tpu.dot_dimension_numbers<[1], [0], [0], [1], [0, 0, 1, 1], [], []>} : vector<64x128xbf16>, vector<128x512xbf16>, vector<64x512xf32> -> vector<64x512xf32>
    %c0_3 = arith.constant 0 : index
    %c0_4 = arith.constant 0 : index
    %3 = vector.load %arg3[%c0_3, %c0_4] : memref<1x512xf32, #tpu.memory_space<vmem>>, vector<1x512xf32>
    %4 = vector.broadcast %3 : vector<1x512xf32> to vector<64x512xf32>
    %5 = arith.addf %2, %4 : vector<64x512xf32>
    %c0_5 = arith.constant 0 : index
    %c0_6 = arith.constant 0 : index
    %6 = vector.load %arg15[%c0_5, %c0_6] : memref<64x512xf32, #tpu.memory_space<vmem>>, vector<64x512xf32>
    tpu.vector_store %arg15[%c0_5, %c0_6], %5 {strides = array<i32>} : memref<64x512xf32, #tpu.memory_space<vmem>>, vector<64x512xf32>,
    %c0_7 = arith.constant 0 : index
    %c0_8 = arith.constant 0 : index
    %c0_9 = arith.constant 0 : index
    %7 = vector.load %arg7[%c0_7, %c0_8, %c0_9] : memref<2x8x128xf32, #tpu.memory_space<vmem>>, vector<1x8x128xf32>
    %8 = vector.shape_cast %7 : vector<1x8x128xf32> to vector<8x128xf32>
    %c0_10 = arith.constant 0 : index
    %c0_11 = arith.constant 0 : index
    %c0_12 = arith.constant 0 : index
    %9 = vector.load %arg8[%c0_10, %c0_11, %c0_12] : memref<2x8x128xf32, #tpu.memory_space<vmem>>, vector<1x8x128xf32>
    %10 = vector.shape_cast %9 : vector<1x8x128xf32> to vector<8x128xf32>
    %c0_13 = arith.constant 0 : index
    %c0_14 = arith.constant 0 : index
    %11 = vector.load %arg15[%c0_13, %c0_14] : memref<64x512xf32, #tpu.memory_space<vmem>>, vector<8x512xf32>
    %12 = arith.truncf %8 : vector<8x128xf32> to vector<8x128xbf16>
    %c0_15 = arith.constant 0 : index
    %c0_16 = arith.constant 0 : index
    %13 = vector.load %arg2[%c0_15, %c0_16] : memref<128x512xbf16, #tpu.memory_space<vmem>>, vector<128x512xbf16>
    %cst_17 = arith.constant dense<0.000000e+00> : vector<8x512xf32>
    %14 = tpu.matmul %12, %13, %cst_17 {dimension_numbers = #tpu.dot_dimension_numbers<[1], [0], [0], [1], [0, 0, 1, 1], [], []>} : vector<8x128xbf16>, vector<128x512xbf16>, vector<8x512xf32> -> vector<8x512xf32>
    %15 = arith.addf %11, %14 : vector<8x512xf32>
    %16 = math.tanh %15 : vector<8x512xf32>
    %17 = vector.extract_strided_slice %16 {offsets = [0, 0], sizes = [8, 128], strides = [1, 1]} : vector<8x512xf32> to vector<8x128xf32>
    %cst_18 = arith.constant 5.000000e-01 : f32
    %18 = vector.broadcast %cst_18 : f32 to vector<8x128xf32>
    %19 = arith.mulf %18, %17 : vector<8x128xf32>
    %cst_19 = arith.constant 5.000000e-01 : f32
    %20 = vector.broadcast %cst_19 : f32 to vector<8x128xf32>
    %21 = arith.addf %19, %20 : vector<8x128xf32>
    %22 = vector.extract_strided_slice %16 {offsets = [0, 128], sizes = [8, 128], strides = [1, 1]} : vector<8x512xf32> to vector<8x128xf32>
    %cst_20 = arith.constant 5.000000e-01 : f32
    %23 = vector.broadcast %cst_20 : f32 to vector<8x128xf32>
    %24 = arith.mulf %23, %22 : vector<8x128xf32>
    %cst_21 = arith.constant 5.000000e-01 : f32
    %25 = vector.broadcast %cst_21 : f32 to vector<8x128xf32>
    %26 = arith.addf %24, %25 : vector<8x128xf32>
    %27 = vector.extract_strided_slice %16 {offsets = [0, 256], sizes = [8, 128], strides = [1, 1]} : vector<8x512xf32> to vector<8x128xf32>
    %28 = vector.extract_strided_slice %16 {offsets = [0, 384], sizes = [8, 128], strides = [1, 1]} : vector<8x512xf32> to vector<8x128xf32>
    %cst_22 = arith.constant 5.000000e-01 : f32
    %29 = vector.broadcast %cst_22 : f32 to vector<8x128xf32>
    %30 = arith.mulf %29, %28 : vector<8x128xf32>
    %cst_23 = arith.constant 5.000000e-01 : f32
    %31 = vector.broadcast %cst_23 : f32 to vector<8x128xf32>
    %32 = arith.addf %30, %31 : vector<8x128xf32>
    %33 = arith.mulf %26, %10 : vector<8x128xf32>
    %34 = arith.mulf %21, %27 : vector<8x128xf32>
    %35 = arith.addf %33, %34 : vector<8x128xf32>
    %36 = math.tanh %35 : vector<8x128xf32>
    %37 = arith.mulf %32, %36 : vector<8x128xf32>
    %c0_24 = arith.constant 0 : index
    %c0_25 = arith.constant 0 : index
    %38 = vector.load %arg14[%c0_24, %c0_25] : memref<64x128xf32, #tpu.memory_space<vmem>>, vector<8x128xf32>
    tpu.vector_store %arg14[%c0_24, %c0_25], %37 {strides = array<i32>} : memref<64x128xf32, #tpu.memory_space<vmem>>, vector<8x128xf32>,
    %c8 = arith.constant 8 : index
    %c0_26 = arith.constant 0 : index
    %39 = vector.load %arg15[%c8, %c0_26] : memref<64x512xf32, #tpu.memory_space<vmem>>, vector<8x512xf32>
    %40 = arith.truncf %37 : vector<8x128xf32> to vector<8x128xbf16>
    %c0_27 = arith.constant 0 : index
    %c0_28 = arith.constant 0 : index
    %41 = vector.load %arg2[%c0_27, %c0_28] : memref<128x512xbf16, #tpu.memory_space<vmem>>, vector<128x512xbf16>
    %cst_29 = arith.constant dense<0.000000e+00> : vector<8x512xf32>
    %42 = tpu.matmul %40, %41, %cst_29 {dimension_numbers = #tpu.dot_dimension_numbers<[1], [0], [0], [1], [0, 0, 1, 1], [], []>} : vector<8x128xbf16>, vector<128x512xbf16>, vector<8x512xf32> -> vector<8x512xf32>
    %43 = arith.addf %39, %42 : vector<8x512xf32>
    %44 = math.tanh %43 : vector<8x512xf32>
    %45 = vector.extract_strided_slice %44 {offsets = [0, 0], sizes = [8, 128], strides = [1, 1]} : vector<8x512xf32> to vector<8x128xf32>
    %cst_30 = arith.constant 5.000000e-01 : f32
    %46 = vector.broadcast %cst_30 : f32 to vector<8x128xf32>
    %47 = arith.mulf %46, %45 : vector<8x128xf32>
    %cst_31 = arith.constant 5.000000e-01 : f32
    %48 = vector.broadcast %cst_31 : f32 to vector<8x128xf32>
    %49 = arith.addf %47, %48 : vector<8x128xf32>
    %50 = vector.extract_strided_slice %44 {offsets = [0, 128], sizes = [8, 128], strides = [1, 1]} : vector<8x512xf32> to vector<8x128xf32>
    %cst_32 = arith.constant 5.000000e-01 : f32
    %51 = vector.broadcast %cst_32 : f32 to vector<8x128xf32>
    %52 = arith.mulf %51, %50 : vector<8x128xf32>
    %cst_33 = arith.constant 5.000000e-01 : f32
    %53 = vector.broadcast %cst_33 : f32 to vector<8x128xf32>
    %54 = arith.addf %52, %53 : vector<8x128xf32>
    %55 = vector.extract_strided_slice %44 {offsets = [0, 256], sizes = [8, 128], strides = [1, 1]} : vector<8x512xf32> to vector<8x128xf32>
    %56 = vector.extract_strided_slice %44 {offsets = [0, 384], sizes = [8, 128], strides = [1, 1]} : vector<8x512xf32> to vector<8x128xf32>
    %cst_34 = arith.constant 5.000000e-01 : f32
    %57 = vector.broadcast %cst_34 : f32 to vector<8x128xf32>
    %58 = arith.mulf %57, %56 : vector<8x128xf32>
    %cst_35 = arith.constant 5.000000e-01 : f32
    %59 = vector.broadcast %cst_35 : f32 to vector<8x128xf32>
    %60 = arith.addf %58, %59 : vector<8x128xf32>
    %61 = arith.mulf %54, %35 : vector<8x128xf32>
    %62 = arith.mulf %49, %55 : vector<8x128xf32>
    %63 = arith.addf %61, %62 : vector<8x128xf32>
    %64 = math.tanh %63 : vector<8x128xf32>
    %65 = arith.mulf %60, %64 : vector<8x128xf32>
    %c8_36 = arith.constant 8 : index
    %c0_37 = arith.constant 0 : index
    %66 = vector.load %arg14[%c8_36, %c0_37] : memref<64x128xf32, #tpu.memory_space<vmem>>, vector<8x128xf32>
    tpu.vector_store %arg14[%c8_36, %c0_37], %65 {strides = array<i32>} : memref<64x128xf32, #tpu.memory_space<vmem>>, vector<8x128xf32>,
    %c16 = arith.constant 16 : index
    %c0_38 = arith.constant 0 : index
    %67 = vector.load %arg15[%c16, %c0_38] : memref<64x512xf32, #tpu.memory_space<vmem>>, vector<8x512xf32>
    %68 = arith.truncf %65 : vector<8x128xf32> to vector<8x128xbf16>
    %c0_39 = arith.constant 0 : index
    %c0_40 = arith.constant 0 : index
    %69 = vector.load %arg2[%c0_39, %c0_40] : memref<128x512xbf16, #tpu.memory_space<vmem>>, vector<128x512xbf16>
    %cst_41 = arith.constant dense<0.000000e+00> : vector<8x512xf32>
    %70 = tpu.matmul %68, %69, %cst_41 {dimension_numbers = #tpu.dot_dimension_numbers<[1], [0], [0], [1], [0, 0, 1, 1], [], []>} : vector<8x128xbf16>, vector<128x512xbf16>, vector<8x512xf32> -> vector<8x512xf32>
    %71 = arith.addf %67, %70 : vector<8x512xf32>
    %72 = math.tanh %71 : vector<8x512xf32>
    %73 = vector.extract_strided_slice %72 {offsets = [0, 0], sizes = [8, 128], strides = [1, 1]} : vector<8x512xf32> to vector<8x128xf32>
    %cst_42 = arith.constant 5.000000e-01 : f32
    %74 = vector.broadcast %cst_42 : f32 to vector<8x128xf32>
    %75 = arith.mulf %74, %73 : vector<8x128xf32>
    %cst_43 = arith.constant 5.000000e-01 : f32
    %76 = vector.broadcast %cst_43 : f32 to vector<8x128xf32>
    %77 = arith.addf %75, %76 : vector<8x128xf32>
    %78 = vector.extract_strided_slice %72 {offsets = [0, 128], sizes = [8, 128], strides = [1, 1]} : vector<8x512xf32> to vector<8x128xf32>
    %cst_44 = arith.constant 5.000000e-01 : f32
    %79 = vector.broadcast %cst_44 : f32 to vector<8x128xf32>
    %80 = arith.mulf %79, %78 : vector<8x128xf32>
    %cst_45 = arith.constant 5.000000e-01 : f32
    %81 = vector.broadcast %cst_45 : f32 to vector<8x128xf32>
    %82 = arith.addf %80, %81 : vector<8x128xf32>
    %83 = vector.extract_strided_slice %72 {offsets = [0, 256], sizes = [8, 128], strides = [1, 1]} : vector<8x512xf32> to vector<8x128xf32>
    %84 = vector.extract_strided_slice %72 {offsets = [0, 384], sizes = [8, 128], strides = [1, 1]} : vector<8x512xf32> to vector<8x128xf32>
    %cst_46 = arith.constant 5.000000e-01 : f32
    %85 = vector.broadcast %cst_46 : f32 to vector<8x128xf32>
    %86 = arith.mulf %85, %84 : vector<8x128xf32>
    %cst_47 = arith.constant 5.000000e-01 : f32
    %87 = vector.broadcast %cst_47 : f32 to vector<8x128xf32>
    %88 = arith.addf %86, %87 : vector<8x128xf32>
    %89 = arith.mulf %82, %63 : vector<8x128xf32>
    %90 = arith.mulf %77, %83 : vector<8x128xf32>
    %91 = arith.addf %89, %90 : vector<8x128xf32>
    %92 = math.tanh %91 : vector<8x128xf32>
    %93 = arith.mulf %88, %92 : vector<8x128xf32>
    %c16_48 = arith.constant 16 : index
    %c0_49 = arith.constant 0 : index
    %94 = vector.load %arg14[%c16_48, %c0_49] : memref<64x128xf32, #tpu.memory_space<vmem>>, vector<8x128xf32>
    tpu.vector_store %arg14[%c16_48, %c0_49], %93 {strides = array<i32>} : memref<64x128xf32, #tpu.memory_space<vmem>>, vector<8x128xf32>,
    %c24 = arith.constant 24 : index
    %c0_50 = arith.constant 0 : index
    %95 = vector.load %arg15[%c24, %c0_50] : memref<64x512xf32, #tpu.memory_space<vmem>>, vector<8x512xf32>
    %96 = arith.truncf %93 : vector<8x128xf32> to vector<8x128xbf16>
    %c0_51 = arith.constant 0 : index
    %c0_52 = arith.constant 0 : index
    %97 = vector.load %arg2[%c0_51, %c0_52] : memref<128x512xbf16, #tpu.memory_space<vmem>>, vector<128x512xbf16>
    %cst_53 = arith.constant dense<0.000000e+00> : vector<8x512xf32>
    %98 = tpu.matmul %96, %97, %cst_53 {dimension_numbers = #tpu.dot_dimension_numbers<[1], [0], [0], [1], [0, 0, 1, 1], [], []>} : vector<8x128xbf16>, vector<128x512xbf16>, vector<8x512xf32> -> vector<8x512xf32>
    %99 = arith.addf %95, %98 : vector<8x512xf32>
    %100 = math.tanh %99 : vector<8x512xf32>
    %101 = vector.extract_strided_slice %100 {offsets = [0, 0], sizes = [8, 128], strides = [1, 1]} : vector<8x512xf32> to vector<8x128xf32>
    %cst_54 = arith.constant 5.000000e-01 : f32
    %102 = vector.broadcast %cst_54 : f32 to vector<8x128xf32>
    %103 = arith.mulf %102, %101 : vector<8x128xf32>
    %cst_55 = arith.constant 5.000000e-01 : f32
    %104 = vector.broadcast %cst_55 : f32 to vector<8x128xf32>
    %105 = arith.addf %103, %104 : vector<8x128xf32>
    %106 = vector.extract_strided_slice %100 {offsets = [0, 128], sizes = [8, 128], strides = [1, 1]} : vector<8x512xf32> to vector<8x128xf32>
    %cst_56 = arith.constant 5.000000e-01 : f32
    %107 = vector.broadcast %cst_56 : f32 to vector<8x128xf32>
    %108 = arith.mulf %107, %106 : vector<8x128xf32>
    %cst_57 = arith.constant 5.000000e-01 : f32
    %109 = vector.broadcast %cst_57 : f32 to vector<8x128xf32>
    %110 = arith.addf %108, %109 : vector<8x128xf32>
    %111 = vector.extract_strided_slice %100 {offsets = [0, 256], sizes = [8, 128], strides = [1, 1]} : vector<8x512xf32> to vector<8x128xf32>
    %112 = vector.extract_strided_slice %100 {offsets = [0, 384], sizes = [8, 128], strides = [1, 1]} : vector<8x512xf32> to vector<8x128xf32>
    %cst_58 = arith.constant 5.000000e-01 : f32
    %113 = vector.broadcast %cst_58 : f32 to vector<8x128xf32>
    %114 = arith.mulf %113, %112 : vector<8x128xf32>
    %cst_59 = arith.constant 5.000000e-01 : f32
    %115 = vector.broadcast %cst_59 : f32 to vector<8x128xf32>
    %116 = arith.addf %114, %115 : vector<8x128xf32>
    %117 = arith.mulf %110, %91 : vector<8x128xf32>
    %118 = arith.mulf %105, %111 : vector<8x128xf32>
    %119 = arith.addf %117, %118 : vector<8x128xf32>
    %120 = math.tanh %119 : vector<8x128xf32>
    %121 = arith.mulf %116, %120 : vector<8x128xf32>
    %c24_60 = arith.constant 24 : index
    %c0_61 = arith.constant 0 : index
    %122 = vector.load %arg14[%c24_60, %c0_61] : memref<64x128xf32, #tpu.memory_space<vmem>>, vector<8x128xf32>
    tpu.vector_store %arg14[%c24_60, %c0_61], %121 {strides = array<i32>} : memref<64x128xf32, #tpu.memory_space<vmem>>, vector<8x128xf32>,
    %c32 = arith.constant 32 : index
    %c0_62 = arith.constant 0 : index
    %123 = vector.load %arg15[%c32, %c0_62] : memref<64x512xf32, #tpu.memory_space<vmem>>, vector<8x512xf32>
    %124 = arith.truncf %121 : vector<8x128xf32> to vector<8x128xbf16>
    %c0_63 = arith.constant 0 : index
    %c0_64 = arith.constant 0 : index
    %125 = vector.load %arg2[%c0_63, %c0_64] : memref<128x512xbf16, #tpu.memory_space<vmem>>, vector<128x512xbf16>
    %cst_65 = arith.constant dense<0.000000e+00> : vector<8x512xf32>
    %126 = tpu.matmul %124, %125, %cst_65 {dimension_numbers = #tpu.dot_dimension_numbers<[1], [0], [0], [1], [0, 0, 1, 1], [], []>} : vector<8x128xbf16>, vector<128x512xbf16>, vector<8x512xf32> -> vector<8x512xf32>
    %127 = arith.addf %123, %126 : vector<8x512xf32>
    %128 = math.tanh %127 : vector<8x512xf32>
    %129 = vector.extract_strided_slice %128 {offsets = [0, 0], sizes = [8, 128], strides = [1, 1]} : vector<8x512xf32> to vector<8x128xf32>
    %cst_66 = arith.constant 5.000000e-01 : f32
    %130 = vector.broadcast %cst_66 : f32 to vector<8x128xf32>
    %131 = arith.mulf %130, %129 : vector<8x128xf32>
    %cst_67 = arith.constant 5.000000e-01 : f32
    %132 = vector.broadcast %cst_67 : f32 to vector<8x128xf32>
    %133 = arith.addf %131, %132 : vector<8x128xf32>
    %134 = vector.extract_strided_slice %128 {offsets = [0, 128], sizes = [8, 128], strides = [1, 1]} : vector<8x512xf32> to vector<8x128xf32>
    %cst_68 = arith.constant 5.000000e-01 : f32
    %135 = vector.broadcast %cst_68 : f32 to vector<8x128xf32>
    %136 = arith.mulf %135, %134 : vector<8x128xf32>
    %cst_69 = arith.constant 5.000000e-01 : f32
    %137 = vector.broadcast %cst_69 : f32 to vector<8x128xf32>
    %138 = arith.addf %136, %137 : vector<8x128xf32>
    %139 = vector.extract_strided_slice %128 {offsets = [0, 256], sizes = [8, 128], strides = [1, 1]} : vector<8x512xf32> to vector<8x128xf32>
    %140 = vector.extract_strided_slice %128 {offsets = [0, 384], sizes = [8, 128], strides = [1, 1]} : vector<8x512xf32> to vector<8x128xf32>
    %cst_70 = arith.constant 5.000000e-01 : f32
    %141 = vector.broadcast %cst_70 : f32 to vector<8x128xf32>
    %142 = arith.mulf %141, %140 : vector<8x128xf32>
    %cst_71 = arith.constant 5.000000e-01 : f32
    %143 = vector.broadcast %cst_71 : f32 to vector<8x128xf32>
    %144 = arith.addf %142, %143 : vector<8x128xf32>
    %145 = arith.mulf %138, %119 : vector<8x128xf32>
    %146 = arith.mulf %133, %139 : vector<8x128xf32>
    %147 = arith.addf %145, %146 : vector<8x128xf32>
    %148 = math.tanh %147 : vector<8x128xf32>
    %149 = arith.mulf %144, %148 : vector<8x128xf32>
    %c32_72 = arith.constant 32 : index
    %c0_73 = arith.constant 0 : index
    %150 = vector.load %arg14[%c32_72, %c0_73] : memref<64x128xf32, #tpu.memory_space<vmem>>, vector<8x128xf32>
    tpu.vector_store %arg14[%c32_72, %c0_73], %149 {strides = array<i32>} : memref<64x128xf32, #tpu.memory_space<vmem>>, vector<8x128xf32>,
    %c40 = arith.constant 40 : index
    %c0_74 = arith.constant 0 : index
    %151 = vector.load %arg15[%c40, %c0_74] : memref<64x512xf32, #tpu.memory_space<vmem>>, vector<8x512xf32>
    %152 = arith.truncf %149 : vector<8x128xf32> to vector<8x128xbf16>
    %c0_75 = arith.constant 0 : index
    %c0_76 = arith.constant 0 : index
    %153 = vector.load %arg2[%c0_75, %c0_76] : memref<128x512xbf16, #tpu.memory_space<vmem>>, vector<128x512xbf16>
    %cst_77 = arith.constant dense<0.000000e+00> : vector<8x512xf32>
    %154 = tpu.matmul %152, %153, %cst_77 {dimension_numbers = #tpu.dot_dimension_numbers<[1], [0], [0], [1], [0, 0, 1, 1], [], []>} : vector<8x128xbf16>, vector<128x512xbf16>, vector<8x512xf32> -> vector<8x512xf32>
    %155 = arith.addf %151, %154 : vector<8x512xf32>
    %156 = math.tanh %155 : vector<8x512xf32>
    %157 = vector.extract_strided_slice %156 {offsets = [0, 0], sizes = [8, 128], strides = [1, 1]} : vector<8x512xf32> to vector<8x128xf32>
    %cst_78 = arith.constant 5.000000e-01 : f32
    %158 = vector.broadcast %cst_78 : f32 to vector<8x128xf32>
    %159 = arith.mulf %158, %157 : vector<8x128xf32>
    %cst_79 = arith.constant 5.000000e-01 : f32
    %160 = vector.broadcast %cst_79 : f32 to vector<8x128xf32>
    %161 = arith.addf %159, %160 : vector<8x128xf32>
    %162 = vector.extract_strided_slice %156 {offsets = [0, 128], sizes = [8, 128], strides = [1, 1]} : vector<8x512xf32> to vector<8x128xf32>
    %cst_80 = arith.constant 5.000000e-01 : f32
    %163 = vector.broadcast %cst_80 : f32 to vector<8x128xf32>
    %164 = arith.mulf %163, %162 : vector<8x128xf32>
    %cst_81 = arith.constant 5.000000e-01 : f32
    %165 = vector.broadcast %cst_81 : f32 to vector<8x128xf32>
    %166 = arith.addf %164, %165 : vector<8x128xf32>
    %167 = vector.extract_strided_slice %156 {offsets = [0, 256], sizes = [8, 128], strides = [1, 1]} : vector<8x512xf32> to vector<8x128xf32>
    %168 = vector.extract_strided_slice %156 {offsets = [0, 384], sizes = [8, 128], strides = [1, 1]} : vector<8x512xf32> to vector<8x128xf32>
    %cst_82 = arith.constant 5.000000e-01 : f32
    %169 = vector.broadcast %cst_82 : f32 to vector<8x128xf32>
    %170 = arith.mulf %169, %168 : vector<8x128xf32>
    %cst_83 = arith.constant 5.000000e-01 : f32
    %171 = vector.broadcast %cst_83 : f32 to vector<8x128xf32>
    %172 = arith.addf %170, %171 : vector<8x128xf32>
    %173 = arith.mulf %166, %147 : vector<8x128xf32>
    %174 = arith.mulf %161, %167 : vector<8x128xf32>
    %175 = arith.addf %173, %174 : vector<8x128xf32>
    %176 = math.tanh %175 : vector<8x128xf32>
    %177 = arith.mulf %172, %176 : vector<8x128xf32>
    %c40_84 = arith.constant 40 : index
    %c0_85 = arith.constant 0 : index
    %178 = vector.load %arg14[%c40_84, %c0_85] : memref<64x128xf32, #tpu.memory_space<vmem>>, vector<8x128xf32>
    tpu.vector_store %arg14[%c40_84, %c0_85], %177 {strides = array<i32>} : memref<64x128xf32, #tpu.memory_space<vmem>>, vector<8x128xf32>,
    %c48 = arith.constant 48 : index
    %c0_86 = arith.constant 0 : index
    %179 = vector.load %arg15[%c48, %c0_86] : memref<64x512xf32, #tpu.memory_space<vmem>>, vector<8x512xf32>
    %180 = arith.truncf %177 : vector<8x128xf32> to vector<8x128xbf16>
    %c0_87 = arith.constant 0 : index
    %c0_88 = arith.constant 0 : index
    %181 = vector.load %arg2[%c0_87, %c0_88] : memref<128x512xbf16, #tpu.memory_space<vmem>>, vector<128x512xbf16>
    %cst_89 = arith.constant dense<0.000000e+00> : vector<8x512xf32>
    %182 = tpu.matmul %180, %181, %cst_89 {dimension_numbers = #tpu.dot_dimension_numbers<[1], [0], [0], [1], [0, 0, 1, 1], [], []>} : vector<8x128xbf16>, vector<128x512xbf16>, vector<8x512xf32> -> vector<8x512xf32>
    %183 = arith.addf %179, %182 : vector<8x512xf32>
    %184 = math.tanh %183 : vector<8x512xf32>
    %185 = vector.extract_strided_slice %184 {offsets = [0, 0], sizes = [8, 128], strides = [1, 1]} : vector<8x512xf32> to vector<8x128xf32>
    %cst_90 = arith.constant 5.000000e-01 : f32
    %186 = vector.broadcast %cst_90 : f32 to vector<8x128xf32>
    %187 = arith.mulf %186, %185 : vector<8x128xf32>
    %cst_91 = arith.constant 5.000000e-01 : f32
    %188 = vector.broadcast %cst_91 : f32 to vector<8x128xf32>
    %189 = arith.addf %187, %188 : vector<8x128xf32>
    %190 = vector.extract_strided_slice %184 {offsets = [0, 128], sizes = [8, 128], strides = [1, 1]} : vector<8x512xf32> to vector<8x128xf32>
    %cst_92 = arith.constant 5.000000e-01 : f32
    %191 = vector.broadcast %cst_92 : f32 to vector<8x128xf32>
    %192 = arith.mulf %191, %190 : vector<8x128xf32>
    %cst_93 = arith.constant 5.000000e-01 : f32
    %193 = vector.broadcast %cst_93 : f32 to vector<8x128xf32>
    %194 = arith.addf %192, %193 : vector<8x128xf32>
    %195 = vector.extract_strided_slice %184 {offsets = [0, 256], sizes = [8, 128], strides = [1, 1]} : vector<8x512xf32> to vector<8x128xf32>
    %196 = vector.extract_strided_slice %184 {offsets = [0, 384], sizes = [8, 128], strides = [1, 1]} : vector<8x512xf32> to vector<8x128xf32>
    %cst_94 = arith.constant 5.000000e-01 : f32
    %197 = vector.broadcast %cst_94 : f32 to vector<8x128xf32>
    %198 = arith.mulf %197, %196 : vector<8x128xf32>
    %cst_95 = arith.constant 5.000000e-01 : f32
    %199 = vector.broadcast %cst_95 : f32 to vector<8x128xf32>
    %200 = arith.addf %198, %199 : vector<8x128xf32>
    %201 = arith.mulf %194, %175 : vector<8x128xf32>
    %202 = arith.mulf %189, %195 : vector<8x128xf32>
    %203 = arith.addf %201, %202 : vector<8x128xf32>
    %204 = math.tanh %203 : vector<8x128xf32>
    %205 = arith.mulf %200, %204 : vector<8x128xf32>
    %c48_96 = arith.constant 48 : index
    %c0_97 = arith.constant 0 : index
    %206 = vector.load %arg14[%c48_96, %c0_97] : memref<64x128xf32, #tpu.memory_space<vmem>>, vector<8x128xf32>
    tpu.vector_store %arg14[%c48_96, %c0_97], %205 {strides = array<i32>} : memref<64x128xf32, #tpu.memory_space<vmem>>, vector<8x128xf32>,
    %c56 = arith.constant 56 : index
    %c0_98 = arith.constant 0 : index
    %207 = vector.load %arg15[%c56, %c0_98] : memref<64x512xf32, #tpu.memory_space<vmem>>, vector<8x512xf32>
    %208 = arith.truncf %205 : vector<8x128xf32> to vector<8x128xbf16>
    %c0_99 = arith.constant 0 : index
    %c0_100 = arith.constant 0 : index
    %209 = vector.load %arg2[%c0_99, %c0_100] : memref<128x512xbf16, #tpu.memory_space<vmem>>, vector<128x512xbf16>
    %cst_101 = arith.constant dense<0.000000e+00> : vector<8x512xf32>
    %210 = tpu.matmul %208, %209, %cst_101 {dimension_numbers = #tpu.dot_dimension_numbers<[1], [0], [0], [1], [0, 0, 1, 1], [], []>} : vector<8x128xbf16>, vector<128x512xbf16>, vector<8x512xf32> -> vector<8x512xf32>
    %211 = arith.addf %207, %210 : vector<8x512xf32>
    %212 = math.tanh %211 : vector<8x512xf32>
    %213 = vector.extract_strided_slice %212 {offsets = [0, 0], sizes = [8, 128], strides = [1, 1]} : vector<8x512xf32> to vector<8x128xf32>
    %cst_102 = arith.constant 5.000000e-01 : f32
    %214 = vector.broadcast %cst_102 : f32 to vector<8x128xf32>
    %215 = arith.mulf %214, %213 : vector<8x128xf32>
    %cst_103 = arith.constant 5.000000e-01 : f32
    %216 = vector.broadcast %cst_103 : f32 to vector<8x128xf32>
    %217 = arith.addf %215, %216 : vector<8x128xf32>
    %218 = vector.extract_strided_slice %212 {offsets = [0, 128], sizes = [8, 128], strides = [1, 1]} : vector<8x512xf32> to vector<8x128xf32>
    %cst_104 = arith.constant 5.000000e-01 : f32
    %219 = vector.broadcast %cst_104 : f32 to vector<8x128xf32>
    %220 = arith.mulf %219, %218 : vector<8x128xf32>
    %cst_105 = arith.constant 5.000000e-01 : f32
    %221 = vector.broadcast %cst_105 : f32 to vector<8x128xf32>
    %222 = arith.addf %220, %221 : vector<8x128xf32>
    %223 = vector.extract_strided_slice %212 {offsets = [0, 256], sizes = [8, 128], strides = [1, 1]} : vector<8x512xf32> to vector<8x128xf32>
    %224 = vector.extract_strided_slice %212 {offsets = [0, 384], sizes = [8, 128], strides = [1, 1]} : vector<8x512xf32> to vector<8x128xf32>
    %cst_106 = arith.constant 5.000000e-01 : f32
    %225 = vector.broadcast %cst_106 : f32 to vector<8x128xf32>
    %226 = arith.mulf %225, %224 : vector<8x128xf32>
    %cst_107 = arith.constant 5.000000e-01 : f32
    %227 = vector.broadcast %cst_107 : f32 to vector<8x128xf32>
    %228 = arith.addf %226, %227 : vector<8x128xf32>
    %229 = arith.mulf %222, %203 : vector<8x128xf32>
    %230 = arith.mulf %217, %223 : vector<8x128xf32>
    %231 = arith.addf %229, %230 : vector<8x128xf32>
    %232 = math.tanh %231 : vector<8x128xf32>
    %233 = arith.mulf %228, %232 : vector<8x128xf32>
    %c56_108 = arith.constant 56 : index
    %c0_109 = arith.constant 0 : index
    %234 = vector.load %arg14[%c56_108, %c0_109] : memref<64x128xf32, #tpu.memory_space<vmem>>, vector<8x128xf32>
    tpu.vector_store %arg14[%c56_108, %c0_109], %233 {strides = array<i32>} : memref<64x128xf32, #tpu.memory_space<vmem>>, vector<8x128xf32>,
    %c0_110 = arith.constant 0 : index
    %c0_111 = arith.constant 0 : index
    %c0_112 = arith.constant 0 : index
    %235 = vector.load %arg12[%c0_110, %c0_111, %c0_112] : memref<2x8x128xf32, #tpu.memory_space<vmem>>, vector<1x8x128xf32>
    %236 = vector.shape_cast %235 : vector<1x8x128xf32> to vector<8x128xf32>
    %237 = vector.shape_cast %233 : vector<8x128xf32> to vector<1x8x128xf32>
    tpu.vector_store %arg12[%c0_110, %c0_111, %c0_112], %237 {strides = array<i32>} : memref<2x8x128xf32, #tpu.memory_space<vmem>>, vector<1x8x128xf32>,
    %c0_113 = arith.constant 0 : index
    %c0_114 = arith.constant 0 : index
    %c0_115 = arith.constant 0 : index
    %238 = vector.load %arg13[%c0_113, %c0_114, %c0_115] : memref<2x8x128xf32, #tpu.memory_space<vmem>>, vector<1x8x128xf32>
    %239 = vector.shape_cast %238 : vector<1x8x128xf32> to vector<8x128xf32>
    %240 = vector.shape_cast %231 : vector<8x128xf32> to vector<1x8x128xf32>
    tpu.vector_store %arg13[%c0_113, %c0_114, %c0_115], %240 {strides = array<i32>} : memref<2x8x128xf32, #tpu.memory_space<vmem>>, vector<1x8x128xf32>,
    %c0_116 = arith.constant 0 : index
    %c0_117 = arith.constant 0 : index
    %241 = vector.load %arg14[%c0_116, %c0_117] : memref<64x128xf32, #tpu.memory_space<vmem>>, vector<64x128xf32>
    %242 = arith.truncf %241 : vector<64x128xf32> to vector<64x128xbf16>
    %c0_118 = arith.constant 0 : index
    %c0_119 = arith.constant 0 : index
    %243 = vector.load %arg4[%c0_118, %c0_119] : memref<128x512xbf16, #tpu.memory_space<vmem>>, vector<128x512xbf16>
    %cst_120 = arith.constant dense<0.000000e+00> : vector<64x512xf32>
    %244 = tpu.matmul %242, %243, %cst_120 {dimension_numbers = #tpu.dot_dimension_numbers<[1], [0], [0], [1], [0, 0, 1, 1], [], []>} : vector<64x128xbf16>, vector<128x512xbf16>, vector<64x512xf32> -> vector<64x512xf32>
    %c0_121 = arith.constant 0 : index
    %c0_122 = arith.constant 0 : index
    %245 = vector.load %arg6[%c0_121, %c0_122] : memref<1x512xf32, #tpu.memory_space<vmem>>, vector<1x512xf32>
    %246 = vector.broadcast %245 : vector<1x512xf32> to vector<64x512xf32>
    %247 = arith.addf %244, %246 : vector<64x512xf32>
    %c0_123 = arith.constant 0 : index
    %c0_124 = arith.constant 0 : index
    %248 = vector.load %arg15[%c0_123, %c0_124] : memref<64x512xf32, #tpu.memory_space<vmem>>, vector<64x512xf32>
    tpu.vector_store %arg15[%c0_123, %c0_124], %247 {strides = array<i32>} : memref<64x512xf32, #tpu.memory_space<vmem>>, vector<64x512xf32>,
    %c1 = arith.constant 1 : index
    %c0_125 = arith.constant 0 : index
    %c0_126 = arith.constant 0 : index
    %249 = vector.load %arg7[%c1, %c0_125, %c0_126] : memref<2x8x128xf32, #tpu.memory_space<vmem>>, vector<1x8x128xf32>
    %250 = vector.shape_cast %249 : vector<1x8x128xf32> to vector<8x128xf32>
    %c1_127 = arith.constant 1 : index
    %c0_128 = arith.constant 0 : index
    %c0_129 = arith.constant 0 : index
    %251 = vector.load %arg8[%c1_127, %c0_128, %c0_129] : memref<2x8x128xf32, #tpu.memory_space<vmem>>, vector<1x8x128xf32>
    %252 = vector.shape_cast %251 : vector<1x8x128xf32> to vector<8x128xf32>
    %c0_130 = arith.constant 0 : index
    %c0_131 = arith.constant 0 : index
    %253 = vector.load %arg15[%c0_130, %c0_131] : memref<64x512xf32, #tpu.memory_space<vmem>>, vector<8x512xf32>
    %254 = arith.truncf %250 : vector<8x128xf32> to vector<8x128xbf16>
    %c0_132 = arith.constant 0 : index
    %c0_133 = arith.constant 0 : index
    %255 = vector.load %arg5[%c0_132, %c0_133] : memref<128x512xbf16, #tpu.memory_space<vmem>>, vector<128x512xbf16>
    %cst_134 = arith.constant dense<0.000000e+00> : vector<8x512xf32>
    %256 = tpu.matmul %254, %255, %cst_134 {dimension_numbers = #tpu.dot_dimension_numbers<[1], [0], [0], [1], [0, 0, 1, 1], [], []>} : vector<8x128xbf16>, vector<128x512xbf16>, vector<8x512xf32> -> vector<8x512xf32>
    %257 = arith.addf %253, %256 : vector<8x512xf32>
    %258 = math.tanh %257 : vector<8x512xf32>
    %259 = vector.extract_strided_slice %258 {offsets = [0, 0], sizes = [8, 128], strides = [1, 1]} : vector<8x512xf32> to vector<8x128xf32>
    %cst_135 = arith.constant 5.000000e-01 : f32
    %260 = vector.broadcast %cst_135 : f32 to vector<8x128xf32>
    %261 = arith.mulf %260, %259 : vector<8x128xf32>
    %cst_136 = arith.constant 5.000000e-01 : f32
    %262 = vector.broadcast %cst_136 : f32 to vector<8x128xf32>
    %263 = arith.addf %261, %262 : vector<8x128xf32>
    %264 = vector.extract_strided_slice %258 {offsets = [0, 128], sizes = [8, 128], strides = [1, 1]} : vector<8x512xf32> to vector<8x128xf32>
    %cst_137 = arith.constant 5.000000e-01 : f32
    %265 = vector.broadcast %cst_137 : f32 to vector<8x128xf32>
    %266 = arith.mulf %265, %264 : vector<8x128xf32>
    %cst_138 = arith.constant 5.000000e-01 : f32
    %267 = vector.broadcast %cst_138 : f32 to vector<8x128xf32>
    %268 = arith.addf %266, %267 : vector<8x128xf32>
    %269 = vector.extract_strided_slice %258 {offsets = [0, 256], sizes = [8, 128], strides = [1, 1]} : vector<8x512xf32> to vector<8x128xf32>
    %270 = vector.extract_strided_slice %258 {offsets = [0, 384], sizes = [8, 128], strides = [1, 1]} : vector<8x512xf32> to vector<8x128xf32>
    %cst_139 = arith.constant 5.000000e-01 : f32
    %271 = vector.broadcast %cst_139 : f32 to vector<8x128xf32>
    %272 = arith.mulf %271, %270 : vector<8x128xf32>
    %cst_140 = arith.constant 5.000000e-01 : f32
    %273 = vector.broadcast %cst_140 : f32 to vector<8x128xf32>
    %274 = arith.addf %272, %273 : vector<8x128xf32>
    %275 = arith.mulf %268, %252 : vector<8x128xf32>
    %276 = arith.mulf %263, %269 : vector<8x128xf32>
    %277 = arith.addf %275, %276 : vector<8x128xf32>
    %278 = math.tanh %277 : vector<8x128xf32>
    %279 = arith.mulf %274, %278 : vector<8x128xf32>
    %c0_141 = arith.constant 0 : index
    %c0_142 = arith.constant 0 : index
    %280 = vector.load %arg14[%c0_141, %c0_142] : memref<64x128xf32, #tpu.memory_space<vmem>>, vector<8x128xf32>
    tpu.vector_store %arg14[%c0_141, %c0_142], %279 {strides = array<i32>} : memref<64x128xf32, #tpu.memory_space<vmem>>, vector<8x128xf32>,
    %c8_143 = arith.constant 8 : index
    %c0_144 = arith.constant 0 : index
    %281 = vector.load %arg15[%c8_143, %c0_144] : memref<64x512xf32, #tpu.memory_space<vmem>>, vector<8x512xf32>
    %282 = arith.truncf %279 : vector<8x128xf32> to vector<8x128xbf16>
    %c0_145 = arith.constant 0 : index
    %c0_146 = arith.constant 0 : index
    %283 = vector.load %arg5[%c0_145, %c0_146] : memref<128x512xbf16, #tpu.memory_space<vmem>>, vector<128x512xbf16>
    %cst_147 = arith.constant dense<0.000000e+00> : vector<8x512xf32>
    %284 = tpu.matmul %282, %283, %cst_147 {dimension_numbers = #tpu.dot_dimension_numbers<[1], [0], [0], [1], [0, 0, 1, 1], [], []>} : vector<8x128xbf16>, vector<128x512xbf16>, vector<8x512xf32> -> vector<8x512xf32>
    %285 = arith.addf %281, %284 : vector<8x512xf32>
    %286 = math.tanh %285 : vector<8x512xf32>
    %287 = vector.extract_strided_slice %286 {offsets = [0, 0], sizes = [8, 128], strides = [1, 1]} : vector<8x512xf32> to vector<8x128xf32>
    %cst_148 = arith.constant 5.000000e-01 : f32
    %288 = vector.broadcast %cst_148 : f32 to vector<8x128xf32>
    %289 = arith.mulf %288, %287 : vector<8x128xf32>
    %cst_149 = arith.constant 5.000000e-01 : f32
    %290 = vector.broadcast %cst_149 : f32 to vector<8x128xf32>
    %291 = arith.addf %289, %290 : vector<8x128xf32>
    %292 = vector.extract_strided_slice %286 {offsets = [0, 128], sizes = [8, 128], strides = [1, 1]} : vector<8x512xf32> to vector<8x128xf32>
    %cst_150 = arith.constant 5.000000e-01 : f32
    %293 = vector.broadcast %cst_150 : f32 to vector<8x128xf32>
    %294 = arith.mulf %293, %292 : vector<8x128xf32>
    %cst_151 = arith.constant 5.000000e-01 : f32
    %295 = vector.broadcast %cst_151 : f32 to vector<8x128xf32>
    %296 = arith.addf %294, %295 : vector<8x128xf32>
    %297 = vector.extract_strided_slice %286 {offsets = [0, 256], sizes = [8, 128], strides = [1, 1]} : vector<8x512xf32> to vector<8x128xf32>
    %298 = vector.extract_strided_slice %286 {offsets = [0, 384], sizes = [8, 128], strides = [1, 1]} : vector<8x512xf32> to vector<8x128xf32>
    %cst_152 = arith.constant 5.000000e-01 : f32
    %299 = vector.broadcast %cst_152 : f32 to vector<8x128xf32>
    %300 = arith.mulf %299, %298 : vector<8x128xf32>
    %cst_153 = arith.constant 5.000000e-01 : f32
    %301 = vector.broadcast %cst_153 : f32 to vector<8x128xf32>
    %302 = arith.addf %300, %301 : vector<8x128xf32>
    %303 = arith.mulf %296, %277 : vector<8x128xf32>
    %304 = arith.mulf %291, %297 : vector<8x128xf32>
    %305 = arith.addf %303, %304 : vector<8x128xf32>
    %306 = math.tanh %305 : vector<8x128xf32>
    %307 = arith.mulf %302, %306 : vector<8x128xf32>
    %c8_154 = arith.constant 8 : index
    %c0_155 = arith.constant 0 : index
    %308 = vector.load %arg14[%c8_154, %c0_155] : memref<64x128xf32, #tpu.memory_space<vmem>>, vector<8x128xf32>
    tpu.vector_store %arg14[%c8_154, %c0_155], %307 {strides = array<i32>} : memref<64x128xf32, #tpu.memory_space<vmem>>, vector<8x128xf32>,
    %c16_156 = arith.constant 16 : index
    %c0_157 = arith.constant 0 : index
    %309 = vector.load %arg15[%c16_156, %c0_157] : memref<64x512xf32, #tpu.memory_space<vmem>>, vector<8x512xf32>
    %310 = arith.truncf %307 : vector<8x128xf32> to vector<8x128xbf16>
    %c0_158 = arith.constant 0 : index
    %c0_159 = arith.constant 0 : index
    %311 = vector.load %arg5[%c0_158, %c0_159] : memref<128x512xbf16, #tpu.memory_space<vmem>>, vector<128x512xbf16>
    %cst_160 = arith.constant dense<0.000000e+00> : vector<8x512xf32>
    %312 = tpu.matmul %310, %311, %cst_160 {dimension_numbers = #tpu.dot_dimension_numbers<[1], [0], [0], [1], [0, 0, 1, 1], [], []>} : vector<8x128xbf16>, vector<128x512xbf16>, vector<8x512xf32> -> vector<8x512xf32>
    %313 = arith.addf %309, %312 : vector<8x512xf32>
    %314 = math.tanh %313 : vector<8x512xf32>
    %315 = vector.extract_strided_slice %314 {offsets = [0, 0], sizes = [8, 128], strides = [1, 1]} : vector<8x512xf32> to vector<8x128xf32>
    %cst_161 = arith.constant 5.000000e-01 : f32
    %316 = vector.broadcast %cst_161 : f32 to vector<8x128xf32>
    %317 = arith.mulf %316, %315 : vector<8x128xf32>
    %cst_162 = arith.constant 5.000000e-01 : f32
    %318 = vector.broadcast %cst_162 : f32 to vector<8x128xf32>
    %319 = arith.addf %317, %318 : vector<8x128xf32>
    %320 = vector.extract_strided_slice %314 {offsets = [0, 128], sizes = [8, 128], strides = [1, 1]} : vector<8x512xf32> to vector<8x128xf32>
    %cst_163 = arith.constant 5.000000e-01 : f32
    %321 = vector.broadcast %cst_163 : f32 to vector<8x128xf32>
    %322 = arith.mulf %321, %320 : vector<8x128xf32>
    %cst_164 = arith.constant 5.000000e-01 : f32
    %323 = vector.broadcast %cst_164 : f32 to vector<8x128xf32>
    %324 = arith.addf %322, %323 : vector<8x128xf32>
    %325 = vector.extract_strided_slice %314 {offsets = [0, 256], sizes = [8, 128], strides = [1, 1]} : vector<8x512xf32> to vector<8x128xf32>
    %326 = vector.extract_strided_slice %314 {offsets = [0, 384], sizes = [8, 128], strides = [1, 1]} : vector<8x512xf32> to vector<8x128xf32>
    %cst_165 = arith.constant 5.000000e-01 : f32
    %327 = vector.broadcast %cst_165 : f32 to vector<8x128xf32>
    %328 = arith.mulf %327, %326 : vector<8x128xf32>
    %cst_166 = arith.constant 5.000000e-01 : f32
    %329 = vector.broadcast %cst_166 : f32 to vector<8x128xf32>
    %330 = arith.addf %328, %329 : vector<8x128xf32>
    %331 = arith.mulf %324, %305 : vector<8x128xf32>
    %332 = arith.mulf %319, %325 : vector<8x128xf32>
    %333 = arith.addf %331, %332 : vector<8x128xf32>
    %334 = math.tanh %333 : vector<8x128xf32>
    %335 = arith.mulf %330, %334 : vector<8x128xf32>
    %c16_167 = arith.constant 16 : index
    %c0_168 = arith.constant 0 : index
    %336 = vector.load %arg14[%c16_167, %c0_168] : memref<64x128xf32, #tpu.memory_space<vmem>>, vector<8x128xf32>
    tpu.vector_store %arg14[%c16_167, %c0_168], %335 {strides = array<i32>} : memref<64x128xf32, #tpu.memory_space<vmem>>, vector<8x128xf32>,
    %c24_169 = arith.constant 24 : index
    %c0_170 = arith.constant 0 : index
    %337 = vector.load %arg15[%c24_169, %c0_170] : memref<64x512xf32, #tpu.memory_space<vmem>>, vector<8x512xf32>
    %338 = arith.truncf %335 : vector<8x128xf32> to vector<8x128xbf16>
    %c0_171 = arith.constant 0 : index
    %c0_172 = arith.constant 0 : index
    %339 = vector.load %arg5[%c0_171, %c0_172] : memref<128x512xbf16, #tpu.memory_space<vmem>>, vector<128x512xbf16>
    %cst_173 = arith.constant dense<0.000000e+00> : vector<8x512xf32>
    %340 = tpu.matmul %338, %339, %cst_173 {dimension_numbers = #tpu.dot_dimension_numbers<[1], [0], [0], [1], [0, 0, 1, 1], [], []>} : vector<8x128xbf16>, vector<128x512xbf16>, vector<8x512xf32> -> vector<8x512xf32>
    %341 = arith.addf %337, %340 : vector<8x512xf32>
    %342 = math.tanh %341 : vector<8x512xf32>
    %343 = vector.extract_strided_slice %342 {offsets = [0, 0], sizes = [8, 128], strides = [1, 1]} : vector<8x512xf32> to vector<8x128xf32>
    %cst_174 = arith.constant 5.000000e-01 : f32
    %344 = vector.broadcast %cst_174 : f32 to vector<8x128xf32>
    %345 = arith.mulf %344, %343 : vector<8x128xf32>
    %cst_175 = arith.constant 5.000000e-01 : f32
    %346 = vector.broadcast %cst_175 : f32 to vector<8x128xf32>
    %347 = arith.addf %345, %346 : vector<8x128xf32>
    %348 = vector.extract_strided_slice %342 {offsets = [0, 128], sizes = [8, 128], strides = [1, 1]} : vector<8x512xf32> to vector<8x128xf32>
    %cst_176 = arith.constant 5.000000e-01 : f32
    %349 = vector.broadcast %cst_176 : f32 to vector<8x128xf32>
    %350 = arith.mulf %349, %348 : vector<8x128xf32>
    %cst_177 = arith.constant 5.000000e-01 : f32
    %351 = vector.broadcast %cst_177 : f32 to vector<8x128xf32>
    %352 = arith.addf %350, %351 : vector<8x128xf32>
    %353 = vector.extract_strided_slice %342 {offsets = [0, 256], sizes = [8, 128], strides = [1, 1]} : vector<8x512xf32> to vector<8x128xf32>
    %354 = vector.extract_strided_slice %342 {offsets = [0, 384], sizes = [8, 128], strides = [1, 1]} : vector<8x512xf32> to vector<8x128xf32>
    %cst_178 = arith.constant 5.000000e-01 : f32
    %355 = vector.broadcast %cst_178 : f32 to vector<8x128xf32>
    %356 = arith.mulf %355, %354 : vector<8x128xf32>
    %cst_179 = arith.constant 5.000000e-01 : f32
    %357 = vector.broadcast %cst_179 : f32 to vector<8x128xf32>
    %358 = arith.addf %356, %357 : vector<8x128xf32>
    %359 = arith.mulf %352, %333 : vector<8x128xf32>
    %360 = arith.mulf %347, %353 : vector<8x128xf32>
    %361 = arith.addf %359, %360 : vector<8x128xf32>
    %362 = math.tanh %361 : vector<8x128xf32>
    %363 = arith.mulf %358, %362 : vector<8x128xf32>
    %c24_180 = arith.constant 24 : index
    %c0_181 = arith.constant 0 : index
    %364 = vector.load %arg14[%c24_180, %c0_181] : memref<64x128xf32, #tpu.memory_space<vmem>>, vector<8x128xf32>
    tpu.vector_store %arg14[%c24_180, %c0_181], %363 {strides = array<i32>} : memref<64x128xf32, #tpu.memory_space<vmem>>, vector<8x128xf32>,
    %c32_182 = arith.constant 32 : index
    %c0_183 = arith.constant 0 : index
    %365 = vector.load %arg15[%c32_182, %c0_183] : memref<64x512xf32, #tpu.memory_space<vmem>>, vector<8x512xf32>
    %366 = arith.truncf %363 : vector<8x128xf32> to vector<8x128xbf16>
    %c0_184 = arith.constant 0 : index
    %c0_185 = arith.constant 0 : index
    %367 = vector.load %arg5[%c0_184, %c0_185] : memref<128x512xbf16, #tpu.memory_space<vmem>>, vector<128x512xbf16>
    %cst_186 = arith.constant dense<0.000000e+00> : vector<8x512xf32>
    %368 = tpu.matmul %366, %367, %cst_186 {dimension_numbers = #tpu.dot_dimension_numbers<[1], [0], [0], [1], [0, 0, 1, 1], [], []>} : vector<8x128xbf16>, vector<128x512xbf16>, vector<8x512xf32> -> vector<8x512xf32>
    %369 = arith.addf %365, %368 : vector<8x512xf32>
    %370 = math.tanh %369 : vector<8x512xf32>
    %371 = vector.extract_strided_slice %370 {offsets = [0, 0], sizes = [8, 128], strides = [1, 1]} : vector<8x512xf32> to vector<8x128xf32>
    %cst_187 = arith.constant 5.000000e-01 : f32
    %372 = vector.broadcast %cst_187 : f32 to vector<8x128xf32>
    %373 = arith.mulf %372, %371 : vector<8x128xf32>
    %cst_188 = arith.constant 5.000000e-01 : f32
    %374 = vector.broadcast %cst_188 : f32 to vector<8x128xf32>
    %375 = arith.addf %373, %374 : vector<8x128xf32>
    %376 = vector.extract_strided_slice %370 {offsets = [0, 128], sizes = [8, 128], strides = [1, 1]} : vector<8x512xf32> to vector<8x128xf32>
    %cst_189 = arith.constant 5.000000e-01 : f32
    %377 = vector.broadcast %cst_189 : f32 to vector<8x128xf32>
    %378 = arith.mulf %377, %376 : vector<8x128xf32>
    %cst_190 = arith.constant 5.000000e-01 : f32
    %379 = vector.broadcast %cst_190 : f32 to vector<8x128xf32>
    %380 = arith.addf %378, %379 : vector<8x128xf32>
    %381 = vector.extract_strided_slice %370 {offsets = [0, 256], sizes = [8, 128], strides = [1, 1]} : vector<8x512xf32> to vector<8x128xf32>
    %382 = vector.extract_strided_slice %370 {offsets = [0, 384], sizes = [8, 128], strides = [1, 1]} : vector<8x512xf32> to vector<8x128xf32>
    %cst_191 = arith.constant 5.000000e-01 : f32
    %383 = vector.broadcast %cst_191 : f32 to vector<8x128xf32>
    %384 = arith.mulf %383, %382 : vector<8x128xf32>
    %cst_192 = arith.constant 5.000000e-01 : f32
    %385 = vector.broadcast %cst_192 : f32 to vector<8x128xf32>
    %386 = arith.addf %384, %385 : vector<8x128xf32>
    %387 = arith.mulf %380, %361 : vector<8x128xf32>
    %388 = arith.mulf %375, %381 : vector<8x128xf32>
    %389 = arith.addf %387, %388 : vector<8x128xf32>
    %390 = math.tanh %389 : vector<8x128xf32>
    %391 = arith.mulf %386, %390 : vector<8x128xf32>
    %c32_193 = arith.constant 32 : index
    %c0_194 = arith.constant 0 : index
    %392 = vector.load %arg14[%c32_193, %c0_194] : memref<64x128xf32, #tpu.memory_space<vmem>>, vector<8x128xf32>
    tpu.vector_store %arg14[%c32_193, %c0_194], %391 {strides = array<i32>} : memref<64x128xf32, #tpu.memory_space<vmem>>, vector<8x128xf32>,
    %c40_195 = arith.constant 40 : index
    %c0_196 = arith.constant 0 : index
    %393 = vector.load %arg15[%c40_195, %c0_196] : memref<64x512xf32, #tpu.memory_space<vmem>>, vector<8x512xf32>
    %394 = arith.truncf %391 : vector<8x128xf32> to vector<8x128xbf16>
    %c0_197 = arith.constant 0 : index
    %c0_198 = arith.constant 0 : index
    %395 = vector.load %arg5[%c0_197, %c0_198] : memref<128x512xbf16, #tpu.memory_space<vmem>>, vector<128x512xbf16>
    %cst_199 = arith.constant dense<0.000000e+00> : vector<8x512xf32>
    %396 = tpu.matmul %394, %395, %cst_199 {dimension_numbers = #tpu.dot_dimension_numbers<[1], [0], [0], [1], [0, 0, 1, 1], [], []>} : vector<8x128xbf16>, vector<128x512xbf16>, vector<8x512xf32> -> vector<8x512xf32>
    %397 = arith.addf %393, %396 : vector<8x512xf32>
    %398 = math.tanh %397 : vector<8x512xf32>
    %399 = vector.extract_strided_slice %398 {offsets = [0, 0], sizes = [8, 128], strides = [1, 1]} : vector<8x512xf32> to vector<8x128xf32>
    %cst_200 = arith.constant 5.000000e-01 : f32
    %400 = vector.broadcast %cst_200 : f32 to vector<8x128xf32>
    %401 = arith.mulf %400, %399 : vector<8x128xf32>
    %cst_201 = arith.constant 5.000000e-01 : f32
    %402 = vector.broadcast %cst_201 : f32 to vector<8x128xf32>
    %403 = arith.addf %401, %402 : vector<8x128xf32>
    %404 = vector.extract_strided_slice %398 {offsets = [0, 128], sizes = [8, 128], strides = [1, 1]} : vector<8x512xf32> to vector<8x128xf32>
    %cst_202 = arith.constant 5.000000e-01 : f32
    %405 = vector.broadcast %cst_202 : f32 to vector<8x128xf32>
    %406 = arith.mulf %405, %404 : vector<8x128xf32>
    %cst_203 = arith.constant 5.000000e-01 : f32
    %407 = vector.broadcast %cst_203 : f32 to vector<8x128xf32>
    %408 = arith.addf %406, %407 : vector<8x128xf32>
    %409 = vector.extract_strided_slice %398 {offsets = [0, 256], sizes = [8, 128], strides = [1, 1]} : vector<8x512xf32> to vector<8x128xf32>
    %410 = vector.extract_strided_slice %398 {offsets = [0, 384], sizes = [8, 128], strides = [1, 1]} : vector<8x512xf32> to vector<8x128xf32>
    %cst_204 = arith.constant 5.000000e-01 : f32
    %411 = vector.broadcast %cst_204 : f32 to vector<8x128xf32>
    %412 = arith.mulf %411, %410 : vector<8x128xf32>
    %cst_205 = arith.constant 5.000000e-01 : f32
    %413 = vector.broadcast %cst_205 : f32 to vector<8x128xf32>
    %414 = arith.addf %412, %413 : vector<8x128xf32>
    %415 = arith.mulf %408, %389 : vector<8x128xf32>
    %416 = arith.mulf %403, %409 : vector<8x128xf32>
    %417 = arith.addf %415, %416 : vector<8x128xf32>
    %418 = math.tanh %417 : vector<8x128xf32>
    %419 = arith.mulf %414, %418 : vector<8x128xf32>
    %c40_206 = arith.constant 40 : index
    %c0_207 = arith.constant 0 : index
    %420 = vector.load %arg14[%c40_206, %c0_207] : memref<64x128xf32, #tpu.memory_space<vmem>>, vector<8x128xf32>
    tpu.vector_store %arg14[%c40_206, %c0_207], %419 {strides = array<i32>} : memref<64x128xf32, #tpu.memory_space<vmem>>, vector<8x128xf32>,
    %c48_208 = arith.constant 48 : index
    %c0_209 = arith.constant 0 : index
    %421 = vector.load %arg15[%c48_208, %c0_209] : memref<64x512xf32, #tpu.memory_space<vmem>>, vector<8x512xf32>
    %422 = arith.truncf %419 : vector<8x128xf32> to vector<8x128xbf16>
    %c0_210 = arith.constant 0 : index
    %c0_211 = arith.constant 0 : index
    %423 = vector.load %arg5[%c0_210, %c0_211] : memref<128x512xbf16, #tpu.memory_space<vmem>>, vector<128x512xbf16>
    %cst_212 = arith.constant dense<0.000000e+00> : vector<8x512xf32>
    %424 = tpu.matmul %422, %423, %cst_212 {dimension_numbers = #tpu.dot_dimension_numbers<[1], [0], [0], [1], [0, 0, 1, 1], [], []>} : vector<8x128xbf16>, vector<128x512xbf16>, vector<8x512xf32> -> vector<8x512xf32>
    %425 = arith.addf %421, %424 : vector<8x512xf32>
    %426 = math.tanh %425 : vector<8x512xf32>
    %427 = vector.extract_strided_slice %426 {offsets = [0, 0], sizes = [8, 128], strides = [1, 1]} : vector<8x512xf32> to vector<8x128xf32>
    %cst_213 = arith.constant 5.000000e-01 : f32
    %428 = vector.broadcast %cst_213 : f32 to vector<8x128xf32>
    %429 = arith.mulf %428, %427 : vector<8x128xf32>
    %cst_214 = arith.constant 5.000000e-01 : f32
    %430 = vector.broadcast %cst_214 : f32 to vector<8x128xf32>
    %431 = arith.addf %429, %430 : vector<8x128xf32>
    %432 = vector.extract_strided_slice %426 {offsets = [0, 128], sizes = [8, 128], strides = [1, 1]} : vector<8x512xf32> to vector<8x128xf32>
    %cst_215 = arith.constant 5.000000e-01 : f32
    %433 = vector.broadcast %cst_215 : f32 to vector<8x128xf32>
    %434 = arith.mulf %433, %432 : vector<8x128xf32>
    %cst_216 = arith.constant 5.000000e-01 : f32
    %435 = vector.broadcast %cst_216 : f32 to vector<8x128xf32>
    %436 = arith.addf %434, %435 : vector<8x128xf32>
    %437 = vector.extract_strided_slice %426 {offsets = [0, 256], sizes = [8, 128], strides = [1, 1]} : vector<8x512xf32> to vector<8x128xf32>
    %438 = vector.extract_strided_slice %426 {offsets = [0, 384], sizes = [8, 128], strides = [1, 1]} : vector<8x512xf32> to vector<8x128xf32>
    %cst_217 = arith.constant 5.000000e-01 : f32
    %439 = vector.broadcast %cst_217 : f32 to vector<8x128xf32>
    %440 = arith.mulf %439, %438 : vector<8x128xf32>
    %cst_218 = arith.constant 5.000000e-01 : f32
    %441 = vector.broadcast %cst_218 : f32 to vector<8x128xf32>
    %442 = arith.addf %440, %441 : vector<8x128xf32>
    %443 = arith.mulf %436, %417 : vector<8x128xf32>
    %444 = arith.mulf %431, %437 : vector<8x128xf32>
    %445 = arith.addf %443, %444 : vector<8x128xf32>
    %446 = math.tanh %445 : vector<8x128xf32>
    %447 = arith.mulf %442, %446 : vector<8x128xf32>
    %c48_219 = arith.constant 48 : index
    %c0_220 = arith.constant 0 : index
    %448 = vector.load %arg14[%c48_219, %c0_220] : memref<64x128xf32, #tpu.memory_space<vmem>>, vector<8x128xf32>
    tpu.vector_store %arg14[%c48_219, %c0_220], %447 {strides = array<i32>} : memref<64x128xf32, #tpu.memory_space<vmem>>, vector<8x128xf32>,
    %c56_221 = arith.constant 56 : index
    %c0_222 = arith.constant 0 : index
    %449 = vector.load %arg15[%c56_221, %c0_222] : memref<64x512xf32, #tpu.memory_space<vmem>>, vector<8x512xf32>
    %450 = arith.truncf %447 : vector<8x128xf32> to vector<8x128xbf16>
    %c0_223 = arith.constant 0 : index
    %c0_224 = arith.constant 0 : index
    %451 = vector.load %arg5[%c0_223, %c0_224] : memref<128x512xbf16, #tpu.memory_space<vmem>>, vector<128x512xbf16>
    %cst_225 = arith.constant dense<0.000000e+00> : vector<8x512xf32>
    %452 = tpu.matmul %450, %451, %cst_225 {dimension_numbers = #tpu.dot_dimension_numbers<[1], [0], [0], [1], [0, 0, 1, 1], [], []>} : vector<8x128xbf16>, vector<128x512xbf16>, vector<8x512xf32> -> vector<8x512xf32>
    %453 = arith.addf %449, %452 : vector<8x512xf32>
    %454 = math.tanh %453 : vector<8x512xf32>
    %455 = vector.extract_strided_slice %454 {offsets = [0, 0], sizes = [8, 128], strides = [1, 1]} : vector<8x512xf32> to vector<8x128xf32>
    %cst_226 = arith.constant 5.000000e-01 : f32
    %456 = vector.broadcast %cst_226 : f32 to vector<8x128xf32>
    %457 = arith.mulf %456, %455 : vector<8x128xf32>
    %cst_227 = arith.constant 5.000000e-01 : f32
    %458 = vector.broadcast %cst_227 : f32 to vector<8x128xf32>
    %459 = arith.addf %457, %458 : vector<8x128xf32>
    %460 = vector.extract_strided_slice %454 {offsets = [0, 128], sizes = [8, 128], strides = [1, 1]} : vector<8x512xf32> to vector<8x128xf32>
    %cst_228 = arith.constant 5.000000e-01 : f32
    %461 = vector.broadcast %cst_228 : f32 to vector<8x128xf32>
    %462 = arith.mulf %461, %460 : vector<8x128xf32>
    %cst_229 = arith.constant 5.000000e-01 : f32
    %463 = vector.broadcast %cst_229 : f32 to vector<8x128xf32>
    %464 = arith.addf %462, %463 : vector<8x128xf32>
    %465 = vector.extract_strided_slice %454 {offsets = [0, 256], sizes = [8, 128], strides = [1, 1]} : vector<8x512xf32> to vector<8x128xf32>
    %466 = vector.extract_strided_slice %454 {offsets = [0, 384], sizes = [8, 128], strides = [1, 1]} : vector<8x512xf32> to vector<8x128xf32>
    %cst_230 = arith.constant 5.000000e-01 : f32
    %467 = vector.broadcast %cst_230 : f32 to vector<8x128xf32>
    %468 = arith.mulf %467, %466 : vector<8x128xf32>
    %cst_231 = arith.constant 5.000000e-01 : f32
    %469 = vector.broadcast %cst_231 : f32 to vector<8x128xf32>
    %470 = arith.addf %468, %469 : vector<8x128xf32>
    %471 = arith.mulf %464, %445 : vector<8x128xf32>
    %472 = arith.mulf %459, %465 : vector<8x128xf32>
    %473 = arith.addf %471, %472 : vector<8x128xf32>
    %474 = math.tanh %473 : vector<8x128xf32>
    %475 = arith.mulf %470, %474 : vector<8x128xf32>
    %c56_232 = arith.constant 56 : index
    %c0_233 = arith.constant 0 : index
    %476 = vector.load %arg14[%c56_232, %c0_233] : memref<64x128xf32, #tpu.memory_space<vmem>>, vector<8x128xf32>
    tpu.vector_store %arg14[%c56_232, %c0_233], %475 {strides = array<i32>} : memref<64x128xf32, #tpu.memory_space<vmem>>, vector<8x128xf32>,
    %c1_234 = arith.constant 1 : index
    %c0_235 = arith.constant 0 : index
    %c0_236 = arith.constant 0 : index
    %477 = vector.load %arg12[%c1_234, %c0_235, %c0_236] : memref<2x8x128xf32, #tpu.memory_space<vmem>>, vector<1x8x128xf32>
    %478 = vector.shape_cast %477 : vector<1x8x128xf32> to vector<8x128xf32>
    %479 = vector.shape_cast %475 : vector<8x128xf32> to vector<1x8x128xf32>
    tpu.vector_store %arg12[%c1_234, %c0_235, %c0_236], %479 {strides = array<i32>} : memref<2x8x128xf32, #tpu.memory_space<vmem>>, vector<1x8x128xf32>,
    %c1_237 = arith.constant 1 : index
    %c0_238 = arith.constant 0 : index
    %c0_239 = arith.constant 0 : index
    %480 = vector.load %arg13[%c1_237, %c0_238, %c0_239] : memref<2x8x128xf32, #tpu.memory_space<vmem>>, vector<1x8x128xf32>
    %481 = vector.shape_cast %480 : vector<1x8x128xf32> to vector<8x128xf32>
    %482 = vector.shape_cast %473 : vector<8x128xf32> to vector<1x8x128xf32>
    tpu.vector_store %arg13[%c1_237, %c0_238, %c0_239], %482 {strides = array<i32>} : memref<2x8x128xf32, #tpu.memory_space<vmem>>, vector<1x8x128xf32>,
    %c0_240 = arith.constant 0 : index
    %c0_241 = arith.constant 0 : index
    %483 = vector.load %arg14[%c0_240, %c0_241] : memref<64x128xf32, #tpu.memory_space<vmem>>, vector<64x128xf32>
    %484 = arith.truncf %483 : vector<64x128xf32> to vector<64x128xbf16>
    %c0_242 = arith.constant 0 : index
    %c0_243 = arith.constant 0 : index
    %485 = vector.load %arg9[%c0_242, %c0_243] : memref<128x128xbf16, #tpu.memory_space<vmem>>, vector<128x128xbf16>
    %cst_244 = arith.constant dense<0.000000e+00> : vector<64x128xf32>
    %486 = tpu.matmul %484, %485, %cst_244 {dimension_numbers = #tpu.dot_dimension_numbers<[1], [0], [0], [1], [0, 0, 1, 1], [], []>} : vector<64x128xbf16>, vector<128x128xbf16>, vector<64x128xf32> -> vector<64x128xf32>
    %c0_245 = arith.constant 0 : index
    %c0_246 = arith.constant 0 : index
    %487 = vector.load %arg10[%c0_245, %c0_246] : memref<1x128xf32, #tpu.memory_space<vmem>>, vector<1x128xf32>
    %488 = vector.broadcast %487 : vector<1x128xf32> to vector<64x128xf32>
    %489 = arith.addf %486, %488 : vector<64x128xf32>
    %c0_247 = arith.constant 0 : index
    %c0_248 = arith.constant 0 : index
    %490 = vector.load %arg11[%c0_247, %c0_248] : memref<64x128xf32, #tpu.memory_space<vmem>>, vector<64x128xf32>
    tpu.vector_store %arg11[%c0_247, %c0_248], %489 {strides = array<i32>} : memref<64x128xf32, #tpu.memory_space<vmem>>, vector<64x128xf32>,
    return
  }
}

</mosaic_0001>

<bundles_post_ra>
// kernel: char_rnn_forward.1
= control target key start
LH: loop header
LB: loop body
LE: loop exit
PB: predicated region body
PF: predicated region fallthrough
CT: control target
= control target key end

     0   :  { %19 = vsyncpa [#allocation5], 0  ;;  %s8448_s0 = inlined_call_operand.vmem [shape: bf16[64,128], index: 0, kind: input, shape index: {}]   ;;  %s8449_s1 = inlined_call_operand.hbm [shape: bf16[128,512], index: 1, kind: input, shape index: {}]   ;;  %s8450_s2 = inlined_call_operand.hbm [shape: bf16[128,512], index: 2, kind: input, shape index: {}]   ;;  %s8451_s3 = inlined_call_operand.vmem [shape: f32[1,512], index: 3, kind: input, shape index: {}]   ;;  %s8452_s4 = inlined_call_operand.hbm [shape: bf16[128,512], index: 4, kind: input, shape index: {}]   ;;  %s8453_s5 = inlined_call_operand.hbm [shape: bf16[128,512], index: 5, kind: input, shape index: {}]   ;;  %s8454_s6 = inlined_call_operand.vmem [shape: f32[1,512], index: 6, kind: input, shape index: {}]   ;;  %s8455_s7 = inlined_call_operand.vmem [shape: f32[2,8,128], index: 7, kind: input, shape index: {}]   ;;  %s8456_s8 = inlined_call_operand.vmem [shape: f32[2,8,128], index: 8, kind: input, shape index: {}]   ;;  %s8457_s9 = inlined_call_operand.vmem [shape: bf16[128,128], index: 9, kind: input, shape index: {}]   ;;  %s8458_s10 = inlined_call_operand.vmem [shape: f32[1,128], index: 10, kind: input, shape index: {}]   ;;  %s8459_s11 = inlined_call_operand.vmem [shape: f32[64,128], index: 11, kind: output, shape index: {0}]   ;;  %s8460_s12 = inlined_call_operand.vmem [shape: f32[2,8,128], index: 12, kind: output, shape index: {1}]   ;;  %s8461_s13 = inlined_call_operand.vmem [shape: f32[2,8,128], index: 13, kind: output, shape index: {2}]  }
   0x1   :  { %20 = vsyncpa [#allocation7], 0 }
   0x2   :  { %21 = vsyncpa [#allocation10], 0  ;;  %s7074_s25 = smov [#allocation6]   ;;  %s7075_s27 = smov [#allocation4]  }
   0x3   :  { %s41_s26 = sshll.u32 %s7074_s25, 4  ;;  %s29_s28 = sshll.u32 %s7075_s27, 4  ;;  %s42_s26 = int_to_ptr.vmem [resolvable:$true] %s41_s26  ;;  %s30_s28 = int_to_ptr.vmem [resolvable:$true] %s29_s28 }
   0x4   :  { %s6996_s29 = scalar_lea.vmem %s42_s26, 4096  ;;  %p7001_p1 = scmp.lt.s32.totalorder %s42_s26, %s42_s26 }
   0x5   :  { %p6997_p0 = scmp.ne.s32.totalorder %s42_s26, %s6996_s29  ;;  %p7002_p2 = scmp.lt.s32.totalorder %s6996_s29, %s6996_s29 }
   0x7   :  { %p7003_p3 = por %p7002_p2, %p7001_p1 }
   0x9   :  { %p7004_p4 = pnand %p7003_p3, %p6997_p0 }
   0xb   :  { %7007 = shalt.err (!%p7004_p4)
}
   0xc   :  { %s7076_s30 = smov 256   ;;  %s7077_s14 = smov 16  }
   0xd   :  { %47 = dma.hbm_to_vmem [thread:$0]  %s8450_s2, 4096, %s42_s26, [#allocation7], %s7076_s30, %s7076_s30, %s7077_s14  }
   0xe   :  { %s7016_s17 = scalar_lea.vmem %s30_s28, 4096  ;;  %p7021_p6 = scmp.lt.s32.totalorder %s30_s28, %s30_s28 }
   0xf   :  { %p7017_p5 = scmp.ne.s32.totalorder %s30_s28, %s7016_s17  ;;  %p7022_p7 = scmp.lt.s32.totalorder %s7016_s17, %s7016_s17 }
  0x11   :  { %p7023_p8 = por %p7022_p7, %p7021_p6 }
  0x13   :  { %p7024_p9 = pnand %p7023_p8, %p7017_p5 }
  0x15   :  { %7027 = shalt.err (!%p7024_p9)
}
  0x16   :  { %35 = dma.hbm_to_vmem [thread:$0]  %s8449_s1, 4096, %s30_s28, [#allocation5], %s7076_s30, %s7076_s30, %s7077_s14  }
  0x17   :  { %s7078_s20 = smov [#allocation8]   ;;  %s7079_s22 = smov [#allocation9]  }
  0x18   :  { %s55_s21 = sshll.u32 %s7078_s20, 4  ;;  %s67_s23 = sshll.u32 %s7079_s22, 4  ;;  %s56_s21 = int_to_ptr.vmem [resolvable:$true] %s55_s21  ;;  %s68_s23 = int_to_ptr.vmem [resolvable:$true] %s67_s23 }
  0x19   :  { %s7036_s2 = scalar_lea.vmem %s56_s21, 4096  ;;  %p7041_p11 = scmp.lt.s32.totalorder %s56_s21, %s56_s21 }
  0x1a   :  { %p7037_p10 = scmp.ne.s32.totalorder %s56_s21, %s7036_s2  ;;  %p7042_p12 = scmp.lt.s32.totalorder %s7036_s2, %s7036_s2 }
  0x1c   :  { %p7043_p13 = por %p7042_p12, %p7041_p11 }
  0x1e   :  { %p7044_p0 = pnand %p7043_p13, %p7037_p10 }
  0x20   :  { %7047 = shalt.err (!%p7044_p0)
}
  0x21   :  { %61 = dma.hbm_to_vmem [thread:$0]  %s8452_s4, 4096, %s56_s21, [#allocation7], %s7076_s30, %s7076_s30, %s7077_s14  }
  0x22   :  { %s7056_s1 = scalar_lea.vmem %s68_s23, 4096  ;;  %p7061_p2 = scmp.lt.s32.totalorder %s68_s23, %s68_s23 }
  0x23   :  { %p7057_p1 = scmp.ne.s32.totalorder %s68_s23, %s7056_s1  ;;  %p7062_p3 = scmp.lt.s32.totalorder %s7056_s1, %s7056_s1 }
  0x25   :  { %p7063_p4 = por %p7062_p3, %p7061_p2 }
  0x27   :  { %p7064_p5 = pnand %p7063_p4, %p7057_p1 }
  0x29   :  { %7067 = shalt.err (!%p7064_p5)
}
  0x2a   :  { %73 = dma.hbm_to_vmem [thread:$0]  %s8453_s5, 4096, %s68_s23, [#allocation10], %s7076_s30, %s7076_s30, %s7077_s14  }
  0x2b   :  { %7068 = dma.done.wait [#allocation5], 4096  }
  0x2c   :  { %7069 = vsyncadd [#allocation5], 4294963200 }
  0x2d   :  { %7070 = dma.done.wait [#allocation7], 8192  }
  0x2e   :  { %7071 = vsyncadd [#allocation7], 4294959104 }
  0x2f   :  { %7072 = dma.done.wait [#allocation10], 4096  }
  0x30   :  { %7073 = vsyncadd [#allocation10], 4294963200  ;;  %v8464_v0 = vmov 0   ;;  %v6528_v1 = vld [vmem:[#allocation4 + $0xe4] ss:$16 sps:$4 sm:$0xff]   ;;  %v6583_v41 = vld [vmem:[%s8448_s0 + $0x8] sm:$0xff]  }
  0x31   :  { %375 = vmatprep.mubr.bf16.mxu1 %v8464_v0  ;;  %752 = vmatprep.mubr.bf16.mxu0 %v8464_v0  ;;  %v6530_v2 = vld [vmem:[#allocation4 + $0xe0] ss:$16 sps:$4 sm:$0xff]   ;;  %v7177_v3 = vld [vmem:[#allocation6 + $0xe4] ss:$16 sps:$4 sm:$0xff]   ;;  %v6579_v33 = vld [vmem:[#allocation4 + $0xec] ss:$16 sps:$4 sm:$0xff]  }
  0x32   :  { %343 = vmatprep.subr.bf16.mxu1 %v6528_v1  ;;  %v7179_v4 = vld [vmem:[#allocation6 + $0xe0] ss:$16 sps:$4 sm:$0xff]   ;;  %v6534_v5 = vld [vmem:[#allocation4 + $0xc4] ss:$16 sps:$4 sm:$0xff]   ;;  %720 = vmatprep.subr.bf16.mxu0 %v7177_v3  ;;  %v6577_v36 = vld [vmem:[#allocation4 + $0xe8] ss:$16 sps:$4 sm:$0xff]  }
  0x33   :  { %344 = vmatpush1.bf16.msra.mxu1 %v6530_v2  ;;  %v6536_v6 = vld [vmem:[#allocation4 + $0xc0] ss:$16 sps:$4 sm:$0xff]   ;;  %v7182_v7 = vld [vmem:[#allocation6 + $0xc4] ss:$16 sps:$4 sm:$0xff]   ;;  %721 = vmatpush1.bf16.msra.mxu0 %v7179_v4  ;;  %v6582_v38 = vld [vmem:[#allocation4 + $0xcc] ss:$16 sps:$4 sm:$0xff]  }
  0x34   :  { %345 = vmatprep.subr.bf16.mxu1 %v6534_v5  ;;  %v7185_v8 = vld [vmem:[#allocation6 + $0xc0] ss:$16 sps:$4 sm:$0xff]   ;;  %722 = vmatprep.subr.bf16.mxu0 %v7182_v7  ;;  %v6540_v9 = vld [vmem:[#allocation4 + $0xa4] ss:$16 sps:$4 sm:$0xff]   ;;  %v6580_v39 = vld [vmem:[#allocation4 + $0xc8] ss:$16 sps:$4 sm:$0xff]  }
  0x35   :  { %v6542_v10 = vld [vmem:[#allocation4 + $0xa0] ss:$16 sps:$4 sm:$0xff]   ;;  %v7188_v11 = vld [vmem:[#allocation6 + $0xa4] ss:$16 sps:$4 sm:$0xff]   ;;  %v6586_v40 = vld [vmem:[#allocation4 + $0xac] ss:$16 sps:$4 sm:$0xff]  }
  0x36   :  { %v6546_v12 = vld [vmem:[#allocation4 + $0x84] ss:$16 sps:$4 sm:$0xff]   ;;  %v7191_v13 = vld [vmem:[#allocation6 + $0xa0] ss:$16 sps:$4 sm:$0xff]   ;;  %v6584_v42 = vld [vmem:[#allocation4 + $0xa8] ss:$16 sps:$4 sm:$0xff]  }
  0x37   :  { %346 = vmatpush1.bf16.msra.mxu1 %v6536_v6  ;;  %723 = vmatpush1.bf16.msra.mxu0 %v7185_v8  ;;  %v7194_v14 = vld [vmem:[#allocation6 + $0x84] ss:$16 sps:$4 sm:$0xff]   ;;  %v6548_v15 = vld [vmem:[#allocation4 + $0x80] ss:$16 sps:$4 sm:$0xff]   ;;  %v6589_v43 = vld [vmem:[#allocation4 + $0x8c] ss:$16 sps:$4 sm:$0xff]  }
  0x38   :  { %347 = vmatprep.subr.bf16.mxu1 %v6540_v9  ;;  %724 = vmatprep.subr.bf16.mxu0 %v7188_v11  ;;  %v6552_v16 = vld [vmem:[#allocation4 + $0x64] ss:$16 sps:$4 sm:$0xff]   ;;  %v7197_v17 = vld [vmem:[#allocation6 + $0x80] ss:$16 sps:$4 sm:$0xff]   ;;  %v6587_v44 = vld [vmem:[#allocation4 + $0x88] ss:$16 sps:$4 sm:$0xff]  }
  0x39   :  { %v7200_v18 = vld [vmem:[#allocation6 + $0x64] ss:$16 sps:$4 sm:$0xff]   ;;  %v6554_v19 = vld [vmem:[#allocation4 + $0x60] ss:$16 sps:$4 sm:$0xff]   ;;  %v6593_v45 = vld [vmem:[#allocation4 + $0x6c] ss:$16 sps:$4 sm:$0xff]  }
  0x3a   :  { %v6558_v20 = vld [vmem:[#allocation4 + $0x44] ss:$16 sps:$4 sm:$0xff]   ;;  %v7203_v21 = vld [vmem:[#allocation6 + $0x60] ss:$16 sps:$4 sm:$0xff]   ;;  %v6591_v47 = vld [vmem:[#allocation4 + $0x68] ss:$16 sps:$4 sm:$0xff]  }
  0x3b   :  { %348 = vmatpush1.bf16.msra.mxu1 %v6542_v10  ;;  %725 = vmatpush1.bf16.msra.mxu0 %v7191_v13  ;;  %v7206_v22 = vld [vmem:[#allocation6 + $0x44] ss:$16 sps:$4 sm:$0xff]   ;;  %v6560_v23 = vld [vmem:[#allocation4 + $0x40] ss:$16 sps:$4 sm:$0xff]   ;;  %v6596_v48 = vld [vmem:[#allocation4 + $0x4c] ss:$16 sps:$4 sm:$0xff]  }
  0x3c   :  { %349 = vmatprep.subr.bf16.mxu1 %v6546_v12  ;;  %726 = vmatprep.subr.bf16.mxu0 %v7194_v14  ;;  %v6564_v24 = vld [vmem:[#allocation4 + $0x24] ss:$16 sps:$4 sm:$0xff]   ;;  %v7209_v25 = vld [vmem:[#allocation6 + $0x40] ss:$16 sps:$4 sm:$0xff]   ;;  %v6594_v49 = vld [vmem:[#allocation4 + $0x48] ss:$16 sps:$4 sm:$0xff]   ;;  %v139_v12 = vlaneseq }
  0x3d   :  { %v7212_v26 = vld [vmem:[#allocation6 + $0x24] ss:$16 sps:$4 sm:$0xff]   ;;  %v6566_v27 = vld [vmem:[#allocation4 + $0x20] ss:$16 sps:$4 sm:$0xff]   ;;  %v6600_v50 = vld [vmem:[#allocation4 + $0x2c] ss:$16 sps:$4 sm:$0xff]  }
  0x3e   :  { %v6570_v28 = vld [vmem:[#allocation4 + $0x4] ss:$16 sps:$4 sm:$0xff]   ;;  %v7215_v29 = vld [vmem:[#allocation6 + $0x20] ss:$16 sps:$4 sm:$0xff]   ;;  %v6597_v51 = vld [vmem:[%s8448_s0 + $0x18] sm:$0xff]  }
  0x3f   :  { %350 = vmatpush1.bf16.msra.mxu1 %v6548_v15  ;;  %727 = vmatpush1.bf16.msra.mxu0 %v7197_v17  ;;  %v7218_v30 = vld [vmem:[#allocation6 + $0x4] ss:$16 sps:$4 sm:$0xff]   ;;  %v6572_v31 = vld [vmem:[#allocation4] ss:$16 sps:$4 sm:$0xff]   ;;  %v6598_v52 = vld [vmem:[#allocation4 + $0x28] ss:$16 sps:$4 sm:$0xff]  }
  0x40   :  { %351 = vmatprep.subr.bf16.mxu1 %v6552_v16  ;;  %728 = vmatprep.subr.bf16.mxu0 %v7200_v18  ;;  %v7220_v32 = vld [vmem:[#allocation6] ss:$16 sps:$4 sm:$0xff]   ;;  %v6603_v53 = vld [vmem:[#allocation4 + $0xc] ss:$16 sps:$4 sm:$0xff]   ;;  %v6601_v54 = vld [vmem:[#allocation4 + $0x8] ss:$16 sps:$4 sm:$0xff]  }
  0x41   :  { %v521_v34 = vld [vmem:[%s8455_s7] sm:$0xff]  ;;  %v6590_v46 = vld [vmem:[%s8448_s0 + $0x10] sm:$0xff]   ;;  %v7262_v55 = vld [vmem:[#allocation6 + $0xec] ss:$16 sps:$4 sm:$0xff]   ;;  %v7340_v15 = vshrl.u32 %v139_v12, 7 }
  0x42   :  { %v7230_v35 = vld [vmem:[%s8448_s0] sm:$0xff]   ;;  %v7232_v37 = vpack.c.bf16 %v521_v34, %v521_v34  ;;  %v7266_v56 = vld [vmem:[#allocation6 + $0xe8] ss:$16 sps:$4 sm:$0xff]   ;;  %v7269_v57 = vld [vmem:[#allocation6 + $0xcc] ss:$16 sps:$4 sm:$0xff]  }
  0x43   :  { %352 = vmatpush1.bf16.msra.mxu1 %v6554_v19  ;;  %729 = vmatpush1.bf16.msra.mxu0 %v7203_v21  ;;  %v7273_v58 = vld [vmem:[#allocation6 + $0xc8] ss:$16 sps:$4 sm:$0xff]   ;;  %v7277_v59 = vld [vmem:[#allocation6 + $0xac] ss:$16 sps:$4 sm:$0xff]   ;;  %8470 = vst [vmem:[#allocation14_spill] sm:$0xff] %v7340_v15  ;;  %v8463_v16 = vsub.s32 0, %v7340_v15 }
  0x44   :  { %353 = vmatprep.subr.bf16.mxu1 %v6558_v20  ;;  %730 = vmatprep.subr.bf16.mxu0 %v7206_v22  ;;  %v7283_v60 = vld [vmem:[#allocation6 + $0xa8] ss:$16 sps:$4 sm:$0xff]   ;;  %v7285_v61 = vld [vmem:[#allocation6 + $0x8c] ss:$16 sps:$4 sm:$0xff]   ;;  %v137_v19 = vld [vmem:[%s8451_s3] sm:$0xf] }
  0x45   :  { %v7289_v62 = vld [vmem:[#allocation6 + $0x88] ss:$16 sps:$4 sm:$0xff]   ;;  %v7291_v63 = vld [vmem:[#allocation6 + $0x6c] ss:$16 sps:$4 sm:$0xff]  }
  0x46   :  { %v7296_v1 = vld [vmem:[#allocation6 + $0x68] ss:$16 sps:$4 sm:$0xff]   ;;  %v7298_v2 = vld [vmem:[#allocation6 + $0x4c] ss:$16 sps:$4 sm:$0xff]  }
  0x47   :  { %354 = vmatpush1.bf16.msra.mxu1 %v6560_v23  ;;  %731 = vmatpush1.bf16.msra.mxu0 %v7209_v25  ;;  %v7304_v5 = vld [vmem:[#allocation6 + $0x2c] ss:$16 sps:$4 sm:$0xff]   ;;  %v7309_v6 = vld [vmem:[#allocation6 + $0x28] ss:$16 sps:$4 sm:$0xff]   ;;  %v8462_v23 = vsub.s32 1, %v7340_v15 }
  0x48   :  { %355 = vmatprep.subr.bf16.mxu1 %v6564_v24  ;;  %732 = vmatprep.subr.bf16.mxu0 %v7212_v26  ;;  %v7311_v9 = vld [vmem:[#allocation6 + $0xc] ss:$16 sps:$4 sm:$0xff]   ;;  %v7315_v10 = vld [vmem:[#allocation6 + $0x8] ss:$16 sps:$4 sm:$0xff]  }
  0x49   :  { %v146_v34 = vrot.slane %v137_v19, %v8462_v23 }
  0x4b   :  { %356 = vmatpush1.bf16.msra.mxu1 %v6566_v27  ;;  %733 = vmatpush1.bf16.msra.mxu0 %v7215_v29 }
  0x4c   :  { %357 = vmatprep.subr.bf16.mxu1 %v6570_v28  ;;  %734 = vmatprep.subr.bf16.mxu0 %v7218_v30  ;;  %v142_v28 = vrot.slane %v137_v19, %v8463_v16 }
  0x4f   :  { %358 = vmatpush1.bf16.msra.mxu1 %v6572_v31  ;;  %735 = vmatpush1.bf16.msra.mxu0 %v7220_v32 }
  0x50   :  { %416 = vmatprep.subr.bf16.mxu1 %v6579_v33  ;;  %1019 = vmatprep.subr.bf16.mxu0 %v7177_v3 }
  0x52   :  { %376 = vmatmul.mubr.bf16.vlgmr.msra.gmra.mxu1 %v7230_v35  ;;  %753 = vmatmul.mubr.bf16.vlgmr.msra.gmra.mxu0 %v7232_v37 }
  0x53   :  { %417 = vmatpush1.bf16.msra.mxu1 %v6577_v36  ;;  %385 = vmatprep.mubr.bf16.mxu1 %v8464_v0 }
  0x54   :  { %418 = vmatprep.subr.bf16.mxu1 %v6582_v38  ;;  %1020 = vmatpush1.bf16.msra.mxu0 %v7179_v4 }
  0x55   :  { %1051 = vmatprep.mubr.bf16.mxu0 %v8464_v0  ;;  %1021 = vmatprep.subr.bf16.mxu0 %v7182_v7 }
  0x57   :  { %419 = vmatpush1.bf16.msra.mxu1 %v6580_v39 }
  0x58   :  { %420 = vmatprep.subr.bf16.mxu1 %v6586_v40  ;;  %1022 = vmatpush1.bf16.msra.mxu0 %v7185_v8 }
  0x59   :  { %1023 = vmatprep.subr.bf16.mxu0 %v7188_v11 }
  0x5a   :  { %386 = vmatmul.mubr.bf16.gmra.mxu1 %v6583_v41 }
  0x5b   :  { %421 = vmatpush1.bf16.msra.mxu1 %v6584_v42  ;;  %395 = vmatprep.mubr.bf16.mxu1 %v8464_v0 }
  0x5c   :  { %422 = vmatprep.subr.bf16.mxu1 %v6589_v43  ;;  %1024 = vmatpush1.bf16.msra.mxu0 %v7191_v13 }
  0x5d   :  { %1025 = vmatprep.subr.bf16.mxu0 %v7194_v14 }
  0x5f   :  { %423 = vmatpush1.bf16.msra.mxu1 %v6587_v44 }
  0x60   :  { %424 = vmatprep.subr.bf16.mxu1 %v6593_v45  ;;  %1026 = vmatpush1.bf16.msra.mxu0 %v7197_v17 }
  0x61   :  { %1027 = vmatprep.subr.bf16.mxu0 %v7200_v18 }
  0x62   :  { %396 = vmatmul.mubr.bf16.gmra.mxu1 %v6590_v46 }
  0x63   :  { %425 = vmatpush1.bf16.msra.mxu1 %v6591_v47  ;;  %405 = vmatprep.mubr.bf16.mxu1 %v8464_v0 }
  0x64   :  { %426 = vmatprep.subr.bf16.mxu1 %v6596_v48  ;;  %1028 = vmatpush1.bf16.msra.mxu0 %v7203_v21 }
  0x65   :  { %1029 = vmatprep.subr.bf16.mxu0 %v7206_v22 }
  0x67   :  { %427 = vmatpush1.bf16.msra.mxu1 %v6594_v49 }
  0x68   :  { %428 = vmatprep.subr.bf16.mxu1 %v6600_v50  ;;  %1030 = vmatpush1.bf16.msra.mxu0 %v7209_v25 }
  0x69   :  { %1031 = vmatprep.subr.bf16.mxu0 %v7212_v26 }
  0x6a   :  { %406 = vmatmul.mubr.bf16.gmra.mxu1 %v6597_v51 }
  0x6b   :  { %429 = vmatpush1.bf16.msra.mxu1 %v6598_v52  ;;  %448 = vmatprep.mubr.bf16.mxu1 %v8464_v0 }
  0x6c   :  { %430 = vmatprep.subr.bf16.mxu1 %v6603_v53  ;;  %1032 = vmatpush1.bf16.msra.mxu0 %v7215_v29 }
  0x6d   :  { %1033 = vmatprep.subr.bf16.mxu0 %v7218_v30 }
  0x6f   :  { %431 = vmatpush1.bf16.msra.mxu1 %v6601_v54 }
  0x70   :  { %761 = vmatprep.subr.bf16.mxu1 %v7262_v55  ;;  %1034 = vmatpush1.bf16.msra.mxu0 %v7220_v32 }
  0x71   :  { %1318 = vmatprep.subr.bf16.mxu0 %v7177_v3  ;;  %v7302_v3 = vld [vmem:[#allocation6 + $0x48] ss:$16 sps:$4 sm:$0xff]  }
  0x72   :  { %449 = vmatmul.mubr.bf16.vlgmr.msra.gmra.mxu1 %v7230_v35 }
  0x73   :  { %762 = vmatpush1.bf16.msra.mxu1 %v7266_v56  ;;  %458 = vmatprep.mubr.bf16.mxu1 %v8464_v0 }
  0x74   :  { %763 = vmatprep.subr.bf16.mxu1 %v7269_v57 }
  0x77   :  { %764 = vmatpush1.bf16.msra.mxu1 %v7273_v58 }
  0x78   :  { %765 = vmatprep.subr.bf16.mxu1 %v7277_v59 }
  0x7a   :  { %459 = vmatmul.mubr.bf16.gmra.mxu1 %v6583_v41 }
  0x7b   :  { %766 = vmatpush1.bf16.msra.mxu1 %v7283_v60  ;;  %468 = vmatprep.mubr.bf16.mxu1 %v8464_v0 }
  0x7c   :  { %767 = vmatprep.subr.bf16.mxu1 %v7285_v61 }
  0x7f   :  { %768 = vmatpush1.bf16.msra.mxu1 %v7289_v62 }
  0x80   :  { %769 = vmatprep.subr.bf16.mxu1 %v7291_v63 }
  0x82   :  { %469 = vmatmul.mubr.bf16.gmra.mxu1 %v6590_v46 }
  0x83   :  { %770 = vmatpush1.bf16.msra.mxu1 %v7296_v1  ;;  %478 = vmatprep.mubr.bf16.mxu1 %v8464_v0 }
  0x84   :  { %771 = vmatprep.subr.bf16.mxu1 %v7298_v2 }
  0x87   :  { %772 = vmatpush1.bf16.msra.mxu1 %v7302_v3 }
  0x88   :  { %773 = vmatprep.subr.bf16.mxu1 %v7304_v5 }
  0x8a   :  { %479 = vmatmul.mubr.bf16.gmra.mxu1 %v6597_v51 }
  0x8b   :  { %774 = vmatpush1.bf16.msra.mxu1 %v7309_v6  ;;  %793 = vmatprep.mubr.bf16.mxu1 %v8464_v0 }
  0x8c   :  { %775 = vmatprep.subr.bf16.mxu1 %v7311_v9 }
  0x8f   :  { %776 = vmatpush1.bf16.msra.mxu1 %v7315_v10 }
  0x90   :  { %1060 = vmatprep.subr.bf16.mxu1 %v7262_v55 }
  0x92   :  { %794 = vmatmul.mubr.bf16.vlgmr.msra.gmra.mxu1 %v7232_v37 }
  0x93   :  { %1061 = vmatpush1.bf16.msra.mxu1 %v7266_v56  ;;  %1092 = vmatprep.mubr.bf16.mxu1 %v8464_v0 }
  0x94   :  { %1062 = vmatprep.subr.bf16.mxu1 %v7269_v57 }
  0x97   :  { %1063 = vmatpush1.bf16.msra.mxu1 %v7273_v58 }
  0x98   :  { %1064 = vmatprep.subr.bf16.mxu1 %v7277_v59 }
  0x9b   :  { %1065 = vmatpush1.bf16.msra.mxu1 %v7283_v60 }
  0x9c   :  { %1066 = vmatprep.subr.bf16.mxu1 %v7285_v61 }
  0x9f   :  { %1067 = vmatpush1.bf16.msra.mxu1 %v7289_v62 }
  0xa0   :  { %1068 = vmatprep.subr.bf16.mxu1 %v7291_v63 }
  0xa3   :  { %1069 = vmatpush1.bf16.msra.mxu1 %v7296_v1 }
  0xa4   :  { %1070 = vmatprep.subr.bf16.mxu1 %v7298_v2 }
  0xa7   :  { %1071 = vmatpush1.bf16.msra.mxu1 %v7302_v3 }
  0xa8   :  { %1072 = vmatprep.subr.bf16.mxu1 %v7304_v5 }
  0xab   :  { %1073 = vmatpush1.bf16.msra.mxu1 %v7309_v6 }
  0xac   :  { %1074 = vmatprep.subr.bf16.mxu1 %v7311_v9 }
  0xaf   :  { %1075 = vmatpush1.bf16.msra.mxu1 %v7315_v10 }
  0xb0   :  { %1359 = vmatprep.subr.bf16.mxu1 %v7262_v55 }
 0x112   :  { %v377_v20 = vpop.f32.mrf.mxu1  ;;  %v754_v27 = vpop.f32.mrf.mxu0 }
 0x114   :  { %v379_v24 = vpop.f32.mrf.mxu1  ;;  %v756_v33 = vpop.f32.mrf.mxu0 }
 0x116   :  { %v381_v31 = vpop.f32.mrf.mxu1  ;;  %v758_v37 = vpop.f32.mrf.mxu0 }
 0x117   :  { %v7351_v35 = vadd.f32 %v381_v31, %v142_v28 }
 0x118   :  { %v383_v36 = vpop.f32.mrf.mxu1  ;;  %v759_v40 = vpop.f32.mrf.mxu0 }
 0x119   :  { %v7353_v38 = vadd.f32 %v383_v36, %v146_v34 }
 0x11a   :  { %v387_v39 = vpop.f32.mrf.mxu1 }
 0x11b   :  { %v7355_v41 = vadd.f32 %v387_v39, %v142_v28 }
 0x11c   :  { %v389_v42 = vpop.f32.mrf.mxu1 }
 0x11d   :  { %v7357_v43 = vadd.f32 %v389_v42, %v146_v34 }
 0x11e   :  { %v391_v44 = vpop.f32.mrf.mxu1 }
 0x11f   :  { %v7359_v45 = vadd.f32 %v391_v44, %v142_v28 }
 0x120   :  { %v393_v46 = vpop.f32.mrf.mxu1 }
 0x121   :  { %8471 = vst [vmem:[#allocation15_spill] sm:$0xff] %v7359_v45  ;;  %v7361_v47 = vadd.f32 %v393_v46, %v146_v34 }
 0x122   :  { %v397_v48 = vpop.f32.mrf.mxu1 }
 0x123   :  { %8472 = vst [vmem:[#allocation16_spill] sm:$0xff] %v7361_v47  ;;  %v7363_v49 = vadd.f32 %v397_v48, %v142_v28  ;;  %v8466_v48 = vsub.s32 2, %v7340_v15 }
 0x124   :  { %v399_v50 = vpop.f32.mrf.mxu1 }
 0x125   :  { %8473 = vst [vmem:[#allocation17_spill] sm:$0xff] %v7363_v49  ;;  %v7365_v51 = vadd.f32 %v399_v50, %v146_v34 }
 0x126   :  { %v401_v52 = vpop.f32.mrf.mxu1 }
 0x127   :  { %8474 = vst [vmem:[#allocation18_spill] sm:$0xff] %v7365_v51  ;;  %v7367_v53 = vadd.f32 %v401_v52, %v142_v28  ;;  %v8469_v52 = vsub.s32 3, %v7340_v15  ;;  %v380_v15 = vadd.f32 %v379_v24, %v146_v34 }
 0x128   :  { %v403_v54 = vpop.f32.mrf.mxu1 }
 0x129   :  { %8475 = vst [vmem:[#allocation19_spill] sm:$0xff] %v7367_v53  ;;  %v7369_v12 = vadd.f32 %v403_v54, %v146_v34  ;;  %v150_v54 = vrot.slane %v137_v19, %v8466_v48 }
 0x12a   :  { %v407_v31 = vpop.f32.mrf.mxu1 }
 0x12b   :  { %8476 = vst [vmem:[#allocation20_spill] sm:$0xff] %v7369_v12  ;;  %v7371_v36 = vadd.f32 %v407_v31, %v142_v28 }
 0x12c   :  { %v409_v37 = vpop.f32.mrf.mxu1 }
 0x12d   :  { %8477 = vst [vmem:[#allocation21_spill] sm:$0xff] %v7371_v36  ;;  %v7373_v39 = vadd.f32 %v409_v37, %v146_v34  ;;  %v154_v37 = vrot.slane %v137_v19, %v8469_v52  ;;  %v378_v52 = vadd.f32 %v377_v20, %v142_v28 }
 0x12e   :  { %v411_v40 = vpop.f32.mrf.mxu1 }
 0x12f   :  { %8478 = vst [vmem:[#allocation22_spill] sm:$0xff] %v7373_v39  ;;  %v7375_v42 = vadd.f32 %v411_v40, %v142_v28  ;;  %v802_v45 = vadd.f32 %v754_v27, %v378_v52 }
 0x130   :  { %v413_v44 = vpop.f32.mrf.mxu1 }
 0x131   :  { %8479 = vst [vmem:[#allocation23_spill] sm:$0xff] %v7375_v42  ;;  %v7377_v46 = vadd.f32 %v413_v44, %v146_v34 }
 0x132   :  { %v450_v50 = vpop.f32.mrf.mxu1 }
 0x133   :  { %8480 = vst [vmem:[#allocation24_spill] sm:$0xff] %v7377_v46 }
 0x134   :  { %v452_v23 = vpop.f32.mrf.mxu1 }
 0x136   :  { %v454_v31 = vpop.f32.mrf.mxu1 }
 0x137   :  { %v7385_v16 = vadd.f32 %v454_v31, %v150_v54 }
 0x138   :  { %v456_v40 = vpop.f32.mrf.mxu1 }
 0x139   :  { %v7387_v0 = vadd.f32 %v456_v40, %v154_v37 }
 0x13a   :  { %v460_v44 = vpop.f32.mrf.mxu1 }
 0x13b   :  { %v7389_v46 = vadd.f32 %v460_v44, %v150_v54  ;;  %v803_v44 = vadd.f32 %v756_v33, %v380_v15 }
 0x13c   :  { %v462_v42 = vpop.f32.mrf.mxu1 }
 0x13d   :  { %v7391_v39 = vadd.f32 %v462_v42, %v154_v37  ;;  %6828 = vtanh.f32 %v803_v44 }
 0x13e   :  { %v464_v36 = vpop.f32.mrf.mxu1  ;;  %6830 = vtanh.f32 %v802_v45 }
 0x13f   :  { %8481 = vst [vmem:[#allocation25_spill] sm:$0xff] %v7391_v39  ;;  %v7393_v12 = vadd.f32 %v464_v36, %v150_v54 }
 0x140   :  { %v466_v53 = vpop.f32.mrf.mxu1 }
 0x141   :  { %v7395_v48 = vadd.f32 %v466_v53, %v154_v37 }
 0x142   :  { %v470_v51 = vpop.f32.mrf.mxu1 }
 0x143   :  { %8482 = vst [vmem:[#allocation26_spill] sm:$0xff] %v7395_v48  ;;  %v7397_v19 = vadd.f32 %v470_v51, %v150_v54  ;;  %v451_v51 = vadd.f32 %v450_v50, %v150_v54  ;;  %v522_v50 = vld [vmem:[%s8456_s8] sm:$0xff] }
 0x144   :  { %v472_v31 = vpop.f32.mrf.mxu1 }
 0x145   :  { %v7399_v40 = vadd.f32 %v472_v31, %v154_v37 }
 0x146   :  { %v474_v49 = vpop.f32.mrf.mxu1 }
 0x147   :  { %v7401_v47 = vadd.f32 %v474_v49, %v150_v54 }
 0x148   :  { %v476_v42 = vpop.f32.mrf.mxu1 }
 0x149   :  { %v7403_v39 = vadd.f32 %v476_v42, %v154_v37  ;;  %v453_v42 = vadd.f32 %v452_v23, %v154_v37 }
 0x14a   :  { %v480_v36 = vpop.f32.mrf.mxu1  ;;  %v6829_v31 = vpop.eup %6828 }
 0x14b   :  { %v7405_v53 = vadd.f32 %v480_v36, %v150_v54  ;;  %v6831_v36 = vpop.eup %6830 }
 0x14c   :  { %v482_v48 = vpop.f32.mrf.mxu1 }
 0x14d   :  { %8483 = vst [vmem:[#allocation27_spill] sm:$0xff] %v7405_v53  ;;  %v7407_v24 = vadd.f32 %v482_v48, %v154_v37  ;;  %v812_v53 = vmul.f32 0.5, %v6829_v31  ;;  %v810_v48 = vmul.f32 0.5, %v6831_v36 }
 0x14e   :  { %v484_v34 = vpop.f32.mrf.mxu1 }
 0x14f   :  { %8484 = vst [vmem:[#allocation28_spill] sm:$0xff] %v7407_v24  ;;  %v7409_v20 = vadd.f32 %v484_v34, %v150_v54  ;;  %v813_v24 = vadd.f32 0.5, %v812_v53  ;;  %v811_v54 = vadd.f32 0.5, %v810_v48 }
 0x150   :  { %v486_v28 = vpop.f32.mrf.mxu1 }
 0x151   :  { %v7411_v15 = vadd.f32 %v486_v28, %v154_v37  ;;  %v816_v28 = vmul.f32 %v813_v24, %v522_v50  ;;  %v8485_v24 = vmov 0  }
 0x152   :  { %v795_v33 = vpop.f32.mrf.mxu1 }
 0x153   :  { %v804_v49 = vadd.f32 %v795_v33, %v451_v51 }
 0x154   :  { %v797_v27 = vpop.f32.mrf.mxu1 }
 0x155   :  { %6832 = vtanh.f32 %v804_v49  ;;  %v805_v45 = vadd.f32 %v797_v27, %v453_v42 }
 0x156   :  { %v799_v52 = vpop.f32.mrf.mxu1 }
 0x157   :  { %6834 = vtanh.f32 %v805_v45 }
 0x158   :  { %v800_v44 = vpop.f32.mrf.mxu1 }
 0x162   :  { %v6833_v34 = vpop.eup %6832 }
 0x163   :  { %v817_v51 = vmul.f32 %v6833_v34, %v811_v54  ;;  %v7529_v34 = vld [vmem:[#allocation6] ss:$16 sps:$4 sm:$0xff]  }
 0x164   :  { %v6835_v49 = vpop.eup %6834 }
 0x165   :  { %v7416_v33 = vadd.f32 %v817_v51, %v816_v28  ;;  %v814_v23 = vmul.f32 0.5, %v6835_v49 }
 0x167   :  { %6836 = vtanh.f32 %v7416_v33  ;;  %v815_v37 = vadd.f32 0.5, %v814_v23 }
 0x174   :  { %v6837_v52 = vpop.eup %6836 }
 0x175   :  { %v7419_v27 = vmul.f32 %v6837_v52, %v815_v37 }
 0x177   :  { %v826_v53 = vpack.c.bf16 %v7419_v27, %v7419_v27 }
 0x179   :  { %1052 = vmatmul.mubr.bf16.vlgmr.msra.gmra.mxu0 %v826_v53  ;;  %1093 = vmatmul.mubr.bf16.vlgmr.msra.gmra.mxu1 %v826_v53 }
 0x17a   :  { %1319 = vmatpush1.bf16.msra.mxu0 %v7179_v4  ;;  %1360 = vmatpush1.bf16.msra.mxu1 %v7266_v56 }
 0x17b   :  { %1320 = vmatprep.subr.bf16.mxu0 %v7182_v7  ;;  %1361 = vmatprep.subr.bf16.mxu1 %v7269_v57 }
 0x17c   :  { %1350 = vmatprep.mubr.bf16.mxu0 %v8485_v24  ;;  %1391 = vmatprep.mubr.bf16.mxu1 %v8485_v24 }
 0x17e   :  { %1321 = vmatpush1.bf16.msra.mxu0 %v7185_v8  ;;  %1362 = vmatpush1.bf16.msra.mxu1 %v7273_v58 }
 0x17f   :  { %1322 = vmatprep.subr.bf16.mxu0 %v7188_v11  ;;  %1363 = vmatprep.subr.bf16.mxu1 %v7277_v59 }
 0x182   :  { %1323 = vmatpush1.bf16.msra.mxu0 %v7191_v13  ;;  %1364 = vmatpush1.bf16.msra.mxu1 %v7283_v60 }
 0x183   :  { %1324 = vmatprep.subr.bf16.mxu0 %v7194_v14  ;;  %1365 = vmatprep.subr.bf16.mxu1 %v7285_v61 }
 0x186   :  { %1325 = vmatpush1.bf16.msra.mxu0 %v7197_v17  ;;  %1366 = vmatpush1.bf16.msra.mxu1 %v7289_v62 }
 0x187   :  { %1326 = vmatprep.subr.bf16.mxu0 %v7200_v18  ;;  %1367 = vmatprep.subr.bf16.mxu1 %v7291_v63 }
 0x18a   :  { %1327 = vmatpush1.bf16.msra.mxu0 %v7203_v21  ;;  %1368 = vmatpush1.bf16.msra.mxu1 %v7296_v1 }
 0x18b   :  { %1328 = vmatprep.subr.bf16.mxu0 %v7206_v22  ;;  %1369 = vmatprep.subr.bf16.mxu1 %v7298_v2 }
 0x18e   :  { %1329 = vmatpush1.bf16.msra.mxu0 %v7209_v25  ;;  %1370 = vmatpush1.bf16.msra.mxu1 %v7302_v3 }
 0x18f   :  { %1330 = vmatprep.subr.bf16.mxu0 %v7212_v26  ;;  %1371 = vmatprep.subr.bf16.mxu1 %v7304_v5 }
 0x192   :  { %1331 = vmatpush1.bf16.msra.mxu0 %v7215_v29  ;;  %1372 = vmatpush1.bf16.msra.mxu1 %v7309_v6 }
 0x193   :  { %1332 = vmatprep.subr.bf16.mxu0 %v7218_v30  ;;  %1373 = vmatprep.subr.bf16.mxu1 %v7311_v9 }
 0x196   :  { %1333 = vmatpush1.bf16.msra.mxu0 %v7220_v32  ;;  %1374 = vmatpush1.bf16.msra.mxu1 %v7315_v10 }
 0x197   :  { %1658 = vmatprep.subr.bf16.mxu1 %v7262_v55 }
 0x239   :  { %v1053_v4 = vpop.f32.mrf.mxu0  ;;  %v1094_v7 = vpop.f32.mrf.mxu1 }
 0x23a   :  { %v1101_v8 = vadd.f32 %v1053_v4, %v7351_v35  ;;  %v1103_v14 = vadd.f32 %v1094_v7, %v7385_v16 }
 0x23b   :  { %v1055_v11 = vpop.f32.mrf.mxu0  ;;  %v1096_v13 = vpop.f32.mrf.mxu1 }
 0x23c   :  { %6838 = vtanh.f32 %v1101_v8  ;;  %v1102_v17 = vadd.f32 %v1055_v11, %v7353_v38  ;;  %v1104_v26 = vadd.f32 %v1096_v13, %v7387_v0  ;;  %v8486_v11 = vld [vmem:[#allocation25_spill] sm:$0xff] }
 0x23d   :  { %v1057_v18 = vpop.f32.mrf.mxu0  ;;  %v1098_v21 = vpop.f32.mrf.mxu1 }
 0x23e   :  { %6840 = vtanh.f32 %v1102_v17 }
 0x23f   :  { %v1058_v22 = vpop.f32.mrf.mxu0  ;;  %v1099_v25 = vpop.f32.mrf.mxu1  ;;  %6842 = vtanh.f32 %v1103_v14 }
 0x240   :  { %6844 = vtanh.f32 %v1104_v26 }
 0x249   :  { %v6839_v29 = vpop.eup %6838 }
 0x24a   :  { %v1109_v30 = vmul.f32 0.5, %v6839_v29 }
 0x24b   :  { %v6841_v32 = vpop.eup %6840 }
 0x24c   :  { %v1110_v55 = vadd.f32 0.5, %v1109_v30  ;;  %v1111_v35 = vmul.f32 0.5, %v6841_v32  ;;  %v6843_v31 = vpop.eup %6842 }
 0x24d   :  { %v6845_v36 = vpop.eup %6844 }
 0x24e   :  { %v1112_v44 = vadd.f32 0.5, %v1111_v35  ;;  %v1116_v42 = vmul.f32 %v6843_v31, %v1110_v55  ;;  %v1113_v45 = vmul.f32 0.5, %v6845_v36  ;;  %v7576_v36 = vld [vmem:[#allocation6 + $0xac] ss:$16 sps:$4 sm:$0xff]  }
 0x250   :  { %v1115_v16 = vmul.f32 %v1112_v44, %v7416_v33  ;;  %v1114_v48 = vadd.f32 0.5, %v1113_v45  ;;  %v7564_v44 = vld [vmem:[#allocation6 + $0xec] ss:$16 sps:$4 sm:$0xff]   ;;  %v7578_v45 = vld [vmem:[#allocation6 + $0xa8] ss:$16 sps:$4 sm:$0xff]  }
 0x252   :  { %v7461_v38 = vadd.f32 %v1116_v42, %v1115_v16  ;;  %v7566_v42 = vld [vmem:[#allocation6 + $0xe8] ss:$16 sps:$4 sm:$0xff]   ;;  %v7570_v16 = vld [vmem:[#allocation6 + $0xcc] ss:$16 sps:$4 sm:$0xff]  }
 0x254   :  { %6846 = vtanh.f32 %v7461_v38 }
 0x261   :  { %v6847_v50 = vpop.eup %6846 }
 0x262   :  { %v7464_v0 = vmul.f32 %v6847_v50, %v1114_v48  ;;  %v7582_v48 = vld [vmem:[#allocation6 + $0x8c] ss:$16 sps:$4 sm:$0xff]   ;;  %v7584_v50 = vld [vmem:[#allocation6 + $0x88] ss:$16 sps:$4 sm:$0xff]  }
 0x264   :  { %v1125_v54 = vpack.c.bf16 %v7464_v0, %v7464_v0 }
 0x266   :  { %1351 = vmatmul.mubr.bf16.vlgmr.msra.gmra.mxu0 %v1125_v54  ;;  %1392 = vmatmul.mubr.bf16.vlgmr.msra.gmra.mxu1 %v1125_v54  ;;  %v7588_v54 = vld [vmem:[#allocation6 + $0x6c] ss:$16 sps:$4 sm:$0xff]  }
 0x267   :  { %1659 = vmatpush1.bf16.msra.mxu1 %v7266_v56  ;;  %1649 = vmatprep.mubr.bf16.mxu0 %v8485_v24  ;;  %v7485_v56 = vld [vmem:[#allocation6 + $0xe4] ss:$16 sps:$4 sm:$0xff]  }
 0x268   :  { %1660 = vmatprep.subr.bf16.mxu1 %v7269_v57  ;;  %1690 = vmatprep.mubr.bf16.mxu1 %v8485_v24  ;;  %v7487_v57 = vld [vmem:[#allocation6 + $0xe0] ss:$16 sps:$4 sm:$0xff]  }
 0x269   :  { %1617 = vmatprep.subr.bf16.mxu0 %v7485_v56 }
 0x26a   :  { %1618 = vmatpush1.bf16.msra.mxu0 %v7487_v57 }
 0x26b   :  { %1661 = vmatpush1.bf16.msra.mxu1 %v7273_v58  ;;  %v7491_v58 = vld [vmem:[#allocation6 + $0xc4] ss:$16 sps:$4 sm:$0xff]  }
 0x26c   :  { %1662 = vmatprep.subr.bf16.mxu1 %v7277_v59  ;;  %v7493_v59 = vld [vmem:[#allocation6 + $0xc0] ss:$16 sps:$4 sm:$0xff]   ;;  %1619 = vmatprep.subr.bf16.mxu0 %v7491_v58 }
 0x26e   :  { %1620 = vmatpush1.bf16.msra.mxu0 %v7493_v59 }
 0x26f   :  { %1663 = vmatpush1.bf16.msra.mxu1 %v7283_v60  ;;  %v7497_v60 = vld [vmem:[#allocation6 + $0xa4] ss:$16 sps:$4 sm:$0xff]  }
 0x270   :  { %1664 = vmatprep.subr.bf16.mxu1 %v7285_v61  ;;  %v7499_v61 = vld [vmem:[#allocation6 + $0xa0] ss:$16 sps:$4 sm:$0xff]   ;;  %1621 = vmatprep.subr.bf16.mxu0 %v7497_v60 }
 0x272   :  { %1622 = vmatpush1.bf16.msra.mxu0 %v7499_v61 }
 0x273   :  { %1665 = vmatpush1.bf16.msra.mxu1 %v7289_v62  ;;  %v7503_v62 = vld [vmem:[#allocation6 + $0x84] ss:$16 sps:$4 sm:$0xff]  }
 0x274   :  { %1666 = vmatprep.subr.bf16.mxu1 %v7291_v63  ;;  %v7505_v63 = vld [vmem:[#allocation6 + $0x80] ss:$16 sps:$4 sm:$0xff]   ;;  %1623 = vmatprep.subr.bf16.mxu0 %v7503_v62 }
 0x276   :  { %1624 = vmatpush1.bf16.msra.mxu0 %v7505_v63 }
 0x277   :  { %1667 = vmatpush1.bf16.msra.mxu1 %v7296_v1  ;;  %v7509_v1 = vld [vmem:[#allocation6 + $0x64] ss:$16 sps:$4 sm:$0xff]  }
 0x278   :  { %1668 = vmatprep.subr.bf16.mxu1 %v7298_v2  ;;  %v7511_v2 = vld [vmem:[#allocation6 + $0x60] ss:$16 sps:$4 sm:$0xff]   ;;  %1625 = vmatprep.subr.bf16.mxu0 %v7509_v1 }
 0x27a   :  { %1626 = vmatpush1.bf16.msra.mxu0 %v7511_v2 }
 0x27b   :  { %1669 = vmatpush1.bf16.msra.mxu1 %v7302_v3  ;;  %v7515_v3 = vld [vmem:[#allocation6 + $0x44] ss:$16 sps:$4 sm:$0xff]  }
 0x27c   :  { %1670 = vmatprep.subr.bf16.mxu1 %v7304_v5  ;;  %v7517_v5 = vld [vmem:[#allocation6 + $0x40] ss:$16 sps:$4 sm:$0xff]   ;;  %1627 = vmatprep.subr.bf16.mxu0 %v7515_v3 }
 0x27e   :  { %1628 = vmatpush1.bf16.msra.mxu0 %v7517_v5 }
 0x27f   :  { %1671 = vmatpush1.bf16.msra.mxu1 %v7309_v6  ;;  %v7521_v6 = vld [vmem:[#allocation6 + $0x24] ss:$16 sps:$4 sm:$0xff]  }
 0x280   :  { %1672 = vmatprep.subr.bf16.mxu1 %v7311_v9  ;;  %v7523_v9 = vld [vmem:[#allocation6 + $0x20] ss:$16 sps:$4 sm:$0xff]   ;;  %1629 = vmatprep.subr.bf16.mxu0 %v7521_v6 }
 0x282   :  { %1630 = vmatpush1.bf16.msra.mxu0 %v7523_v9 }
 0x283   :  { %1673 = vmatpush1.bf16.msra.mxu1 %v7315_v10  ;;  %v7527_v10 = vld [vmem:[#allocation6 + $0x4] ss:$16 sps:$4 sm:$0xff]  }
 0x284   :  { %1631 = vmatprep.subr.bf16.mxu0 %v7527_v10  ;;  %1957 = vmatprep.subr.bf16.mxu1 %v7564_v44 }
 0x286   :  { %1632 = vmatpush1.bf16.msra.mxu0 %v7529_v34 }
 0x287   :  { %1916 = vmatprep.subr.bf16.mxu0 %v7485_v56 }
 0x326   :  { %v1352_v28 = vpop.f32.mrf.mxu0  ;;  %v1393_v51 = vpop.f32.mrf.mxu1 }
 0x327   :  { %v1400_v33 = vadd.f32 %v1352_v28, %v7355_v41  ;;  %v1402_v37 = vadd.f32 %v1393_v51, %v7389_v46  ;;  %v7590_v28 = vld [vmem:[#allocation6 + $0x68] ss:$16 sps:$4 sm:$0xff]   ;;  %v7594_v51 = vld [vmem:[#allocation6 + $0x4c] ss:$16 sps:$4 sm:$0xff]  }
 0x328   :  { %v1354_v49 = vpop.f32.mrf.mxu0  ;;  %v1395_v23 = vpop.f32.mrf.mxu1 }
 0x329   :  { %6848 = vtanh.f32 %v1400_v33  ;;  %v1401_v52 = vadd.f32 %v1354_v49, %v7357_v43  ;;  %v1403_v13 = vadd.f32 %v1395_v23, %v8486_v11  ;;  %v7596_v33 = vld [vmem:[#allocation6 + $0x48] ss:$16 sps:$4 sm:$0xff]   ;;  %v7600_v49 = vld [vmem:[#allocation6 + $0x2c] ss:$16 sps:$4 sm:$0xff]  }
 0x32a   :  { %v1356_v53 = vpop.f32.mrf.mxu0  ;;  %v1397_v4 = vpop.f32.mrf.mxu1  ;;  %v7602_v23 = vld [vmem:[#allocation6 + $0x28] ss:$16 sps:$4 sm:$0xff]  }
 0x32b   :  { %6850 = vtanh.f32 %v1401_v52  ;;  %v7608_v52 = vld [vmem:[#allocation6 + $0x8] ss:$16 sps:$4 sm:$0xff]  }
 0x32c   :  { %v1357_v7 = vpop.f32.mrf.mxu0  ;;  %v1398_v8 = vpop.f32.mrf.mxu1  ;;  %6852 = vtanh.f32 %v1402_v37  ;;  %v7606_v37 = vld [vmem:[#allocation6 + $0xc] ss:$16 sps:$4 sm:$0xff]  }
 0x32d   :  { %6854 = vtanh.f32 %v1403_v13  ;;  %v8487_v7 = vld [vmem:[#allocation15_spill] sm:$0xff] }
 0x336   :  { %v6849_v14 = vpop.eup %6848 }
 0x337   :  { %v1408_v17 = vmul.f32 0.5, %v6849_v14 }
 0x338   :  { %v6851_v18 = vpop.eup %6850 }
 0x339   :  { %v1409_v21 = vadd.f32 0.5, %v1408_v17  ;;  %v1410_v41 = vmul.f32 0.5, %v6851_v18  ;;  %v6853_v22 = vpop.eup %6852  ;;  %v8488_v17 = vld [vmem:[#allocation16_spill] sm:$0xff] }
 0x33a   :  { %v6855_v29 = vpop.eup %6854 }
 0x33b   :  { %v1411_v25 = vadd.f32 0.5, %v1410_v41  ;;  %v1415_v26 = vmul.f32 %v6853_v22, %v1409_v21  ;;  %v1412_v30 = vmul.f32 0.5, %v6855_v29 }
 0x33d   :  { %v1414_v46 = vmul.f32 %v1411_v25, %v7461_v38  ;;  %v1413_v32 = vadd.f32 0.5, %v1412_v30  ;;  %v7572_v38 = vld [vmem:[#allocation6 + $0xc8] ss:$16 sps:$4 sm:$0xff]  }
 0x33f   :  { %v7539_v43 = vadd.f32 %v1415_v26, %v1414_v46  ;;  %v8489_v26 = vld [vmem:[#allocation26_spill] sm:$0xff] }
 0x341   :  { %6856 = vtanh.f32 %v7539_v43 }
 0x34e   :  { %v6857_v55 = vpop.eup %6856 }
 0x34f   :  { %v7542_v35 = vmul.f32 %v6857_v55, %v1413_v32 }
 0x351   :  { %v1424_v31 = vpack.c.bf16 %v7542_v35, %v7542_v35 }
 0x353   :  { %1650 = vmatmul.mubr.bf16.vlgmr.msra.gmra.mxu0 %v1424_v31  ;;  %1691 = vmatmul.mubr.bf16.vlgmr.msra.gmra.mxu1 %v1424_v31 }
 0x354   :  { %1917 = vmatpush1.bf16.msra.mxu0 %v7487_v57  ;;  %1948 = vmatprep.mubr.bf16.mxu0 %v8485_v24 }
 0x355   :  { %1918 = vmatprep.subr.bf16.mxu0 %v7491_v58  ;;  %1989 = vmatprep.mubr.bf16.mxu1 %v8485_v24 }
 0x356   :  { %1958 = vmatpush1.bf16.msra.mxu1 %v7566_v42 }
 0x357   :  { %1959 = vmatprep.subr.bf16.mxu1 %v7570_v16 }
 0x358   :  { %1919 = vmatpush1.bf16.msra.mxu0 %v7493_v59 }
 0x359   :  { %1920 = vmatprep.subr.bf16.mxu0 %v7497_v60 }
 0x35a   :  { %1960 = vmatpush1.bf16.msra.mxu1 %v7572_v38 }
 0x35b   :  { %1961 = vmatprep.subr.bf16.mxu1 %v7576_v36 }
 0x35c   :  { %1921 = vmatpush1.bf16.msra.mxu0 %v7499_v61 }
 0x35d   :  { %1922 = vmatprep.subr.bf16.mxu0 %v7503_v62 }
 0x35e   :  { %1962 = vmatpush1.bf16.msra.mxu1 %v7578_v45 }
 0x35f   :  { %1963 = vmatprep.subr.bf16.mxu1 %v7582_v48 }
 0x360   :  { %1923 = vmatpush1.bf16.msra.mxu0 %v7505_v63 }
 0x361   :  { %1924 = vmatprep.subr.bf16.mxu0 %v7509_v1 }
 0x362   :  { %1964 = vmatpush1.bf16.msra.mxu1 %v7584_v50 }
 0x363   :  { %1965 = vmatprep.subr.bf16.mxu1 %v7588_v54 }
 0x364   :  { %1925 = vmatpush1.bf16.msra.mxu0 %v7511_v2 }
 0x365   :  { %1926 = vmatprep.subr.bf16.mxu0 %v7515_v3 }
 0x366   :  { %1966 = vmatpush1.bf16.msra.mxu1 %v7590_v28 }
 0x367   :  { %1967 = vmatprep.subr.bf16.mxu1 %v7594_v51 }
 0x368   :  { %1927 = vmatpush1.bf16.msra.mxu0 %v7517_v5 }
 0x369   :  { %1928 = vmatprep.subr.bf16.mxu0 %v7521_v6 }
 0x36a   :  { %1968 = vmatpush1.bf16.msra.mxu1 %v7596_v33 }
 0x36b   :  { %1969 = vmatprep.subr.bf16.mxu1 %v7600_v49 }
 0x36c   :  { %1929 = vmatpush1.bf16.msra.mxu0 %v7523_v9 }
 0x36d   :  { %1930 = vmatprep.subr.bf16.mxu0 %v7527_v10 }
 0x36e   :  { %1970 = vmatpush1.bf16.msra.mxu1 %v7602_v23 }
 0x36f   :  { %1971 = vmatprep.subr.bf16.mxu1 %v7606_v37 }
 0x370   :  { %1931 = vmatpush1.bf16.msra.mxu0 %v7529_v34 }
 0x371   :  { %2215 = vmatprep.subr.bf16.mxu0 %v7485_v56 }
 0x372   :  { %1972 = vmatpush1.bf16.msra.mxu1 %v7608_v52 }
 0x373   :  { %2256 = vmatprep.subr.bf16.mxu1 %v7564_v44 }
 0x413   :  { %v1651_v53 = vpop.f32.mrf.mxu0  ;;  %v1692_v4 = vpop.f32.mrf.mxu1 }
 0x414   :  { %v1699_v8 = vadd.f32 %v1651_v53, %v8487_v7  ;;  %v1701_v14 = vadd.f32 %v1692_v4, %v7393_v12 }
 0x415   :  { %v1653_v11 = vpop.f32.mrf.mxu0  ;;  %v1694_v13 = vpop.f32.mrf.mxu1 }
 0x416   :  { %6858 = vtanh.f32 %v1699_v8  ;;  %v1700_v18 = vadd.f32 %v1653_v11, %v8488_v17  ;;  %v1702_v46 = vadd.f32 %v1694_v13, %v8489_v26 }
 0x417   :  { %v1655_v21 = vpop.f32.mrf.mxu0  ;;  %v1696_v41 = vpop.f32.mrf.mxu1 }
 0x418   :  { %6860 = vtanh.f32 %v1700_v18 }
 0x419   :  { %v1656_v22 = vpop.f32.mrf.mxu0  ;;  %v1697_v25 = vpop.f32.mrf.mxu1  ;;  %6862 = vtanh.f32 %v1701_v14 }
 0x41a   :  { %6864 = vtanh.f32 %v1702_v46  ;;  %v8490_v22 = vld [vmem:[#allocation17_spill] sm:$0xff] }
 0x423   :  { %v6859_v29 = vpop.eup %6858 }
 0x424   :  { %v1707_v30 = vmul.f32 0.5, %v6859_v29 }
 0x425   :  { %v6861_v32 = vpop.eup %6860 }
 0x426   :  { %v1708_v55 = vadd.f32 0.5, %v1707_v30  ;;  %v1709_v31 = vmul.f32 0.5, %v6861_v32  ;;  %v6863_v53 = vpop.eup %6862  ;;  %v8491_v30 = vld [vmem:[#allocation18_spill] sm:$0xff] }
 0x427   :  { %v6865_v11 = vpop.eup %6864 }
 0x428   :  { %v1710_v7 = vadd.f32 0.5, %v1709_v31  ;;  %v1714_v8 = vmul.f32 %v6863_v53, %v1708_v55  ;;  %v1711_v17 = vmul.f32 0.5, %v6865_v11 }
 0x42a   :  { %v1713_v12 = vmul.f32 %v1710_v7, %v7539_v43  ;;  %v1712_v14 = vadd.f32 0.5, %v1711_v17 }
 0x42c   :  { %v7618_v4 = vadd.f32 %v1714_v8, %v1713_v12 }
 0x42e   :  { %6866 = vtanh.f32 %v7618_v4 }
 0x43b   :  { %v6867_v18 = vpop.eup %6866 }
 0x43c   :  { %v7621_v13 = vmul.f32 %v6867_v18, %v1712_v14 }
 0x43e   :  { %v1723_v21 = vpack.c.bf16 %v7621_v13, %v7621_v13 }
 0x440   :  { %1949 = vmatmul.mubr.bf16.vlgmr.msra.gmra.mxu0 %v1723_v21  ;;  %1990 = vmatmul.mubr.bf16.vlgmr.msra.gmra.mxu1 %v1723_v21 }
 0x441   :  { %2216 = vmatpush1.bf16.msra.mxu0 %v7487_v57  ;;  %2257 = vmatpush1.bf16.msra.mxu1 %v7566_v42 }
 0x442   :  { %2217 = vmatprep.subr.bf16.mxu0 %v7491_v58  ;;  %2258 = vmatprep.subr.bf16.mxu1 %v7570_v16 }
 0x443   :  { %2247 = vmatprep.mubr.bf16.mxu0 %v8485_v24  ;;  %2288 = vmatprep.mubr.bf16.mxu1 %v8485_v24 }
 0x445   :  { %2218 = vmatpush1.bf16.msra.mxu0 %v7493_v59  ;;  %2259 = vmatpush1.bf16.msra.mxu1 %v7572_v38 }
 0x446   :  { %2219 = vmatprep.subr.bf16.mxu0 %v7497_v60  ;;  %2260 = vmatprep.subr.bf16.mxu1 %v7576_v36 }
 0x449   :  { %2220 = vmatpush1.bf16.msra.mxu0 %v7499_v61  ;;  %2261 = vmatpush1.bf16.msra.mxu1 %v7578_v45 }
 0x44a   :  { %2221 = vmatprep.subr.bf16.mxu0 %v7503_v62  ;;  %2262 = vmatprep.subr.bf16.mxu1 %v7582_v48 }
 0x44d   :  { %2222 = vmatpush1.bf16.msra.mxu0 %v7505_v63  ;;  %2263 = vmatpush1.bf16.msra.mxu1 %v7584_v50 }
 0x44e   :  { %2223 = vmatprep.subr.bf16.mxu0 %v7509_v1  ;;  %2264 = vmatprep.subr.bf16.mxu1 %v7588_v54 }
 0x451   :  { %2224 = vmatpush1.bf16.msra.mxu0 %v7511_v2  ;;  %2265 = vmatpush1.bf16.msra.mxu1 %v7590_v28 }
 0x452   :  { %2225 = vmatprep.subr.bf16.mxu0 %v7515_v3  ;;  %2266 = vmatprep.subr.bf16.mxu1 %v7594_v51 }
 0x455   :  { %2226 = vmatpush1.bf16.msra.mxu0 %v7517_v5  ;;  %2267 = vmatpush1.bf16.msra.mxu1 %v7596_v33 }
 0x456   :  { %2227 = vmatprep.subr.bf16.mxu0 %v7521_v6  ;;  %2268 = vmatprep.subr.bf16.mxu1 %v7600_v49 }
 0x459   :  { %2228 = vmatpush1.bf16.msra.mxu0 %v7523_v9  ;;  %2269 = vmatpush1.bf16.msra.mxu1 %v7602_v23 }
 0x45a   :  { %2229 = vmatprep.subr.bf16.mxu0 %v7527_v10  ;;  %2270 = vmatprep.subr.bf16.mxu1 %v7606_v37 }
 0x45d   :  { %2230 = vmatpush1.bf16.msra.mxu0 %v7529_v34  ;;  %2271 = vmatpush1.bf16.msra.mxu1 %v7608_v52 }
 0x45e   :  { %2514 = vmatprep.subr.bf16.mxu0 %v7485_v56  ;;  %2555 = vmatprep.subr.bf16.mxu1 %v7564_v44 }
 0x500   :  { %v1950_v43 = vpop.f32.mrf.mxu0  ;;  %v1991_v41 = vpop.f32.mrf.mxu1 }
 0x501   :  { %v1998_v25 = vadd.f32 %v1950_v43, %v8490_v22  ;;  %v2000_v29 = vadd.f32 %v1991_v41, %v7397_v19 }
 0x502   :  { %v1952_v26 = vpop.f32.mrf.mxu0  ;;  %v1993_v46 = vpop.f32.mrf.mxu1 }
 0x503   :  { %6868 = vtanh.f32 %v1998_v25  ;;  %v1999_v32 = vadd.f32 %v1952_v26, %v8491_v30  ;;  %v2001_v8 = vadd.f32 %v1993_v46, %v7399_v40 }
 0x504   :  { %v1954_v55 = vpop.f32.mrf.mxu0  ;;  %v1995_v31 = vpop.f32.mrf.mxu1 }
 0x505   :  { %6870 = vtanh.f32 %v1999_v32  ;;  %v8492_v55 = vld [vmem:[#allocation19_spill] sm:$0xff] }
 0x506   :  { %v1955_v53 = vpop.f32.mrf.mxu0  ;;  %v1996_v7 = vpop.f32.mrf.mxu1  ;;  %6872 = vtanh.f32 %v2000_v29 }
 0x507   :  { %6874 = vtanh.f32 %v2001_v8 }
 0x510   :  { %v6869_v12 = vpop.eup %6868 }
 0x511   :  { %v2006_v11 = vmul.f32 0.5, %v6869_v12  ;;  %v8493_v12 = vld [vmem:[#allocation20_spill] sm:$0xff] }
 0x512   :  { %v6871_v17 = vpop.eup %6870 }
 0x513   :  { %v2007_v14 = vadd.f32 0.5, %v2006_v11  ;;  %v2008_v18 = vmul.f32 0.5, %v6871_v17  ;;  %v6873_v21 = vpop.eup %6872 }
 0x514   :  { %v6875_v25 = vpop.eup %6874 }
 0x515   :  { %v2009_v43 = vadd.f32 0.5, %v2008_v18  ;;  %v2013_v22 = vmul.f32 %v6873_v21, %v2007_v14  ;;  %v2010_v26 = vmul.f32 0.5, %v6875_v25 }
 0x517   :  { %v2012_v19 = vmul.f32 %v2009_v43, %v7618_v4  ;;  %v2011_v29 = vadd.f32 0.5, %v2010_v26 }
 0x519   :  { %v7664_v41 = vadd.f32 %v2013_v22, %v2012_v19 }
 0x51b   :  { %6876 = vtanh.f32 %v7664_v41 }
 0x528   :  { %v6877_v30 = vpop.eup %6876 }
 0x529   :  { %v7667_v40 = vmul.f32 %v6877_v30, %v2011_v29 }
 0x52b   :  { %v2022_v46 = vpack.c.bf16 %v7667_v40, %v7667_v40 }
 0x52d   :  { %2248 = vmatmul.mubr.bf16.vlgmr.msra.gmra.mxu0 %v2022_v46  ;;  %2289 = vmatmul.mubr.bf16.vlgmr.msra.gmra.mxu1 %v2022_v46 }
 0x52e   :  { %2515 = vmatpush1.bf16.msra.mxu0 %v7487_v57  ;;  %2556 = vmatpush1.bf16.msra.mxu1 %v7566_v42 }
 0x52f   :  { %2516 = vmatprep.subr.bf16.mxu0 %v7491_v58  ;;  %2557 = vmatprep.subr.bf16.mxu1 %v7570_v16 }
 0x530   :  { %2546 = vmatprep.mubr.bf16.mxu0 %v8485_v24  ;;  %2587 = vmatprep.mubr.bf16.mxu1 %v8485_v24 }
 0x532   :  { %2517 = vmatpush1.bf16.msra.mxu0 %v7493_v59  ;;  %2558 = vmatpush1.bf16.msra.mxu1 %v7572_v38 }
 0x533   :  { %2518 = vmatprep.subr.bf16.mxu0 %v7497_v60  ;;  %2559 = vmatprep.subr.bf16.mxu1 %v7576_v36 }
 0x536   :  { %2519 = vmatpush1.bf16.msra.mxu0 %v7499_v61  ;;  %2560 = vmatpush1.bf16.msra.mxu1 %v7578_v45 }
 0x537   :  { %2520 = vmatprep.subr.bf16.mxu0 %v7503_v62  ;;  %2561 = vmatprep.subr.bf16.mxu1 %v7582_v48 }
 0x53a   :  { %2521 = vmatpush1.bf16.msra.mxu0 %v7505_v63  ;;  %2562 = vmatpush1.bf16.msra.mxu1 %v7584_v50 }
 0x53b   :  { %2522 = vmatprep.subr.bf16.mxu0 %v7509_v1  ;;  %2563 = vmatprep.subr.bf16.mxu1 %v7588_v54 }
 0x53e   :  { %2523 = vmatpush1.bf16.msra.mxu0 %v7511_v2  ;;  %2564 = vmatpush1.bf16.msra.mxu1 %v7590_v28 }
 0x53f   :  { %2524 = vmatprep.subr.bf16.mxu0 %v7515_v3  ;;  %2565 = vmatprep.subr.bf16.mxu1 %v7594_v51 }
 0x542   :  { %2525 = vmatpush1.bf16.msra.mxu0 %v7517_v5  ;;  %2566 = vmatpush1.bf16.msra.mxu1 %v7596_v33 }
 0x543   :  { %2526 = vmatprep.subr.bf16.mxu0 %v7521_v6  ;;  %2567 = vmatprep.subr.bf16.mxu1 %v7600_v49 }
 0x546   :  { %2527 = vmatpush1.bf16.msra.mxu0 %v7523_v9  ;;  %2568 = vmatpush1.bf16.msra.mxu1 %v7602_v23 }
 0x547   :  { %2528 = vmatprep.subr.bf16.mxu0 %v7527_v10  ;;  %2569 = vmatprep.subr.bf16.mxu1 %v7606_v37 }
 0x54a   :  { %2529 = vmatpush1.bf16.msra.mxu0 %v7529_v34  ;;  %2570 = vmatpush1.bf16.msra.mxu1 %v7608_v52 }
 0x54b   :  { %2813 = vmatprep.subr.bf16.mxu0 %v7485_v56  ;;  %2854 = vmatprep.subr.bf16.mxu1 %v7564_v44 }
 0x5ed   :  { %v2249_v4 = vpop.f32.mrf.mxu0  ;;  %v2290_v32 = vpop.f32.mrf.mxu1 }
 0x5ee   :  { %v2297_v31 = vadd.f32 %v2249_v4, %v8492_v55  ;;  %v2299_v8 = vadd.f32 %v2290_v32, %v7401_v47 }
 0x5ef   :  { %v2251_v53 = vpop.f32.mrf.mxu0  ;;  %v2292_v7 = vpop.f32.mrf.mxu1 }
 0x5f0   :  { %6878 = vtanh.f32 %v2297_v31  ;;  %v2298_v11 = vadd.f32 %v2251_v53, %v8493_v12  ;;  %v2300_v56 = vadd.f32 %v2292_v7, %v7403_v39  ;;  %v6676_v12 = vld [vmem:[#allocation8 + $0xe0] ss:$16 sps:$4 sm:$0xff]  }
 0x5f1   :  { %v2253_v17 = vpop.f32.mrf.mxu0  ;;  %v2294_v14 = vpop.f32.mrf.mxu1 }
 0x5f2   :  { %6880 = vtanh.f32 %v2298_v11  ;;  %v6679_v11 = vld [vmem:[#allocation8 + $0xe8] ss:$16 sps:$4 sm:$0xff]   ;;  %v6684_v14 = vld [vmem:[#allocation8 + $0xc4] ss:$16 sps:$4 sm:$0xff]  }
 0x5f3   :  { %v2254_v18 = vpop.f32.mrf.mxu0  ;;  %v2295_v21 = vpop.f32.mrf.mxu1  ;;  %6882 = vtanh.f32 %v2299_v8 }
 0x5f4   :  { %6884 = vtanh.f32 %v2300_v56  ;;  %v6687_v18 = vld [vmem:[#allocation8 + $0xcc] ss:$16 sps:$4 sm:$0xff]   ;;  %v6682_v21 = vld [vmem:[#allocation8 + $0xc0] ss:$16 sps:$4 sm:$0xff]   ;;  %v6685_v56 = vld [vmem:[#allocation8 + $0xc8] ss:$16 sps:$4 sm:$0xff]  }
 0x5fd   :  { %v6879_v44 = vpop.eup %6878 }
 0x5fe   :  { %v2305_v43 = vmul.f32 0.5, %v6879_v44  ;;  %v6690_v44 = vld [vmem:[#allocation8 + $0xa4] ss:$16 sps:$4 sm:$0xff]  }
 0x5ff   :  { %v6881_v22 = vpop.eup %6880 }
 0x600   :  { %v2306_v19 = vadd.f32 0.5, %v2305_v43  ;;  %v2307_v25 = vmul.f32 0.5, %v6881_v22  ;;  %v6883_v26 = vpop.eup %6882  ;;  %v6693_v43 = vld [vmem:[#allocation8 + $0xac] ss:$16 sps:$4 sm:$0xff]   ;;  %v6688_v22 = vld [vmem:[#allocation8 + $0xa0] ss:$16 sps:$4 sm:$0xff]  }
 0x601   :  { %v6885_v4 = vpop.eup %6884 }
 0x602   :  { %v2308_v29 = vadd.f32 0.5, %v2307_v25  ;;  %v2312_v30 = vmul.f32 %v6883_v26, %v2306_v19  ;;  %v2309_v32 = vmul.f32 0.5, %v6885_v4  ;;  %v6691_v19 = vld [vmem:[#allocation8 + $0xa8] ss:$16 sps:$4 sm:$0xff]   ;;  %v6696_v25 = vld [vmem:[#allocation8 + $0x84] ss:$16 sps:$4 sm:$0xff]  }
 0x603   :  { %v6699_v26 = vld [vmem:[#allocation8 + $0x8c] ss:$16 sps:$4 sm:$0xff]   ;;  %v6700_v4 = vld [vmem:[#allocation8 + $0x60] ss:$16 sps:$4 sm:$0xff]  }
 0x604   :  { %v2311_v47 = vmul.f32 %v2308_v29, %v7664_v41  ;;  %v2310_v55 = vadd.f32 0.5, %v2309_v32  ;;  %v6694_v29 = vld [vmem:[#allocation8 + $0x80] ss:$16 sps:$4 sm:$0xff]   ;;  %v6703_v32 = vld [vmem:[#allocation8 + $0x68] ss:$16 sps:$4 sm:$0xff]  }
 0x606   :  { %v7710_v46 = vadd.f32 %v2312_v30, %v2311_v47  ;;  %v6697_v30 = vld [vmem:[#allocation8 + $0x88] ss:$16 sps:$4 sm:$0xff]   ;;  %v6702_v47 = vld [vmem:[#allocation8 + $0x64] ss:$16 sps:$4 sm:$0xff]  }
 0x608   :  { %6886 = vtanh.f32 %v7710_v46 }
 0x615   :  { %v6887_v31 = vpop.eup %6886 }
 0x616   :  { %v7713_v39 = vmul.f32 %v6887_v31, %v2310_v55  ;;  %v6708_v55 = vld [vmem:[#allocation8 + $0x44] ss:$16 sps:$4 sm:$0xff]   ;;  %v6711_v31 = vld [vmem:[#allocation8 + $0x4c] ss:$16 sps:$4 sm:$0xff]  }
 0x618   :  { %v2321_v53 = vpack.c.bf16 %v7713_v39, %v7713_v39 }
 0x61a   :  { %2547 = vmatmul.mubr.bf16.vlgmr.msra.gmra.mxu0 %v2321_v53  ;;  %2588 = vmatmul.mubr.bf16.vlgmr.msra.gmra.mxu1 %v2321_v53  ;;  %v6706_v53 = vld [vmem:[#allocation8 + $0x40] ss:$16 sps:$4 sm:$0xff]  }
 0x61b   :  { %2814 = vmatpush1.bf16.msra.mxu0 %v7487_v57  ;;  %2855 = vmatpush1.bf16.msra.mxu1 %v7566_v42  ;;  %v6678_v57 = vld [vmem:[#allocation8 + $0xe4] ss:$16 sps:$4 sm:$0xff]  }
 0x61c   :  { %2815 = vmatprep.subr.bf16.mxu0 %v7491_v58  ;;  %2856 = vmatprep.subr.bf16.mxu1 %v7570_v16  ;;  %v6681_v58 = vld [vmem:[#allocation8 + $0xec] ss:$16 sps:$4 sm:$0xff]   ;;  %v8497_v16 = vld [vmem:[#allocation28_spill] sm:$0xff] }
 0x61d   :  { %2845 = vmatprep.mubr.bf16.mxu0 %v8485_v24  ;;  %2886 = vmatprep.mubr.bf16.mxu1 %v8485_v24 }
 0x61f   :  { %2816 = vmatpush1.bf16.msra.mxu0 %v7493_v59  ;;  %2857 = vmatpush1.bf16.msra.mxu1 %v7572_v38 }
 0x620   :  { %2817 = vmatprep.subr.bf16.mxu0 %v7497_v60  ;;  %2858 = vmatprep.subr.bf16.mxu1 %v7576_v36 }
 0x623   :  { %2818 = vmatpush1.bf16.msra.mxu0 %v7499_v61  ;;  %2859 = vmatpush1.bf16.msra.mxu1 %v7578_v45  ;;  %v8494_v61 = vld [vmem:[#allocation21_spill] sm:$0xff] }
 0x624   :  { %2819 = vmatprep.subr.bf16.mxu0 %v7503_v62  ;;  %2860 = vmatprep.subr.bf16.mxu1 %v7582_v48 }
 0x627   :  { %2820 = vmatpush1.bf16.msra.mxu0 %v7505_v63  ;;  %2861 = vmatpush1.bf16.msra.mxu1 %v7584_v50 }
 0x628   :  { %2821 = vmatprep.subr.bf16.mxu0 %v7509_v1  ;;  %2862 = vmatprep.subr.bf16.mxu1 %v7588_v54 }
 0x62b   :  { %2822 = vmatpush1.bf16.msra.mxu0 %v7511_v2  ;;  %2863 = vmatpush1.bf16.msra.mxu1 %v7590_v28  ;;  %v8495_v2 = vld [vmem:[#allocation27_spill] sm:$0xff] }
 0x62c   :  { %2823 = vmatprep.subr.bf16.mxu0 %v7515_v3  ;;  %2864 = vmatprep.subr.bf16.mxu1 %v7594_v51 }
 0x62f   :  { %2824 = vmatpush1.bf16.msra.mxu0 %v7517_v5  ;;  %2865 = vmatpush1.bf16.msra.mxu1 %v7596_v33  ;;  %v8496_v5 = vld [vmem:[#allocation22_spill] sm:$0xff] }
 0x630   :  { %2825 = vmatprep.subr.bf16.mxu0 %v7521_v6  ;;  %2866 = vmatprep.subr.bf16.mxu1 %v7600_v49 }
 0x633   :  { %2826 = vmatpush1.bf16.msra.mxu0 %v7523_v9  ;;  %2867 = vmatpush1.bf16.msra.mxu1 %v7602_v23 }
 0x634   :  { %2827 = vmatprep.subr.bf16.mxu0 %v7527_v10  ;;  %2868 = vmatprep.subr.bf16.mxu1 %v7606_v37 }
 0x637   :  { %2828 = vmatpush1.bf16.msra.mxu0 %v7529_v34  ;;  %2869 = vmatpush1.bf16.msra.mxu1 %v7608_v52 }
 0x638   :  { %3143 = vmatprep.subr.bf16.mxu0 %v6678_v57  ;;  %3216 = vmatprep.subr.bf16.mxu1 %v6681_v58  ;;  %v6709_v57 = vld [vmem:[#allocation8 + $0x48] ss:$16 sps:$4 sm:$0xff]   ;;  %v6714_v58 = vld [vmem:[#allocation8 + $0x24] ss:$16 sps:$4 sm:$0xff]  }
 0x6da   :  { %v2548_v59 = vpop.f32.mrf.mxu0  ;;  %v2589_v60 = vpop.f32.mrf.mxu1 }
 0x6db   :  { %v2596_v62 = vadd.f32 %v2548_v59, %v8494_v61  ;;  %v2598_v3 = vadd.f32 %v2589_v60, %v8495_v2  ;;  %v6717_v59 = vld [vmem:[#allocation8 + $0x2c] ss:$16 sps:$4 sm:$0xff]   ;;  %v6712_v60 = vld [vmem:[#allocation8 + $0x20] ss:$16 sps:$4 sm:$0xff]   ;;  %v6715_v61 = vld [vmem:[#allocation8 + $0x28] ss:$16 sps:$4 sm:$0xff]  }
 0x6dc   :  { %v2550_v63 = vpop.f32.mrf.mxu0  ;;  %v2591_v1 = vpop.f32.mrf.mxu1  ;;  %v6721_v2 = vld [vmem:[#allocation8 + $0x8] ss:$16 sps:$4 sm:$0xff]  }
 0x6dd   :  { %6888 = vtanh.f32 %v2596_v62  ;;  %v2597_v6 = vadd.f32 %v2550_v63, %v8496_v5  ;;  %v2599_v38 = vadd.f32 %v2591_v1, %v8497_v16  ;;  %v6720_v62 = vld [vmem:[#allocation8 + $0x4] ss:$16 sps:$4 sm:$0xff]   ;;  %v6723_v63 = vld [vmem:[#allocation8 + $0xc] ss:$16 sps:$4 sm:$0xff]   ;;  %v6718_v1 = vld [vmem:[#allocation8] ss:$16 sps:$4 sm:$0xff]   ;;  %v2926_v5 = vpack.c.bf16 %v7621_v13, %v7542_v35 }
 0x6de   :  { %v2552_v9 = vpop.f32.mrf.mxu0  ;;  %v2593_v10 = vpop.f32.mrf.mxu1  ;;  %v7779_v35 = vld [vmem:[#allocation9 + $0xe0] ss:$16 sps:$4 sm:$0xff]   ;;  %v7781_v13 = vld [vmem:[#allocation9 + $0xe8] ss:$16 sps:$4 sm:$0xff]  }
 0x6df   :  { %6890 = vtanh.f32 %v2597_v6  ;;  %v2927_v6 = vpack.c.bf16 %v7713_v39, %v7667_v40  ;;  %v7787_v40 = vld [vmem:[#allocation9 + $0xc4] ss:$16 sps:$4 sm:$0xff]   ;;  %v7789_v39 = vld [vmem:[#allocation9 + $0xcc] ss:$16 sps:$4 sm:$0xff]   ;;  %v7791_v9 = vld [vmem:[#allocation9 + $0xc0] ss:$16 sps:$4 sm:$0xff]  }
 0x6e0   :  { %v2553_v34 = vpop.f32.mrf.mxu0  ;;  %v2594_v42 = vpop.f32.mrf.mxu1  ;;  %6892 = vtanh.f32 %v2598_v3  ;;  %v2925_v3 = vpack.c.bf16 %v7464_v0, %v7419_v27  ;;  %v7775_v27 = vld [vmem:[#allocation9 + $0xe4] ss:$16 sps:$4 sm:$0xff]   ;;  %v7777_v0 = vld [vmem:[#allocation9 + $0xec] ss:$16 sps:$4 sm:$0xff]   ;;  %v7793_v10 = vld [vmem:[#allocation9 + $0xc8] ss:$16 sps:$4 sm:$0xff]  }
 0x6e1   :  { %6894 = vtanh.f32 %v2599_v38  ;;  %v7799_v34 = vld [vmem:[#allocation9 + $0xa0] ss:$16 sps:$4 sm:$0xff]   ;;  %v7801_v42 = vld [vmem:[#allocation9 + $0xa4] ss:$16 sps:$4 sm:$0xff]   ;;  %v7803_v16 = vld [vmem:[#allocation9 + $0xa8] ss:$16 sps:$4 sm:$0xff]  }
 0x6e2   :  { %v7805_v38 = vld [vmem:[#allocation9 + $0xac] ss:$16 sps:$4 sm:$0xff]  }
 0x6ea   :  { %v6889_v36 = vpop.eup %6888 }
 0x6eb   :  { %v2604_v45 = vmul.f32 0.5, %v6889_v36  ;;  %v7811_v36 = vld [vmem:[#allocation9 + $0x84] ss:$16 sps:$4 sm:$0xff]  }
 0x6ec   :  { %v6891_v48 = vpop.eup %6890 }
 0x6ed   :  { %v2605_v50 = vadd.f32 0.5, %v2604_v45  ;;  %v2606_v54 = vmul.f32 0.5, %v6891_v48  ;;  %v6893_v28 = vpop.eup %6892  ;;  %v7813_v45 = vld [vmem:[#allocation9 + $0x8c] ss:$16 sps:$4 sm:$0xff]   ;;  %v7815_v48 = vld [vmem:[#allocation9 + $0x80] ss:$16 sps:$4 sm:$0xff]  }
 0x6ee   :  { %v6895_v37 = vpop.eup %6894 }
 0x6ef   :  { %v2607_v51 = vadd.f32 0.5, %v2606_v54  ;;  %v2611_v33 = vmul.f32 %v6893_v28, %v2605_v50  ;;  %v2608_v52 = vmul.f32 0.5, %v6895_v37  ;;  %v7817_v50 = vld [vmem:[#allocation9 + $0x88] ss:$16 sps:$4 sm:$0xff]   ;;  %v7823_v54 = vld [vmem:[#allocation9 + $0x64] ss:$16 sps:$4 sm:$0xff]  }
 0x6f0   :  { %v7825_v28 = vld [vmem:[#allocation9 + $0x6c] ss:$16 sps:$4 sm:$0xff]  }
 0x6f1   :  { %v2610_v49 = vmul.f32 %v2607_v51, %v7710_v46  ;;  %v2609_v41 = vadd.f32 0.5, %v2608_v52  ;;  %v6705_v46 = vld [vmem:[#allocation8 + $0x6c] ss:$16 sps:$4 sm:$0xff]   ;;  %v7827_v51 = vld [vmem:[#allocation9 + $0x60] ss:$16 sps:$4 sm:$0xff]  }
 0x6f2   :  { %v7837_v37 = vld [vmem:[#allocation9 + $0x4c] ss:$16 sps:$4 sm:$0xff]   ;;  %v7839_v52 = vld [vmem:[#allocation9 + $0x40] ss:$16 sps:$4 sm:$0xff]  }
 0x6f3   :  { %v7754_v23 = vadd.f32 %v2611_v33, %v2610_v49  ;;  %v7829_v33 = vld [vmem:[#allocation9 + $0x68] ss:$16 sps:$4 sm:$0xff]   ;;  %v7835_v49 = vld [vmem:[#allocation9 + $0x44] ss:$16 sps:$4 sm:$0xff]  }
 0x6f5   :  { %6896 = vtanh.f32 %v7754_v23 }
 0x702   :  { %v6897_v7 = vpop.eup %6896 }
 0x703   :  { %v7757_v8 = vmul.f32 %v6897_v7, %v2609_v41  ;;  %v7841_v41 = vld [vmem:[#allocation9 + $0x48] ss:$16 sps:$4 sm:$0xff]   ;;  %v7847_v7 = vld [vmem:[#allocation9 + $0x24] ss:$16 sps:$4 sm:$0xff]  }
 0x705   :  { %v2620_v17 = vpack.c.bf16 %v7757_v8, %v7757_v8 }
 0x707   :  { %2846 = vmatmul.mubr.bf16.vlgmr.msra.gmra.mxu0 %v2620_v17  ;;  %2887 = vmatmul.mubr.bf16.vlgmr.msra.gmra.mxu1 %v2620_v17  ;;  %v7853_v17 = vld [vmem:[#allocation9 + $0x28] ss:$16 sps:$4 sm:$0xff]  }
 0x708   :  { %3144 = vmatpush1.bf16.msra.mxu0 %v6676_v12  ;;  %3217 = vmatpush1.bf16.msra.mxu1 %v6679_v11  ;;  %v7849_v12 = vld [vmem:[#allocation9 + $0x2c] ss:$16 sps:$4 sm:$0xff]   ;;  %v7851_v11 = vld [vmem:[#allocation9 + $0x20] ss:$16 sps:$4 sm:$0xff]  }
 0x709   :  { %3145 = vmatprep.subr.bf16.mxu0 %v6684_v14  ;;  %3218 = vmatprep.subr.bf16.mxu1 %v6687_v18  ;;  %v7859_v14 = vld [vmem:[#allocation9 + $0x4] ss:$16 sps:$4 sm:$0xff]   ;;  %v7861_v18 = vld [vmem:[#allocation9 + $0xc] ss:$16 sps:$4 sm:$0xff]  }
 0x70a   :  { %3175 = vmatprep.mubr.bf16.mxu0 %v8485_v24  ;;  %3248 = vmatprep.mubr.bf16.mxu1 %v8485_v24 }
 0x70c   :  { %3146 = vmatpush1.bf16.msra.mxu0 %v6682_v21  ;;  %3219 = vmatpush1.bf16.msra.mxu1 %v6685_v56  ;;  %v7863_v21 = vld [vmem:[#allocation9] ss:$16 sps:$4 sm:$0xff]   ;;  %v7865_v56 = vld [vmem:[#allocation9 + $0x8] ss:$16 sps:$4 sm:$0xff]  }
 0x70d   :  { %3147 = vmatprep.subr.bf16.mxu0 %v6690_v44  ;;  %3220 = vmatprep.subr.bf16.mxu1 %v6693_v43 }
 0x710   :  { %3148 = vmatpush1.bf16.msra.mxu0 %v6688_v22  ;;  %3221 = vmatpush1.bf16.msra.mxu1 %v6691_v19  ;;  %v8498_v22 = vld [vmem:[#allocation23_spill] sm:$0xff] }
 0x711   :  { %3149 = vmatprep.subr.bf16.mxu0 %v6696_v25  ;;  %3222 = vmatprep.subr.bf16.mxu1 %v6699_v26 }
 0x714   :  { %3150 = vmatpush1.bf16.msra.mxu0 %v6694_v29  ;;  %3223 = vmatpush1.bf16.msra.mxu1 %v6697_v30  ;;  %v8499_v30 = vld [vmem:[#allocation24_spill] sm:$0xff] }
 0x715   :  { %3151 = vmatprep.subr.bf16.mxu0 %v6702_v47  ;;  %3224 = vmatprep.subr.bf16.mxu1 %v6705_v46 }
 0x718   :  { %3152 = vmatpush1.bf16.msra.mxu0 %v6700_v4  ;;  %3225 = vmatpush1.bf16.msra.mxu1 %v6703_v32 }
 0x719   :  { %3153 = vmatprep.subr.bf16.mxu0 %v6708_v55  ;;  %3226 = vmatprep.subr.bf16.mxu1 %v6711_v31 }
 0x71c   :  { %3154 = vmatpush1.bf16.msra.mxu0 %v6706_v53  ;;  %3227 = vmatpush1.bf16.msra.mxu1 %v6709_v57 }
 0x71d   :  { %3155 = vmatprep.subr.bf16.mxu0 %v6714_v58  ;;  %3228 = vmatprep.subr.bf16.mxu1 %v6717_v59 }
 0x720   :  { %3156 = vmatpush1.bf16.msra.mxu0 %v6712_v60  ;;  %3229 = vmatpush1.bf16.msra.mxu1 %v6715_v61 }
 0x721   :  { %3157 = vmatprep.subr.bf16.mxu0 %v6720_v62  ;;  %3230 = vmatprep.subr.bf16.mxu1 %v6723_v63 }
 0x724   :  { %3158 = vmatpush1.bf16.msra.mxu0 %v6718_v1  ;;  %3231 = vmatpush1.bf16.msra.mxu1 %v6721_v2 }
 0x725   :  { %3522 = vmatprep.subr.bf16.mxu0 %v7775_v27  ;;  %3563 = vmatprep.subr.bf16.mxu1 %v7777_v0 }
 0x727   :  { %3176 = vmatmul.mubr.bf16.vlgmr.msra.gmra.mxu0 %v2925_v3  ;;  %3249 = vmatmul.mubr.bf16.vlgmr.msra.gmra.mxu1 %v2925_v3 }
 0x728   :  { %3185 = vmatprep.mubr.bf16.mxu0 %v8485_v24  ;;  %3258 = vmatprep.mubr.bf16.mxu1 %v8485_v24 }
 0x729   :  { %3523 = vmatpush1.bf16.msra.mxu0 %v7779_v35  ;;  %3564 = vmatpush1.bf16.msra.mxu1 %v7781_v13 }
 0x72a   :  { %3524 = vmatprep.subr.bf16.mxu0 %v7787_v40  ;;  %3565 = vmatprep.subr.bf16.mxu1 %v7789_v39 }
 0x72d   :  { %3525 = vmatpush1.bf16.msra.mxu0 %v7791_v9  ;;  %3566 = vmatpush1.bf16.msra.mxu1 %v7793_v10 }
 0x72e   :  { %3526 = vmatprep.subr.bf16.mxu0 %v7801_v42  ;;  %3567 = vmatprep.subr.bf16.mxu1 %v7805_v38 }
 0x72f   :  { %3186 = vmatmul.mubr.bf16.gmra.mxu0 %v2926_v5  ;;  %3259 = vmatmul.mubr.bf16.gmra.mxu1 %v2926_v5 }
 0x730   :  { %3195 = vmatprep.mubr.bf16.mxu0 %v8485_v24  ;;  %3268 = vmatprep.mubr.bf16.mxu1 %v8485_v24 }
 0x731   :  { %3527 = vmatpush1.bf16.msra.mxu0 %v7799_v34  ;;  %3568 = vmatpush1.bf16.msra.mxu1 %v7803_v16 }
 0x732   :  { %3528 = vmatprep.subr.bf16.mxu0 %v7811_v36  ;;  %3569 = vmatprep.subr.bf16.mxu1 %v7813_v45 }
 0x735   :  { %3529 = vmatpush1.bf16.msra.mxu0 %v7815_v48  ;;  %3570 = vmatpush1.bf16.msra.mxu1 %v7817_v50 }
 0x736   :  { %3530 = vmatprep.subr.bf16.mxu0 %v7823_v54  ;;  %3571 = vmatprep.subr.bf16.mxu1 %v7825_v28 }
 0x737   :  { %3196 = vmatmul.mubr.bf16.gmra.mxu0 %v2927_v6  ;;  %3269 = vmatmul.mubr.bf16.gmra.mxu1 %v2927_v6 }
 0x738   :  { %3205 = vmatprep.mubr.bf16.mxu0 %v8485_v24  ;;  %3278 = vmatprep.mubr.bf16.mxu1 %v8485_v24 }
 0x739   :  { %3531 = vmatpush1.bf16.msra.mxu0 %v7827_v51  ;;  %3572 = vmatpush1.bf16.msra.mxu1 %v7829_v33 }
 0x73a   :  { %3532 = vmatprep.subr.bf16.mxu0 %v7835_v49  ;;  %3573 = vmatprep.subr.bf16.mxu1 %v7837_v37 }
 0x73d   :  { %3533 = vmatpush1.bf16.msra.mxu0 %v7839_v52  ;;  %3574 = vmatpush1.bf16.msra.mxu1 %v7841_v41 }
 0x73e   :  { %3534 = vmatprep.subr.bf16.mxu0 %v7847_v7  ;;  %3575 = vmatprep.subr.bf16.mxu1 %v7849_v12 }
 0x741   :  { %3535 = vmatpush1.bf16.msra.mxu0 %v7851_v11  ;;  %3576 = vmatpush1.bf16.msra.mxu1 %v7853_v17 }
 0x742   :  { %3536 = vmatprep.subr.bf16.mxu0 %v7859_v14  ;;  %3577 = vmatprep.subr.bf16.mxu1 %v7861_v18 }
 0x745   :  { %3537 = vmatpush1.bf16.msra.mxu0 %v7863_v21  ;;  %3578 = vmatpush1.bf16.msra.mxu1 %v7865_v56 }
 0x746   :  { %3821 = vmatprep.subr.bf16.mxu0 %v7775_v27  ;;  %3862 = vmatprep.subr.bf16.mxu1 %v7777_v0 }
 0x7c7   :  { %v2847_v44 = vpop.f32.mrf.mxu0  ;;  %v2888_v43 = vpop.f32.mrf.mxu1 }
 0x7c8   :  { %v2895_v19 = vadd.f32 %v2847_v44, %v8498_v22  ;;  %v2897_v29 = vadd.f32 %v2888_v43, %v7409_v20 }
 0x7c9   :  { %v2849_v25 = vpop.f32.mrf.mxu0  ;;  %v2890_v26 = vpop.f32.mrf.mxu1 }
 0x7ca   :  { %6898 = vtanh.f32 %v2895_v19  ;;  %v2896_v47 = vadd.f32 %v2849_v25, %v8499_v30  ;;  %v2898_v31 = vadd.f32 %v2890_v26, %v7411_v15 }
 0x7cb   :  { %v2851_v46 = vpop.f32.mrf.mxu0  ;;  %v2892_v4 = vpop.f32.mrf.mxu1 }
 0x7cc   :  { %6900 = vtanh.f32 %v2896_v47 }
 0x7cd   :  { %v2852_v32 = vpop.f32.mrf.mxu0  ;;  %v2893_v55 = vpop.f32.mrf.mxu1  ;;  %6902 = vtanh.f32 %v2897_v29 }
 0x7ce   :  { %6904 = vtanh.f32 %v2898_v31 }
 0x7d7   :  { %v6899_v53 = vpop.eup %6898 }
 0x7d8   :  { %v2903_v57 = vmul.f32 0.5, %v6899_v53 }
 0x7d9   :  { %v6901_v58 = vpop.eup %6900 }
 0x7da   :  { %v2904_v59 = vadd.f32 0.5, %v2903_v57  ;;  %v2905_v60 = vmul.f32 0.5, %v6901_v58  ;;  %v6903_v61 = vpop.eup %6902 }
 0x7db   :  { %v6905_v2 = vpop.eup %6904 }
 0x7dc   :  { %v2906_v62 = vadd.f32 0.5, %v2905_v60  ;;  %v2910_v63 = vmul.f32 %v6903_v61, %v2904_v59  ;;  %v2907_v3 = vmul.f32 0.5, %v6905_v2 }
 0x7de   :  { %v2909_v20 = vmul.f32 %v2906_v62, %v7754_v23  ;;  %v2908_v15 = vadd.f32 0.5, %v2907_v3  ;;  %v6216_v23 = vld [vmem:[%s8455_s7 + $0x8] sm:$0xff]  ;;  %v2961_v3 = vld [vmem:[%s8454_s6] sm:$0xf] }
 0x7df   :  { %v3329_v43 = vpack.c.bf16 %v6216_v23, %v6216_v23  ;;  %v8519_v23 = vld [vmem:[#allocation14_spill] sm:$0xff] }
 0x7e0   :  { %v2911_v1 = vadd.f32 %v2910_v63, %v2909_v20 }
 0x7e2   :  { %6906 = vtanh.f32 %v2911_v1  ;;  %2916 = vst [vmem:[%s8461_s13] sm:$0xff] %v2911_v1 }
 0x7e7   :  { %v3250_v22 = vpop.f32.mrf.mxu1 }
 0x7e9   :  { %v3252_v25 = vpop.f32.mrf.mxu1 }
 0x7eb   :  { %v7926_v29 = vpop.f32.mrf.mxu1 }
 0x7ed   :  { %v7930_v47 = vpop.f32.mrf.mxu1 }
 0x7ef   :  { %v6907_v5 = vpop.eup %6906  ;;  %v7934_v4 = vpop.f32.mrf.mxu1 }
 0x7f0   :  { %v2913_v6 = vmul.f32 %v6907_v5, %v2908_v15  ;;  %8500 = vst [vmem:[#allocation25_spill] sm:$0xff] %v7934_v4 }
 0x7f1   :  { %v7938_v55 = vpop.f32.mrf.mxu1 }
 0x7f2   :  { %2915 = vst [vmem:[%s8460_s12] sm:$0xff] %v2913_v6  ;;  %v2928_v44 = vpack.c.bf16 %v2913_v6, %v7757_v8  ;;  %v3177_v8 = vpop.f32.mrf.mxu0  ;;  %8502 = vst [vmem:[#allocation16_spill] sm:$0xff] %v7938_v55 }
 0x7f3   :  { %v7942_v53 = vpop.f32.mrf.mxu1 }
 0x7f4   :  { %3206 = vmatmul.mubr.bf16.gmra.mxu0 %v2928_v44  ;;  %3279 = vmatmul.mubr.bf16.gmra.mxu1 %v2928_v44  ;;  %v3179_v19 = vpop.f32.mrf.mxu0  ;;  %8504 = vst [vmem:[#allocation17_spill] sm:$0xff] %v7942_v53 }
 0x7f5   :  { %3554 = vmatprep.mubr.bf16.mxu0 %v8485_v24  ;;  %3595 = vmatprep.mubr.bf16.mxu1 %v8485_v24  ;;  %v7946_v58 = vpop.f32.mrf.mxu1 }
 0x7f6   :  { %v7924_v26 = vpop.f32.mrf.mxu0  ;;  %8506 = vst [vmem:[#allocation19_spill] sm:$0xff] %v7946_v58 }
 0x7f7   :  { %v7950_v60 = vpop.f32.mrf.mxu1 }
 0x7f8   :  { %v7928_v30 = vpop.f32.mrf.mxu0  ;;  %8508 = vst [vmem:[#allocation21_spill] sm:$0xff] %v7950_v60 }
 0x7f9   :  { %v7954_v62 = vpop.f32.mrf.mxu1 }
 0x7fa   :  { %v7932_v46 = vpop.f32.mrf.mxu0  ;;  %8510 = vst [vmem:[#allocation22_spill] sm:$0xff] %v7954_v62 }
 0x7fb   :  { %v7958_v20 = vpop.f32.mrf.mxu1 }
 0x7fc   :  { %3555 = vmatmul.mubr.bf16.vlgmr.msra.gmra.mxu0 %v3329_v43  ;;  %3596 = vmatmul.mubr.bf16.vlgmr.msra.gmra.mxu1 %v3329_v43  ;;  %v7936_v32 = vpop.f32.mrf.mxu0  ;;  %8512 = vst [vmem:[#allocation23_spill] sm:$0xff] %v7958_v20  ;;  %v8520_v43 = vsub.s32 0, %v8519_v23 }
 0x7fd   :  { %3822 = vmatpush1.bf16.msra.mxu0 %v7779_v35  ;;  %3863 = vmatpush1.bf16.msra.mxu1 %v7781_v13  ;;  %8501 = vst [vmem:[#allocation15_spill] sm:$0xff] %v7936_v32  ;;  %v7962_v2 = vpop.f32.mrf.mxu1 }
 0x7fe   :  { %3823 = vmatprep.subr.bf16.mxu0 %v7787_v40  ;;  %3864 = vmatprep.subr.bf16.mxu1 %v7789_v39  ;;  %v7940_v31 = vpop.f32.mrf.mxu0  ;;  %8514 = vst [vmem:[#allocation29_spill] sm:$0xff] %v7962_v2  ;;  %v8523_v2 = vsub.s32 1, %v8519_v23 }
 0x7ff   :  { %3853 = vmatprep.mubr.bf16.mxu0 %v8485_v24  ;;  %3894 = vmatprep.mubr.bf16.mxu1 %v8485_v24  ;;  %8503 = vst [vmem:[#allocation26_spill] sm:$0xff] %v7940_v31 }
 0x800   :  { %v7944_v57 = vpop.f32.mrf.mxu0  ;;  %v7985_v62 = vrot.slane %v2961_v3, %v8523_v2 }
 0x801   :  { %3824 = vmatpush1.bf16.msra.mxu0 %v7791_v9  ;;  %3865 = vmatpush1.bf16.msra.mxu1 %v7793_v10  ;;  %8505 = vst [vmem:[#allocation18_spill] sm:$0xff] %v7944_v57 }
 0x802   :  { %3825 = vmatprep.subr.bf16.mxu0 %v7801_v42  ;;  %3866 = vmatprep.subr.bf16.mxu1 %v7805_v38  ;;  %v7948_v59 = vpop.f32.mrf.mxu0 }
 0x803   :  { %8507 = vst [vmem:[#allocation20_spill] sm:$0xff] %v7948_v59 }
 0x804   :  { %v7952_v61 = vpop.f32.mrf.mxu0 }
 0x805   :  { %3826 = vmatpush1.bf16.msra.mxu0 %v7799_v34  ;;  %3867 = vmatpush1.bf16.msra.mxu1 %v7803_v16  ;;  %8509 = vst [vmem:[#allocation27_spill] sm:$0xff] %v7952_v61 }
 0x806   :  { %3827 = vmatprep.subr.bf16.mxu0 %v7811_v36  ;;  %3868 = vmatprep.subr.bf16.mxu1 %v7813_v45  ;;  %v7956_v63 = vpop.f32.mrf.mxu0 }
 0x807   :  { %8511 = vst [vmem:[#allocation28_spill] sm:$0xff] %v7956_v63  ;;  %v7977_v63 = vrot.slane %v2961_v3, %v8520_v43 }
 0x808   :  { %v7960_v1 = vpop.f32.mrf.mxu0 }
 0x809   :  { %3828 = vmatpush1.bf16.msra.mxu0 %v7815_v48  ;;  %3869 = vmatpush1.bf16.msra.mxu1 %v7817_v50  ;;  %8513 = vst [vmem:[#allocation24_spill] sm:$0xff] %v7960_v1 }
 0x80a   :  { %3829 = vmatprep.subr.bf16.mxu0 %v7823_v54  ;;  %3870 = vmatprep.subr.bf16.mxu1 %v7825_v28 }
 0x80d   :  { %3830 = vmatpush1.bf16.msra.mxu0 %v7827_v51  ;;  %3871 = vmatpush1.bf16.msra.mxu1 %v7829_v33 }
 0x80e   :  { %3831 = vmatprep.subr.bf16.mxu0 %v7835_v49  ;;  %3872 = vmatprep.subr.bf16.mxu1 %v7837_v37 }
 0x811   :  { %3832 = vmatpush1.bf16.msra.mxu0 %v7839_v52  ;;  %3873 = vmatpush1.bf16.msra.mxu1 %v7841_v41 }
 0x812   :  { %3833 = vmatprep.subr.bf16.mxu0 %v7847_v7  ;;  %3874 = vmatprep.subr.bf16.mxu1 %v7849_v12 }
 0x815   :  { %3834 = vmatpush1.bf16.msra.mxu0 %v7851_v11  ;;  %3875 = vmatpush1.bf16.msra.mxu1 %v7853_v17 }
 0x816   :  { %3835 = vmatprep.subr.bf16.mxu0 %v7859_v14  ;;  %3876 = vmatprep.subr.bf16.mxu1 %v7861_v18 }
 0x819   :  { %3836 = vmatpush1.bf16.msra.mxu0 %v7863_v21  ;;  %3877 = vmatpush1.bf16.msra.mxu1 %v7865_v56 }
 0x81a   :  { %4120 = vmatprep.subr.bf16.mxu0 %v7775_v27  ;;  %4161 = vmatprep.subr.bf16.mxu1 %v7777_v0 }
 0x8b4   :  { %v7967_v15 = vpop.f32.mrf.mxu0  ;;  %v7969_v5 = vpop.f32.mrf.mxu1 }
 0x8b5   :  { %8515 = vst [vmem:[#allocation30_spill] sm:$0xff] %v7967_v15  ;;  %8516 = vst [vmem:[#allocation31_spill] sm:$0xff] %v7969_v5 }
 0x8b6   :  { %v7971_v6 = vpop.f32.mrf.mxu0  ;;  %v7973_v44 = vpop.f32.mrf.mxu1 }
 0x8b7   :  { %8517 = vst [vmem:[#allocation32_spill] sm:$0xff] %v7971_v6  ;;  %8518 = vst [vmem:[#allocation33_spill] sm:$0xff] %v7973_v44  ;;  %v3178_v6 = vadd.f32 %v3177_v8, %v7977_v63  ;;  %v8526_v44 = vsub.s32 2, %v8519_v23 }
 0x8b8   :  { %v7979_v20 = vpop.f32.mrf.mxu0  ;;  %v7981_v1 = vpop.f32.mrf.mxu1 }
 0x8b9   :  { %8521 = vst [vmem:[#allocation14_spill] sm:$0xff] %v7979_v20  ;;  %8522 = vst [vmem:[#allocation34_spill] sm:$0xff] %v7981_v1  ;;  %v7994_v5 = vrot.slane %v2961_v3, %v8526_v44  ;;  %v3180_v20 = vadd.f32 %v3179_v19, %v7985_v62  ;;  %v8527_v44 = vsub.s32 3, %v8519_v23 }
 0x8ba   :  { %v7987_v61 = vpop.f32.mrf.mxu0  ;;  %v7989_v15 = vpop.f32.mrf.mxu1 }
 0x8bb   :  { %8524 = vst [vmem:[#allocation35_spill] sm:$0xff] %v7987_v61  ;;  %8525 = vst [vmem:[#allocation36_spill] sm:$0xff] %v7989_v15  ;;  %v3251_v2 = vadd.f32 %v3250_v22, %v7994_v5  ;;  %v8000_v55 = vrot.slane %v2961_v3, %v8527_v44  ;;  %v3184_v44 = vadd.f32 %v7928_v30, %v7985_v62 }
 0x8bc   :  { %v3556_v43 = vpop.f32.mrf.mxu0  ;;  %v3597_v60 = vpop.f32.mrf.mxu1 }
 0x8bd   :  { %v3604_v59 = vadd.f32 %v3556_v43, %v3178_v6  ;;  %v3606_v15 = vadd.f32 %v3597_v60, %v3251_v2  ;;  %v3253_v19 = vadd.f32 %v3252_v25, %v8000_v55 }
 0x8be   :  { %v3558_v1 = vpop.f32.mrf.mxu0  ;;  %v3599_v58 = vpop.f32.mrf.mxu1 }
 0x8bf   :  { %6908 = vtanh.f32 %v3604_v59  ;;  %v3605_v57 = vadd.f32 %v3558_v1, %v3180_v20  ;;  %v3607_v6 = vadd.f32 %v3599_v58, %v3253_v19 }
 0x8c0   :  { %v3560_v61 = vpop.f32.mrf.mxu0  ;;  %v3601_v53 = vpop.f32.mrf.mxu1 }
 0x8c1   :  { %6910 = vtanh.f32 %v3605_v57  ;;  %v6217_v53 = vld [vmem:[%s8456_s8 + $0x8] sm:$0xff] }
 0x8c2   :  { %v3561_v8 = vpop.f32.mrf.mxu0  ;;  %v3602_v31 = vpop.f32.mrf.mxu1  ;;  %6912 = vtanh.f32 %v3606_v15 }
 0x8c3   :  { %6914 = vtanh.f32 %v3607_v6  ;;  %v3255_v8 = vadd.f32 %v7926_v29, %v7994_v5 }
 0x8cc   :  { %v6909_v43 = vpop.eup %6908 }
 0x8cd   :  { %v3612_v32 = vmul.f32 0.5, %v6909_v43 }
 0x8ce   :  { %v6911_v4 = vpop.eup %6910 }
 0x8cf   :  { %v3613_v22 = vadd.f32 0.5, %v3612_v32  ;;  %v3614_v59 = vmul.f32 0.5, %v6911_v4  ;;  %v6913_v31 = vpop.eup %6912  ;;  %v3182_v32 = vadd.f32 %v7924_v26, %v7977_v63  ;;  %v3257_v26 = vadd.f32 %v7930_v47, %v8000_v55 }
 0x8d0   :  { %v6915_v25 = vpop.eup %6914 }
 0x8d1   :  { %v3615_v57 = vadd.f32 0.5, %v3614_v59  ;;  %v3619_v61 = vmul.f32 %v6913_v31, %v3613_v22  ;;  %v3616_v58 = vmul.f32 0.5, %v6915_v25 }
 0x8d3   :  { %v3618_v60 = vmul.f32 %v6217_v53, %v3615_v57  ;;  %v3617_v1 = vadd.f32 0.5, %v3616_v58 }
 0x8d5   :  { %v8006_v20 = vadd.f32 %v3619_v61, %v3618_v60 }
 0x8d7   :  { %6916 = vtanh.f32 %v8006_v20 }
 0x8e4   :  { %v6917_v3 = vpop.eup %6916 }
 0x8e5   :  { %v8009_v15 = vmul.f32 %v6917_v3, %v3617_v1 }
 0x8e7   :  { %v3628_v4 = vpack.c.bf16 %v8009_v15, %v8009_v15 }
 0x8e9   :  { %3854 = vmatmul.mubr.bf16.vlgmr.msra.gmra.mxu0 %v3628_v4  ;;  %3895 = vmatmul.mubr.bf16.vlgmr.msra.gmra.mxu1 %v3628_v4 }
 0x8ea   :  { %4121 = vmatpush1.bf16.msra.mxu0 %v7779_v35  ;;  %4162 = vmatpush1.bf16.msra.mxu1 %v7781_v13 }
 0x8eb   :  { %4122 = vmatprep.subr.bf16.mxu0 %v7787_v40  ;;  %4163 = vmatprep.subr.bf16.mxu1 %v7789_v39 }
 0x8ec   :  { %4152 = vmatprep.mubr.bf16.mxu0 %v8485_v24  ;;  %4193 = vmatprep.mubr.bf16.mxu1 %v8485_v24 }
 0x8ee   :  { %4123 = vmatpush1.bf16.msra.mxu0 %v7791_v9  ;;  %4164 = vmatpush1.bf16.msra.mxu1 %v7793_v10 }
 0x8ef   :  { %4124 = vmatprep.subr.bf16.mxu0 %v7801_v42  ;;  %4165 = vmatprep.subr.bf16.mxu1 %v7805_v38 }
 0x8f2   :  { %4125 = vmatpush1.bf16.msra.mxu0 %v7799_v34  ;;  %4166 = vmatpush1.bf16.msra.mxu1 %v7803_v16 }
 0x8f3   :  { %4126 = vmatprep.subr.bf16.mxu0 %v7811_v36  ;;  %4167 = vmatprep.subr.bf16.mxu1 %v7813_v45 }
 0x8f6   :  { %4127 = vmatpush1.bf16.msra.mxu0 %v7815_v48  ;;  %4168 = vmatpush1.bf16.msra.mxu1 %v7817_v50 }
 0x8f7   :  { %4128 = vmatprep.subr.bf16.mxu0 %v7823_v54  ;;  %4169 = vmatprep.subr.bf16.mxu1 %v7825_v28 }
 0x8fa   :  { %4129 = vmatpush1.bf16.msra.mxu0 %v7827_v51  ;;  %4170 = vmatpush1.bf16.msra.mxu1 %v7829_v33 }
 0x8fb   :  { %4130 = vmatprep.subr.bf16.mxu0 %v7835_v49  ;;  %4171 = vmatprep.subr.bf16.mxu1 %v7837_v37 }
 0x8fe   :  { %4131 = vmatpush1.bf16.msra.mxu0 %v7839_v52  ;;  %4172 = vmatpush1.bf16.msra.mxu1 %v7841_v41 }
 0x8ff   :  { %4132 = vmatprep.subr.bf16.mxu0 %v7847_v7  ;;  %4173 = vmatprep.subr.bf16.mxu1 %v7849_v12 }
 0x902   :  { %4133 = vmatpush1.bf16.msra.mxu0 %v7851_v11  ;;  %4174 = vmatpush1.bf16.msra.mxu1 %v7853_v17 }
 0x903   :  { %4134 = vmatprep.subr.bf16.mxu0 %v7859_v14  ;;  %4175 = vmatprep.subr.bf16.mxu1 %v7861_v18 }
 0x906   :  { %4135 = vmatpush1.bf16.msra.mxu0 %v7863_v21  ;;  %4176 = vmatpush1.bf16.msra.mxu1 %v7865_v56 }
 0x907   :  { %4419 = vmatprep.subr.bf16.mxu0 %v7775_v27  ;;  %4460 = vmatprep.subr.bf16.mxu1 %v7777_v0 }
 0x9a9   :  { %v3855_v23 = vpop.f32.mrf.mxu0  ;;  %v3896_v2 = vpop.f32.mrf.mxu1 }
 0x9aa   :  { %v3903_v19 = vadd.f32 %v3855_v23, %v3182_v32  ;;  %v3905_v22 = vadd.f32 %v3896_v2, %v3255_v8 }
 0x9ab   :  { %v3857_v6 = vpop.f32.mrf.mxu0  ;;  %v3898_v43 = vpop.f32.mrf.mxu1 }
 0x9ac   :  { %6918 = vtanh.f32 %v3903_v19  ;;  %v3904_v59 = vadd.f32 %v3857_v6, %v3184_v44  ;;  %v3906_v31 = vadd.f32 %v3898_v43, %v3257_v26  ;;  %v8127_v26 = vld [vmem:[#allocation9 + $0xcc] ss:$16 sps:$4 sm:$0xff]  }
 0x9ad   :  { %v3859_v27 = vpop.f32.mrf.mxu0  ;;  %v3900_v53 = vpop.f32.mrf.mxu1 }
 0x9ae   :  { %6920 = vtanh.f32 %v3904_v59  ;;  %v8113_v59 = vld [vmem:[#allocation9 + $0xe4] ss:$16 sps:$4 sm:$0xff]   ;;  %v8115_v27 = vld [vmem:[#allocation9 + $0xec] ss:$16 sps:$4 sm:$0xff]   ;;  %v8117_v53 = vld [vmem:[#allocation9 + $0xe0] ss:$16 sps:$4 sm:$0xff]  }
 0x9af   :  { %v3860_v0 = vpop.f32.mrf.mxu0  ;;  %v3901_v57 = vpop.f32.mrf.mxu1  ;;  %6922 = vtanh.f32 %v3905_v22 }
 0x9b0   :  { %6924 = vtanh.f32 %v3906_v31  ;;  %v8119_v0 = vld [vmem:[#allocation9 + $0xe8] ss:$16 sps:$4 sm:$0xff]   ;;  %v8125_v57 = vld [vmem:[#allocation9 + $0xc4] ss:$16 sps:$4 sm:$0xff]   ;;  %v8129_v31 = vld [vmem:[#allocation9 + $0xc0] ss:$16 sps:$4 sm:$0xff]  }
 0x9b9   :  { %v6919_v29 = vpop.eup %6918 }
 0x9ba   :  { %v3911_v60 = vmul.f32 0.5, %v6919_v29  ;;  %v8131_v29 = vld [vmem:[#allocation9 + $0xc8] ss:$16 sps:$4 sm:$0xff]  }
 0x9bb   :  { %v6921_v61 = vpop.eup %6920 }
 0x9bc   :  { %v3912_v30 = vadd.f32 0.5, %v3911_v60  ;;  %v3913_v25 = vmul.f32 0.5, %v6921_v61  ;;  %v6923_v58 = vpop.eup %6922  ;;  %v8137_v60 = vld [vmem:[#allocation9 + $0xa4] ss:$16 sps:$4 sm:$0xff]   ;;  %v8139_v61 = vld [vmem:[#allocation9 + $0xac] ss:$16 sps:$4 sm:$0xff]  }
 0x9bd   :  { %v6925_v23 = vpop.eup %6924 }
 0x9be   :  { %v3914_v1 = vadd.f32 0.5, %v3913_v25  ;;  %v3918_v3 = vmul.f32 %v6923_v58, %v3912_v30  ;;  %v3915_v2 = vmul.f32 0.5, %v6925_v23  ;;  %v8141_v30 = vld [vmem:[#allocation9 + $0xa0] ss:$16 sps:$4 sm:$0xff]   ;;  %v8143_v25 = vld [vmem:[#allocation9 + $0xa8] ss:$16 sps:$4 sm:$0xff]  }
 0x9bf   :  { %v8149_v58 = vld [vmem:[#allocation9 + $0x84] ss:$16 sps:$4 sm:$0xff]   ;;  %v8163_v23 = vld [vmem:[#allocation9 + $0x6c] ss:$16 sps:$4 sm:$0xff]  }
 0x9c0   :  { %v3917_v4 = vmul.f32 %v3914_v1, %v8006_v20  ;;  %v3916_v8 = vadd.f32 0.5, %v3915_v2  ;;  %v8151_v1 = vld [vmem:[#allocation9 + $0x8c] ss:$16 sps:$4 sm:$0xff]   ;;  %v8165_v2 = vld [vmem:[#allocation9 + $0x60] ss:$16 sps:$4 sm:$0xff]  }
 0x9c2   :  { %v8056_v32 = vadd.f32 %v3918_v3, %v3917_v4  ;;  %v8153_v3 = vld [vmem:[#allocation9 + $0x80] ss:$16 sps:$4 sm:$0xff]   ;;  %v8155_v4 = vld [vmem:[#allocation9 + $0x88] ss:$16 sps:$4 sm:$0xff]  }
 0x9c4   :  { %6926 = vtanh.f32 %v8056_v32 }
 0x9d1   :  { %v6927_v47 = vpop.eup %6926 }
 0x9d2   :  { %v8059_v44 = vmul.f32 %v6927_v47, %v3916_v8  ;;  %v8167_v8 = vld [vmem:[#allocation9 + $0x68] ss:$16 sps:$4 sm:$0xff]   ;;  %v8173_v47 = vld [vmem:[#allocation9 + $0x44] ss:$16 sps:$4 sm:$0xff]  }
 0x9d4   :  { %v3927_v19 = vpack.c.bf16 %v8059_v44, %v8059_v44 }
 0x9d6   :  { %4153 = vmatmul.mubr.bf16.vlgmr.msra.gmra.mxu0 %v3927_v19  ;;  %4194 = vmatmul.mubr.bf16.vlgmr.msra.gmra.mxu1 %v3927_v19  ;;  %v8175_v19 = vld [vmem:[#allocation9 + $0x4c] ss:$16 sps:$4 sm:$0xff]  }
 0x9d7   :  { %4420 = vmatpush1.bf16.msra.mxu0 %v7779_v35  ;;  %4461 = vmatpush1.bf16.msra.mxu1 %v7781_v13  ;;  %v3188_v35 = vadd.f32 %v7932_v46, %v7977_v63 }
 0x9d8   :  { %4421 = vmatprep.subr.bf16.mxu0 %v7787_v40  ;;  %4462 = vmatprep.subr.bf16.mxu1 %v7789_v39  ;;  %v8528_v39 = vld [vmem:[#allocation25_spill] sm:$0xff] }
 0x9d9   :  { %4451 = vmatprep.mubr.bf16.mxu0 %v8485_v24  ;;  %4492 = vmatprep.mubr.bf16.mxu1 %v8485_v24 }
 0x9db   :  { %4422 = vmatpush1.bf16.msra.mxu0 %v7791_v9  ;;  %4463 = vmatpush1.bf16.msra.mxu1 %v7793_v10  ;;  %v3261_v9 = vadd.f32 %v8528_v39, %v7994_v5  ;;  %v8529_v10 = vld [vmem:[#allocation15_spill] sm:$0xff] }
 0x9dc   :  { %4423 = vmatprep.subr.bf16.mxu0 %v7801_v42  ;;  %4464 = vmatprep.subr.bf16.mxu1 %v7805_v38  ;;  %v8187_v39 = vld [vmem:[#allocation9 + $0x2c] ss:$16 sps:$4 sm:$0xff]  }
 0x9df   :  { %4424 = vmatpush1.bf16.msra.mxu0 %v7799_v34  ;;  %4465 = vmatpush1.bf16.msra.mxu1 %v7803_v16  ;;  %v3190_v34 = vadd.f32 %v8529_v10, %v7985_v62  ;;  %v8191_v10 = vld [vmem:[#allocation9 + $0x28] ss:$16 sps:$4 sm:$0xff]  }
 0x9e0   :  { %4425 = vmatprep.subr.bf16.mxu0 %v7811_v36  ;;  %4466 = vmatprep.subr.bf16.mxu1 %v7813_v45 }
 0x9e3   :  { %4426 = vmatpush1.bf16.msra.mxu0 %v7815_v48  ;;  %4467 = vmatpush1.bf16.msra.mxu1 %v7817_v50 }
 0x9e4   :  { %4427 = vmatprep.subr.bf16.mxu0 %v7823_v54  ;;  %4468 = vmatprep.subr.bf16.mxu1 %v7825_v28 }
 0x9e7   :  { %4428 = vmatpush1.bf16.msra.mxu0 %v7827_v51  ;;  %4469 = vmatpush1.bf16.msra.mxu1 %v7829_v33  ;;  %v8530_v51 = vld [vmem:[#allocation16_spill] sm:$0xff] }
 0x9e8   :  { %4429 = vmatprep.subr.bf16.mxu0 %v7835_v49  ;;  %4470 = vmatprep.subr.bf16.mxu1 %v7837_v37  ;;  %v3263_v33 = vadd.f32 %v8530_v51, %v8000_v55  ;;  %v8533_v51 = vld [vmem:[#allocation18_spill] sm:$0xff] }
 0x9eb   :  { %4430 = vmatpush1.bf16.msra.mxu0 %v7839_v52  ;;  %4471 = vmatpush1.bf16.msra.mxu1 %v7841_v41 }
 0x9ec   :  { %4431 = vmatprep.subr.bf16.mxu0 %v7847_v7  ;;  %4472 = vmatprep.subr.bf16.mxu1 %v7849_v12 }
 0x9ef   :  { %4432 = vmatpush1.bf16.msra.mxu0 %v7851_v11  ;;  %4473 = vmatpush1.bf16.msra.mxu1 %v7853_v17 }
 0x9f0   :  { %4433 = vmatprep.subr.bf16.mxu0 %v7859_v14  ;;  %4474 = vmatprep.subr.bf16.mxu1 %v7861_v18 }
 0x9f3   :  { %4434 = vmatpush1.bf16.msra.mxu0 %v7863_v21  ;;  %4475 = vmatpush1.bf16.msra.mxu1 %v7865_v56 }
 0x9f4   :  { %4718 = vmatprep.subr.bf16.mxu0 %v8113_v59  ;;  %4759 = vmatprep.subr.bf16.mxu1 %v8115_v27 }
 0xa96   :  { %v4154_v13 = vpop.f32.mrf.mxu0  ;;  %v4195_v40 = vpop.f32.mrf.mxu1 }
 0xa97   :  { %v4202_v42 = vadd.f32 %v4154_v13, %v3188_v35  ;;  %v4204_v36 = vadd.f32 %v4195_v40, %v3261_v9  ;;  %v8177_v35 = vld [vmem:[#allocation9 + $0x40] ss:$16 sps:$4 sm:$0xff]   ;;  %v8179_v13 = vld [vmem:[#allocation9 + $0x48] ss:$16 sps:$4 sm:$0xff]   ;;  %v8185_v40 = vld [vmem:[#allocation9 + $0x24] ss:$16 sps:$4 sm:$0xff]  }
 0xa98   :  { %v4156_v16 = vpop.f32.mrf.mxu0  ;;  %v4197_v38 = vpop.f32.mrf.mxu1  ;;  %v8189_v9 = vld [vmem:[#allocation9 + $0x20] ss:$16 sps:$4 sm:$0xff]  }
 0xa99   :  { %6928 = vtanh.f32 %v4202_v42  ;;  %v4203_v45 = vadd.f32 %v4156_v16, %v3190_v34  ;;  %v4205_v49 = vadd.f32 %v4197_v38, %v3263_v33  ;;  %v8197_v34 = vld [vmem:[#allocation9 + $0x4] ss:$16 sps:$4 sm:$0xff]   ;;  %v8199_v42 = vld [vmem:[#allocation9 + $0xc] ss:$16 sps:$4 sm:$0xff]   ;;  %v8201_v16 = vld [vmem:[#allocation9] ss:$16 sps:$4 sm:$0xff]   ;;  %v3194_v33 = vadd.f32 %v8533_v51, %v7985_v62 }
 0xa9a   :  { %v4158_v48 = vpop.f32.mrf.mxu0  ;;  %v4199_v50 = vpop.f32.mrf.mxu1  ;;  %v8203_v38 = vld [vmem:[#allocation9 + $0x8] ss:$16 sps:$4 sm:$0xff]  }
 0xa9b   :  { %6930 = vtanh.f32 %v4203_v45 }
 0xa9c   :  { %v4159_v54 = vpop.f32.mrf.mxu0  ;;  %v4200_v28 = vpop.f32.mrf.mxu1  ;;  %6932 = vtanh.f32 %v4204_v36  ;;  %v8531_v36 = vld [vmem:[#allocation26_spill] sm:$0xff] }
 0xa9d   :  { %6934 = vtanh.f32 %v4205_v49  ;;  %v3192_v45 = vadd.f32 %v8531_v36, %v7977_v63  ;;  %v8532_v54 = vld [vmem:[#allocation17_spill] sm:$0xff] }
 0xa9e   :  { %v3265_v28 = vadd.f32 %v8532_v54, %v7994_v5 }
 0xaa6   :  { %v6929_v37 = vpop.eup %6928 }
 0xaa7   :  { %v4210_v52 = vmul.f32 0.5, %v6929_v37 }
 0xaa8   :  { %v6931_v41 = vpop.eup %6930 }
 0xaa9   :  { %v4211_v7 = vadd.f32 0.5, %v4210_v52  ;;  %v4212_v12 = vmul.f32 0.5, %v6931_v41  ;;  %v6933_v11 = vpop.eup %6932 }
 0xaaa   :  { %v6935_v56 = vpop.eup %6934 }
 0xaab   :  { %v4213_v17 = vadd.f32 0.5, %v4212_v12  ;;  %v4217_v14 = vmul.f32 %v6933_v11, %v4211_v7  ;;  %v4214_v46 = vmul.f32 0.5, %v6935_v56 }
 0xaad   :  { %v4216_v18 = vmul.f32 %v4213_v17, %v8056_v32  ;;  %v4215_v20 = vadd.f32 0.5, %v4214_v46  ;;  %v8161_v32 = vld [vmem:[#allocation9 + $0x64] ss:$16 sps:$4 sm:$0xff]  }
 0xaaf   :  { %v8104_v21 = vadd.f32 %v4217_v14, %v4216_v18  ;;  %v8534_v18 = vld [vmem:[#allocation19_spill] sm:$0xff] }
 0xab0   :  { %v3267_v56 = vadd.f32 %v8534_v18, %v8000_v55 }
 0xab1   :  { %6936 = vtanh.f32 %v8104_v21 }
 0xabe   :  { %v6937_v6 = vpop.eup %6936 }
 0xabf   :  { %v8107_v43 = vmul.f32 %v6937_v6, %v4215_v20 }
 0xac1   :  { %v4226_v22 = vpack.c.bf16 %v8107_v43, %v8107_v43 }
 0xac3   :  { %4452 = vmatmul.mubr.bf16.vlgmr.msra.gmra.mxu0 %v4226_v22  ;;  %4493 = vmatmul.mubr.bf16.vlgmr.msra.gmra.mxu1 %v4226_v22 }
 0xac4   :  { %4750 = vmatprep.mubr.bf16.mxu0 %v8485_v24  ;;  %4791 = vmatprep.mubr.bf16.mxu1 %v8485_v24 }
 0xac5   :  { %4719 = vmatpush1.bf16.msra.mxu0 %v8117_v53  ;;  %4760 = vmatpush1.bf16.msra.mxu1 %v8119_v0 }
 0xac6   :  { %4720 = vmatprep.subr.bf16.mxu0 %v8125_v57  ;;  %4761 = vmatprep.subr.bf16.mxu1 %v8127_v26 }
 0xac9   :  { %4721 = vmatpush1.bf16.msra.mxu0 %v8129_v31  ;;  %4762 = vmatpush1.bf16.msra.mxu1 %v8131_v29 }
 0xaca   :  { %4722 = vmatprep.subr.bf16.mxu0 %v8137_v60  ;;  %4763 = vmatprep.subr.bf16.mxu1 %v8139_v61 }
 0xacd   :  { %4723 = vmatpush1.bf16.msra.mxu0 %v8141_v30  ;;  %4764 = vmatpush1.bf16.msra.mxu1 %v8143_v25 }
 0xace   :  { %4724 = vmatprep.subr.bf16.mxu0 %v8149_v58  ;;  %4765 = vmatprep.subr.bf16.mxu1 %v8151_v1 }
 0xad1   :  { %4725 = vmatpush1.bf16.msra.mxu0 %v8153_v3  ;;  %4766 = vmatpush1.bf16.msra.mxu1 %v8155_v4 }
 0xad2   :  { %4726 = vmatprep.subr.bf16.mxu0 %v8161_v32  ;;  %4767 = vmatprep.subr.bf16.mxu1 %v8163_v23 }
 0xad5   :  { %4727 = vmatpush1.bf16.msra.mxu0 %v8165_v2  ;;  %4768 = vmatpush1.bf16.msra.mxu1 %v8167_v8 }
 0xad6   :  { %4728 = vmatprep.subr.bf16.mxu0 %v8173_v47  ;;  %4769 = vmatprep.subr.bf16.mxu1 %v8175_v19 }
 0xad9   :  { %4729 = vmatpush1.bf16.msra.mxu0 %v8177_v35  ;;  %4770 = vmatpush1.bf16.msra.mxu1 %v8179_v13 }
 0xada   :  { %4730 = vmatprep.subr.bf16.mxu0 %v8185_v40  ;;  %4771 = vmatprep.subr.bf16.mxu1 %v8187_v39 }
 0xadd   :  { %4731 = vmatpush1.bf16.msra.mxu0 %v8189_v9  ;;  %4772 = vmatpush1.bf16.msra.mxu1 %v8191_v10 }
 0xade   :  { %4732 = vmatprep.subr.bf16.mxu0 %v8197_v34  ;;  %4773 = vmatprep.subr.bf16.mxu1 %v8199_v42 }
 0xae1   :  { %4733 = vmatpush1.bf16.msra.mxu0 %v8201_v16  ;;  %4774 = vmatpush1.bf16.msra.mxu1 %v8203_v38 }
 0xae2   :  { %5017 = vmatprep.subr.bf16.mxu0 %v8113_v59  ;;  %5058 = vmatprep.subr.bf16.mxu1 %v8115_v27 }
 0xb83   :  { %v4453_v48 = vpop.f32.mrf.mxu0  ;;  %v4494_v50 = vpop.f32.mrf.mxu1 }
 0xb84   :  { %v4501_v49 = vadd.f32 %v4453_v48, %v3192_v45  ;;  %v4503_v41 = vadd.f32 %v4494_v50, %v3265_v28 }
 0xb85   :  { %v4455_v37 = vpop.f32.mrf.mxu0  ;;  %v4496_v52 = vpop.f32.mrf.mxu1 }
 0xb86   :  { %6938 = vtanh.f32 %v4501_v49  ;;  %v4502_v7 = vadd.f32 %v4455_v37, %v3194_v33  ;;  %v4504_v46 = vadd.f32 %v4496_v52, %v3267_v56  ;;  %v8537_v56 = vld [vmem:[#allocation27_spill] sm:$0xff] }
 0xb87   :  { %v4457_v12 = vpop.f32.mrf.mxu0  ;;  %v4498_v11 = vpop.f32.mrf.mxu1 }
 0xb88   :  { %6940 = vtanh.f32 %v4502_v7 }
 0xb89   :  { %v4458_v17 = vpop.f32.mrf.mxu0  ;;  %v4499_v14 = vpop.f32.mrf.mxu1  ;;  %6942 = vtanh.f32 %v4503_v41 }
 0xb8a   :  { %6944 = vtanh.f32 %v4504_v46  ;;  %v8536_v14 = vld [vmem:[#allocation21_spill] sm:$0xff]  ;;  %v3200_v46 = vadd.f32 %v8537_v56, %v7985_v62 }
 0xb8b   :  { %v3271_v18 = vadd.f32 %v8536_v14, %v7994_v5 }
 0xb93   :  { %v6939_v20 = vpop.eup %6938 }
 0xb94   :  { %v4509_v6 = vmul.f32 0.5, %v6939_v20 }
 0xb95   :  { %v6941_v22 = vpop.eup %6940 }
 0xb96   :  { %v4510_v36 = vadd.f32 0.5, %v4509_v6  ;;  %v4511_v45 = vmul.f32 0.5, %v6941_v22  ;;  %v6943_v48 = vpop.eup %6942 }
 0xb97   :  { %v6945_v33 = vpop.eup %6944 }
 0xb98   :  { %v4512_v54 = vadd.f32 0.5, %v4511_v45  ;;  %v4516_v50 = vmul.f32 %v6943_v48, %v4510_v36  ;;  %v4513_v49 = vmul.f32 0.5, %v6945_v33  ;;  %v8538_v33 = vld [vmem:[#allocation22_spill] sm:$0xff] }
 0xb9a   :  { %v4515_v28 = vmul.f32 %v4512_v54, %v8104_v21  ;;  %v4514_v37 = vadd.f32 0.5, %v4513_v49  ;;  %v8535_v21 = vld [vmem:[#allocation20_spill] sm:$0xff]  ;;  %v3273_v49 = vadd.f32 %v8538_v33, %v8000_v55  ;;  %v8540_v33 = vld [vmem:[#allocation23_spill] sm:$0xff] }
 0xb9b   :  { %v3198_v12 = vadd.f32 %v8535_v21, %v7977_v63 }
 0xb9c   :  { %v8220_v51 = vadd.f32 %v4516_v50, %v4515_v28 }
 0xb9e   :  { %6946 = vtanh.f32 %v8220_v51 }
 0xbab   :  { %v6947_v41 = vpop.eup %6946 }
 0xbac   :  { %v8223_v52 = vmul.f32 %v6947_v41, %v4514_v37 }
 0xbae   :  { %v4525_v7 = vpack.c.bf16 %v8223_v52, %v8223_v52 }
 0xbb0   :  { %4751 = vmatmul.mubr.bf16.vlgmr.msra.gmra.mxu0 %v4525_v7  ;;  %4792 = vmatmul.mubr.bf16.vlgmr.msra.gmra.mxu1 %v4525_v7 }
 0xbb1   :  { %5018 = vmatpush1.bf16.msra.mxu0 %v8117_v53  ;;  %5059 = vmatpush1.bf16.msra.mxu1 %v8119_v0 }
 0xbb2   :  { %5019 = vmatprep.subr.bf16.mxu0 %v8125_v57  ;;  %5060 = vmatprep.subr.bf16.mxu1 %v8127_v26 }
 0xbb3   :  { %5049 = vmatprep.mubr.bf16.mxu0 %v8485_v24  ;;  %5090 = vmatprep.mubr.bf16.mxu1 %v8485_v24 }
 0xbb5   :  { %5020 = vmatpush1.bf16.msra.mxu0 %v8129_v31  ;;  %5061 = vmatpush1.bf16.msra.mxu1 %v8131_v29 }
 0xbb6   :  { %5021 = vmatprep.subr.bf16.mxu0 %v8137_v60  ;;  %5062 = vmatprep.subr.bf16.mxu1 %v8139_v61 }
 0xbb9   :  { %5022 = vmatpush1.bf16.msra.mxu0 %v8141_v30  ;;  %5063 = vmatpush1.bf16.msra.mxu1 %v8143_v25 }
 0xbba   :  { %5023 = vmatprep.subr.bf16.mxu0 %v8149_v58  ;;  %5064 = vmatprep.subr.bf16.mxu1 %v8151_v1 }
 0xbbd   :  { %5024 = vmatpush1.bf16.msra.mxu0 %v8153_v3  ;;  %5065 = vmatpush1.bf16.msra.mxu1 %v8155_v4 }
 0xbbe   :  { %5025 = vmatprep.subr.bf16.mxu0 %v8161_v32  ;;  %5066 = vmatprep.subr.bf16.mxu1 %v8163_v23 }
 0xbc1   :  { %5026 = vmatpush1.bf16.msra.mxu0 %v8165_v2  ;;  %5067 = vmatpush1.bf16.msra.mxu1 %v8167_v8 }
 0xbc2   :  { %5027 = vmatprep.subr.bf16.mxu0 %v8173_v47  ;;  %5068 = vmatprep.subr.bf16.mxu1 %v8175_v19 }
 0xbc5   :  { %5028 = vmatpush1.bf16.msra.mxu0 %v8177_v35  ;;  %5069 = vmatpush1.bf16.msra.mxu1 %v8179_v13 }
 0xbc6   :  { %5029 = vmatprep.subr.bf16.mxu0 %v8185_v40  ;;  %5070 = vmatprep.subr.bf16.mxu1 %v8187_v39 }
 0xbc9   :  { %5030 = vmatpush1.bf16.msra.mxu0 %v8189_v9  ;;  %5071 = vmatpush1.bf16.msra.mxu1 %v8191_v10 }
 0xbca   :  { %5031 = vmatprep.subr.bf16.mxu0 %v8197_v34  ;;  %5072 = vmatprep.subr.bf16.mxu1 %v8199_v42 }
 0xbcd   :  { %5032 = vmatpush1.bf16.msra.mxu0 %v8201_v16  ;;  %5073 = vmatpush1.bf16.msra.mxu1 %v8203_v38 }
 0xbce   :  { %5316 = vmatprep.subr.bf16.mxu0 %v8113_v59  ;;  %5357 = vmatprep.subr.bf16.mxu1 %v8115_v27 }
 0xc70   :  { %v4752_v11 = vpop.f32.mrf.mxu0  ;;  %v4793_v17 = vpop.f32.mrf.mxu1 }
 0xc71   :  { %v4800_v20 = vadd.f32 %v4752_v11, %v3198_v12  ;;  %v4802_v36 = vadd.f32 %v4793_v17, %v3271_v18 }
 0xc72   :  { %v4754_v6 = vpop.f32.mrf.mxu0  ;;  %v4795_v22 = vpop.f32.mrf.mxu1 }
 0xc73   :  { %6948 = vtanh.f32 %v4800_v20  ;;  %v4801_v45 = vadd.f32 %v4754_v6, %v3200_v46  ;;  %v4803_v37 = vadd.f32 %v4795_v22, %v3273_v49  ;;  %v3275_v49 = vadd.f32 %v8540_v33, %v7994_v5 }
 0xc74   :  { %v4756_v48 = vpop.f32.mrf.mxu0  ;;  %v4797_v54 = vpop.f32.mrf.mxu1 }
 0xc75   :  { %6950 = vtanh.f32 %v4801_v45 }
 0xc76   :  { %v4757_v50 = vpop.f32.mrf.mxu0  ;;  %v4798_v28 = vpop.f32.mrf.mxu1  ;;  %6952 = vtanh.f32 %v4802_v36 }
 0xc77   :  { %6954 = vtanh.f32 %v4803_v37  ;;  %v8541_v37 = vld [vmem:[#allocation24_spill] sm:$0xff] }
 0xc80   :  { %v6949_v41 = vpop.eup %6948 }
 0xc81   :  { %v4808_v7 = vmul.f32 0.5, %v6949_v41  ;;  %v3204_v41 = vadd.f32 %v8541_v37, %v7985_v62 }
 0xc82   :  { %v6951_v21 = vpop.eup %6950 }
 0xc83   :  { %v4809_v14 = vadd.f32 0.5, %v4808_v7  ;;  %v4810_v12 = vmul.f32 0.5, %v6951_v21  ;;  %v6953_v11 = vpop.eup %6952 }
 0xc84   :  { %v6955_v20 = vpop.eup %6954 }
 0xc85   :  { %v4811_v56 = vadd.f32 0.5, %v4810_v12  ;;  %v4815_v17 = vmul.f32 %v6953_v11, %v4809_v14  ;;  %v4812_v6 = vmul.f32 0.5, %v6955_v20 }
 0xc87   :  { %v4814_v18 = vmul.f32 %v4811_v56, %v8220_v51  ;;  %v4813_v36 = vadd.f32 0.5, %v4812_v6  ;;  %v8539_v51 = vld [vmem:[#allocation28_spill] sm:$0xff] }
 0xc88   :  { %v3202_v54 = vadd.f32 %v8539_v51, %v7977_v63 }
 0xc89   :  { %v8270_v46 = vadd.f32 %v4815_v17, %v4814_v18  ;;  %v8542_v18 = vld [vmem:[#allocation29_spill] sm:$0xff] }
 0xc8a   :  { %v3277_v20 = vadd.f32 %v8542_v18, %v8000_v55 }
 0xc8b   :  { %6956 = vtanh.f32 %v8270_v46 }
 0xc98   :  { %v6957_v45 = vpop.eup %6956 }
 0xc99   :  { %v8273_v22 = vmul.f32 %v6957_v45, %v4813_v36 }
 0xc9b   :  { %v4824_v48 = vpack.c.bf16 %v8273_v22, %v8273_v22 }
 0xc9d   :  { %5050 = vmatmul.mubr.bf16.vlgmr.msra.gmra.mxu0 %v4824_v48  ;;  %5091 = vmatmul.mubr.bf16.vlgmr.msra.gmra.mxu1 %v4824_v48 }
 0xc9e   :  { %5317 = vmatpush1.bf16.msra.mxu0 %v8117_v53  ;;  %5358 = vmatpush1.bf16.msra.mxu1 %v8119_v0 }
 0xc9f   :  { %5318 = vmatprep.subr.bf16.mxu0 %v8125_v57  ;;  %5359 = vmatprep.subr.bf16.mxu1 %v8127_v26 }
 0xca0   :  { %5348 = vmatprep.mubr.bf16.mxu0 %v8485_v24  ;;  %5389 = vmatprep.mubr.bf16.mxu1 %v8485_v24 }
 0xca2   :  { %5319 = vmatpush1.bf16.msra.mxu0 %v8129_v31  ;;  %5360 = vmatpush1.bf16.msra.mxu1 %v8131_v29 }
 0xca3   :  { %5320 = vmatprep.subr.bf16.mxu0 %v8137_v60  ;;  %5361 = vmatprep.subr.bf16.mxu1 %v8139_v61 }
 0xca6   :  { %5321 = vmatpush1.bf16.msra.mxu0 %v8141_v30  ;;  %5362 = vmatpush1.bf16.msra.mxu1 %v8143_v25 }
 0xca7   :  { %5322 = vmatprep.subr.bf16.mxu0 %v8149_v58  ;;  %5363 = vmatprep.subr.bf16.mxu1 %v8151_v1 }
 0xcaa   :  { %5323 = vmatpush1.bf16.msra.mxu0 %v8153_v3  ;;  %5364 = vmatpush1.bf16.msra.mxu1 %v8155_v4 }
 0xcab   :  { %5324 = vmatprep.subr.bf16.mxu0 %v8161_v32  ;;  %5365 = vmatprep.subr.bf16.mxu1 %v8163_v23 }
 0xcae   :  { %5325 = vmatpush1.bf16.msra.mxu0 %v8165_v2  ;;  %5366 = vmatpush1.bf16.msra.mxu1 %v8167_v8 }
 0xcaf   :  { %5326 = vmatprep.subr.bf16.mxu0 %v8173_v47  ;;  %5367 = vmatprep.subr.bf16.mxu1 %v8175_v19 }
 0xcb2   :  { %5327 = vmatpush1.bf16.msra.mxu0 %v8177_v35  ;;  %5368 = vmatpush1.bf16.msra.mxu1 %v8179_v13 }
 0xcb3   :  { %5328 = vmatprep.subr.bf16.mxu0 %v8185_v40  ;;  %5369 = vmatprep.subr.bf16.mxu1 %v8187_v39 }
 0xcb6   :  { %5329 = vmatpush1.bf16.msra.mxu0 %v8189_v9  ;;  %5370 = vmatpush1.bf16.msra.mxu1 %v8191_v10 }
 0xcb7   :  { %5330 = vmatprep.subr.bf16.mxu0 %v8197_v34  ;;  %5371 = vmatprep.subr.bf16.mxu1 %v8199_v42 }
 0xcba   :  { %5331 = vmatpush1.bf16.msra.mxu0 %v8201_v16  ;;  %5372 = vmatpush1.bf16.msra.mxu1 %v8203_v38 }
 0xcbb   :  { %5615 = vmatprep.subr.bf16.mxu0 %v8113_v59  ;;  %5656 = vmatprep.subr.bf16.mxu1 %v8115_v27 }
 0xd5d   :  { %v5051_v50 = vpop.f32.mrf.mxu0  ;;  %v5092_v28 = vpop.f32.mrf.mxu1 }
 0xd5e   :  { %v5099_v7 = vadd.f32 %v5051_v50, %v3202_v54  ;;  %v5101_v12 = vadd.f32 %v5092_v28, %v3275_v49 }
 0xd5f   :  { %v5053_v21 = vpop.f32.mrf.mxu0  ;;  %v5094_v14 = vpop.f32.mrf.mxu1 }
 0xd60   :  { %6958 = vtanh.f32 %v5099_v7  ;;  %v5100_v11 = vadd.f32 %v5053_v21, %v3204_v41  ;;  %v5102_v6 = vadd.f32 %v5094_v14, %v3277_v20  ;;  %v6821_v20 = vld [vmem:[%s8457_s9 + $0x30] sm:$0xff]  }
 0xd61   :  { %v5055_v59 = vpop.f32.mrf.mxu0  ;;  %v5096_v56 = vpop.f32.mrf.mxu1 }
 0xd62   :  { %6960 = vtanh.f32 %v5100_v11 }
 0xd63   :  { %v5056_v27 = vpop.f32.mrf.mxu0  ;;  %v5097_v17 = vpop.f32.mrf.mxu1  ;;  %6962 = vtanh.f32 %v5101_v12 }
 0xd64   :  { %6964 = vtanh.f32 %v5102_v6  ;;  %v5729_v6 = vpack.c.bf16 %v8059_v44, %v8009_v15  ;;  %v6824_v15 = vld [vmem:[%s8457_s9 + $0x18] sm:$0xff]   ;;  %v6825_v44 = vld [vmem:[%s8457_s9 + $0x10] sm:$0xff]  }
 0xd6d   :  { %v6959_v36 = vpop.eup %6958 }
 0xd6e   :  { %v5107_v45 = vmul.f32 0.5, %v6959_v36  ;;  %v6822_v36 = vld [vmem:[%s8457_s9 + $0x28] sm:$0xff]  }
 0xd6f   :  { %v6961_v48 = vpop.eup %6960 }
 0xd70   :  { %v5108_v51 = vadd.f32 0.5, %v5107_v45  ;;  %v5109_v54 = vmul.f32 0.5, %v6961_v48  ;;  %v6963_v50 = vpop.eup %6962  ;;  %v6823_v45 = vld [vmem:[%s8457_s9 + $0x20] sm:$0xff]   ;;  %v6826_v48 = vld [vmem:[%s8457_s9 + $0x8] sm:$0xff]  }
 0xd71   :  { %v6965_v41 = vpop.eup %6964 }
 0xd72   :  { %v5110_v33 = vadd.f32 0.5, %v5109_v54  ;;  %v5114_v28 = vmul.f32 %v6963_v50, %v5108_v51  ;;  %v5111_v7 = vmul.f32 0.5, %v6965_v41  ;;  %v6827_v51 = vld [vmem:[%s8457_s9] sm:$0xff]   ;;  %v5730_v54 = vpack.c.bf16 %v8223_v52, %v8107_v43 }
 0xd73   :  { %v8548_v41 = vld [vmem:[#allocation34_spill] sm:$0xff] }
 0xd74   :  { %v5113_v49 = vmul.f32 %v5110_v33, %v8270_v46  ;;  %v5112_v21 = vadd.f32 0.5, %v5111_v7  ;;  %v8547_v33 = vld [vmem:[#allocation14_spill] sm:$0xff]  ;;  %v3285_v7 = vadd.f32 %v8548_v41, %v7994_v5 }
 0xd76   :  { %v8320_v37 = vadd.f32 %v5114_v28, %v5113_v49  ;;  %v3212_v28 = vadd.f32 %v8547_v33, %v7977_v63 }
 0xd78   :  { %6966 = vtanh.f32 %v8320_v37 }
 0xd85   :  { %v6967_v12 = vpop.eup %6966 }
 0xd86   :  { %v8323_v14 = vmul.f32 %v6967_v12, %v5112_v21  ;;  %v8549_v21 = vld [vmem:[#allocation35_spill] sm:$0xff] }
 0xd87   :  { %v3214_v12 = vadd.f32 %v8549_v21, %v7985_v62 }
 0xd88   :  { %v5123_v11 = vpack.c.bf16 %v8323_v14, %v8323_v14  ;;  %v5731_v50 = vpack.c.bf16 %v8323_v14, %v8273_v22 }
 0xd8a   :  { %5349 = vmatmul.mubr.bf16.vlgmr.msra.gmra.mxu0 %v5123_v11  ;;  %5390 = vmatmul.mubr.bf16.vlgmr.msra.gmra.mxu1 %v5123_v11 }
 0xd8b   :  { %5616 = vmatpush1.bf16.msra.mxu0 %v8117_v53  ;;  %5657 = vmatpush1.bf16.msra.mxu1 %v8119_v0  ;;  %v8543_v53 = vld [vmem:[#allocation30_spill] sm:$0xff] }
 0xd8c   :  { %5617 = vmatprep.subr.bf16.mxu0 %v8125_v57  ;;  %5658 = vmatprep.subr.bf16.mxu1 %v8127_v26  ;;  %v3208_v0 = vadd.f32 %v8543_v53, %v7977_v63  ;;  %v8550_v63 = vld [vmem:[#allocation36_spill] sm:$0xff] }
 0xd8d   :  { %5647 = vmatprep.mubr.bf16.mxu0 %v8485_v24  ;;  %5688 = vmatprep.mubr.bf16.mxu1 %v8485_v24  ;;  %v6820_v24 = vld [vmem:[%s8457_s9 + $0x38] sm:$0xff]  }
 0xd8f   :  { %5618 = vmatpush1.bf16.msra.mxu0 %v8129_v31  ;;  %5659 = vmatpush1.bf16.msra.mxu1 %v8131_v29  ;;  %v8544_v31 = vld [vmem:[#allocation31_spill] sm:$0xff] }
 0xd90   :  { %5619 = vmatprep.subr.bf16.mxu0 %v8137_v60  ;;  %5660 = vmatprep.subr.bf16.mxu1 %v8139_v61  ;;  %v3281_v29 = vadd.f32 %v8544_v31, %v7994_v5  ;;  %v8545_v60 = vld [vmem:[#allocation32_spill] sm:$0xff] }
 0xd91   :  { %v3210_v61 = vadd.f32 %v8545_v60, %v7985_v62 }
 0xd93   :  { %5620 = vmatpush1.bf16.msra.mxu0 %v8141_v30  ;;  %5661 = vmatpush1.bf16.msra.mxu1 %v8143_v25 }
 0xd94   :  { %5621 = vmatprep.subr.bf16.mxu0 %v8149_v58  ;;  %5662 = vmatprep.subr.bf16.mxu1 %v8151_v1 }
 0xd97   :  { %5622 = vmatpush1.bf16.msra.mxu0 %v8153_v3  ;;  %5663 = vmatpush1.bf16.msra.mxu1 %v8155_v4 }
 0xd98   :  { %5623 = vmatprep.subr.bf16.mxu0 %v8161_v32  ;;  %5664 = vmatprep.subr.bf16.mxu1 %v8163_v23 }
 0xd9b   :  { %5624 = vmatpush1.bf16.msra.mxu0 %v8165_v2  ;;  %5665 = vmatpush1.bf16.msra.mxu1 %v8167_v8  ;;  %v8546_v8 = vld [vmem:[#allocation33_spill] sm:$0xff] }
 0xd9c   :  { %5625 = vmatprep.subr.bf16.mxu0 %v8173_v47  ;;  %5666 = vmatprep.subr.bf16.mxu1 %v8175_v19  ;;  %v3283_v47 = vadd.f32 %v8546_v8, %v8000_v55 }
 0xd9f   :  { %5626 = vmatpush1.bf16.msra.mxu0 %v8177_v35  ;;  %5667 = vmatpush1.bf16.msra.mxu1 %v8179_v13 }
 0xda0   :  { %5627 = vmatprep.subr.bf16.mxu0 %v8185_v40  ;;  %5668 = vmatprep.subr.bf16.mxu1 %v8187_v39 }
 0xda3   :  { %5628 = vmatpush1.bf16.msra.mxu0 %v8189_v9  ;;  %5669 = vmatpush1.bf16.msra.mxu1 %v8191_v10 }
 0xda4   :  { %5629 = vmatprep.subr.bf16.mxu0 %v8197_v34  ;;  %5670 = vmatprep.subr.bf16.mxu1 %v8199_v42 }
 0xda7   :  { %5630 = vmatpush1.bf16.msra.mxu0 %v8201_v16  ;;  %5671 = vmatpush1.bf16.msra.mxu1 %v8203_v38 }
 0xda8   :  { %6497 = vmatprep.subr.bf16.mxu0 %v6820_v24 }
 0xe4a   :  { %v5350_v57 = vpop.f32.mrf.mxu0  ;;  %v5391_v26 = vpop.f32.mrf.mxu1 }
 0xe4b   :  { %v5398_v30 = vadd.f32 %v5350_v57, %v3208_v0  ;;  %v5400_v1 = vadd.f32 %v5391_v26, %v3281_v29  ;;  %v3287_v26 = vadd.f32 %v8550_v63, %v8000_v55  ;;  %v6476_v55 = vld [vmem:[%s8458_s10] ss:$0 sm:$0xff] }
 0xe4c   :  { %v5352_v25 = vpop.f32.mrf.mxu0  ;;  %v5393_v58 = vpop.f32.mrf.mxu1 }
 0xe4d   :  { %6968 = vtanh.f32 %v5398_v30  ;;  %v5399_v3 = vadd.f32 %v5352_v25, %v3210_v61  ;;  %v5401_v19 = vadd.f32 %v5393_v58, %v3283_v47 }
 0xe4e   :  { %v5354_v4 = vpop.f32.mrf.mxu0  ;;  %v5395_v32 = vpop.f32.mrf.mxu1 }
 0xe4f   :  { %6970 = vtanh.f32 %v5399_v3 }
 0xe50   :  { %v5355_v23 = vpop.f32.mrf.mxu0  ;;  %v5396_v2 = vpop.f32.mrf.mxu1  ;;  %6972 = vtanh.f32 %v5400_v1 }
 0xe51   :  { %6974 = vtanh.f32 %v5401_v19 }
 0xe5a   :  { %v6969_v35 = vpop.eup %6968 }
 0xe5b   :  { %v5406_v13 = vmul.f32 0.5, %v6969_v35 }
 0xe5c   :  { %v6971_v40 = vpop.eup %6970 }
 0xe5d   :  { %v5407_v39 = vadd.f32 0.5, %v5406_v13  ;;  %v5408_v9 = vmul.f32 0.5, %v6971_v40  ;;  %v6973_v10 = vpop.eup %6972 }
 0xe5e   :  { %v6975_v46 = vpop.eup %6974 }
 0xe5f   :  { %v5409_v34 = vadd.f32 0.5, %v5408_v9  ;;  %v5413_v42 = vmul.f32 %v6973_v10, %v5407_v39  ;;  %v5410_v59 = vmul.f32 0.5, %v6975_v46 }
 0xe61   :  { %v5412_v16 = vmul.f32 %v5409_v34, %v8320_v37  ;;  %v5411_v56 = vadd.f32 0.5, %v5410_v59 }
 0xe63   :  { %v8371_v38 = vadd.f32 %v5413_v42, %v5412_v16 }
 0xe65   :  { %6976 = vtanh.f32 %v8371_v38 }
 0xe72   :  { %v6977_v27 = vpop.eup %6976 }
 0xe73   :  { %v8374_v17 = vmul.f32 %v6977_v27, %v5411_v56 }
 0xe75   :  { %v5422_v18 = vpack.c.bf16 %v8374_v17, %v8374_v17 }
 0xe77   :  { %5648 = vmatmul.mubr.bf16.vlgmr.msra.gmra.mxu0 %v5422_v18  ;;  %5689 = vmatmul.mubr.bf16.vlgmr.msra.gmra.mxu1 %v5422_v18 }
 0xe78   :  { %6498 = vmatpush3.bf16.msra.mxu0 %v6820_v24  ;;  %6513 = vmatprep.mubr.bf16.mxu0 %v5729_v6 }
 0xe79   :  { %6499 = vmatprep.subr.bf16.mxu0 %v6821_v20 }
 0xe7c   :  { %6500 = vmatpush3.bf16.msra.mxu0 %v6821_v20 }
 0xe7d   :  { %6501 = vmatprep.subr.bf16.mxu0 %v6822_v36 }
 0xe80   :  { %6502 = vmatpush3.bf16.msra.mxu0 %v6822_v36 }
 0xe81   :  { %6503 = vmatprep.subr.bf16.mxu0 %v6823_v45 }
 0xe84   :  { %6504 = vmatpush3.bf16.msra.mxu0 %v6823_v45 }
 0xe85   :  { %6505 = vmatprep.subr.bf16.mxu0 %v6824_v15 }
 0xe88   :  { %6506 = vmatpush3.bf16.msra.mxu0 %v6824_v15 }
 0xe89   :  { %6507 = vmatprep.subr.bf16.mxu0 %v6825_v44 }
 0xe8c   :  { %6508 = vmatpush3.bf16.msra.mxu0 %v6825_v44 }
 0xe8d   :  { %6509 = vmatprep.subr.bf16.mxu0 %v6826_v48 }
 0xe90   :  { %6510 = vmatpush3.bf16.msra.mxu0 %v6826_v48 }
 0xe91   :  { %6511 = vmatprep.subr.bf16.mxu0 %v6827_v51 }
 0xe94   :  { %6512 = vmatpush3.bf16.msra.mxu0 %v6827_v51 }
 0xe97   :  { %6514 = vmatmul.mubr.bf16.vlgmr.msra.gmra.mxu0 %v5730_v54 }
 0xe98   :  { %6517 = vmatprep.mubr.bf16.mxu0 %v5731_v50 }
 0xf37   :  { %v5649_v49 = vpop.f32.mrf.mxu0  ;;  %v5690_v37 = vpop.f32.mrf.mxu1 }
 0xf38   :  { %v5697_v11 = vadd.f32 %v5649_v49, %v3212_v28  ;;  %v5699_v43 = vadd.f32 %v5690_v37, %v3285_v7 }
 0xf39   :  { %v5651_v24 = vpop.f32.mrf.mxu0  ;;  %v5692_v53 = vpop.f32.mrf.mxu1 }
 0xf3a   :  { %6978 = vtanh.f32 %v5697_v11  ;;  %v5698_v52 = vadd.f32 %v5651_v24, %v3214_v12  ;;  %v5700_v31 = vadd.f32 %v5692_v53, %v3287_v26 }
 0xf3b   :  { %v5653_v22 = vpop.f32.mrf.mxu0  ;;  %v5694_v14 = vpop.f32.mrf.mxu1 }
 0xf3c   :  { %6980 = vtanh.f32 %v5698_v52 }
 0xf3d   :  { %v5654_v0 = vpop.f32.mrf.mxu0  ;;  %v5695_v57 = vpop.f32.mrf.mxu1  ;;  %6982 = vtanh.f32 %v5699_v43 }
 0xf3e   :  { %6984 = vtanh.f32 %v5700_v31 }
 0xf47   :  { %v6979_v5 = vpop.eup %6978 }
 0xf48   :  { %v5705_v29 = vmul.f32 0.5, %v6979_v5 }
 0xf49   :  { %v6981_v60 = vpop.eup %6980 }
 0xf4a   :  { %v5706_v62 = vadd.f32 0.5, %v5705_v29  ;;  %v5707_v61 = vmul.f32 0.5, %v6981_v60  ;;  %v6983_v30 = vpop.eup %6982 }
 0xf4b   :  { %v6985_v4 = vpop.eup %6984 }
 0xf4c   :  { %v5708_v25 = vadd.f32 0.5, %v5707_v61  ;;  %v5712_v58 = vmul.f32 %v6983_v30, %v5706_v62  ;;  %v5709_v8 = vmul.f32 0.5, %v6985_v4 }
 0xf4e   :  { %v5711_v1 = vmul.f32 %v5708_v25, %v8371_v38  ;;  %v5710_v40 = vadd.f32 0.5, %v5709_v8 }
 0xf50   :  { %v5713_v3 = vadd.f32 %v5712_v58, %v5711_v1 }
 0xf52   :  { %6986 = vtanh.f32 %v5713_v3  ;;  %6475 = vst [vmem:[%s8461_s13 + $0x8] sm:$0xff] %v5713_v3 }
 0xf57   :  { %v6515_v32 = vpop.f32.mrf.mxu0 }
 0xf58   :  { %v5847_v23 = vadd.f32 %v6515_v32, %v6476_v55 }
 0xf59   :  { %v5838_v2 = vpop.f32.mrf.mxu0 }
 0xf5a   :  { %5871 = vst [vmem:[%s8459_s11 + $0x10] sm:$0xff] %v5847_v23  ;;  %v5839_v47 = vadd.f32 %v6476_v55, %v5838_v2 }
 0xf5b   :  { %v6516_v19 = vpop.f32.mrf.mxu0 }
 0xf5c   :  { %5869 = vst [vmem:[%s8459_s11] sm:$0xff] %v5839_v47  ;;  %v5850_v35 = vadd.f32 %v6516_v19, %v6476_v55 }
 0xf5d   :  { %v5841_v13 = vpop.f32.mrf.mxu0 }
 0xf5e   :  { %5872 = vst [vmem:[%s8459_s11 + $0x18] sm:$0xff] %v5850_v35  ;;  %v5842_v39 = vadd.f32 %v6476_v55, %v5841_v13 }
 0xf5f   :  { %v6987_v9 = vpop.eup %6986 }
 0xf60   :  { %5870 = vst [vmem:[%s8459_s11 + $0x8] sm:$0xff] %v5842_v39  ;;  %v5715_v10 = vmul.f32 %v6987_v9, %v5710_v40 }
 0xf62   :  { %6474 = vst [vmem:[%s8460_s12 + $0x8] sm:$0xff] %v5715_v10  ;;  %v5732_v34 = vpack.c.bf16 %v5715_v10, %v8374_v17 }
 0xf64   :  { %6518 = vmatmul.mubr.bf16.gmra.mxu0 %v5732_v34 }
0x1024   :  { %v6519_v42 = vpop.f32.mrf.mxu0 }
0x1025   :  { %v5863_v16 = vadd.f32 %v6519_v42, %v6476_v55 }
0x1026   :  { %v5854_v38 = vpop.f32.mrf.mxu0 }
0x1027   :  { %5875 = vst [vmem:[%s8459_s11 + $0x30] sm:$0xff] %v5863_v16  ;;  %v5855_v46 = vadd.f32 %v6476_v55, %v5854_v38 }
0x1028   :  { %v6520_v59 = vpop.f32.mrf.mxu0 }
0x1029   :  { %5873 = vst [vmem:[%s8459_s11 + $0x20] sm:$0xff] %v5855_v46  ;;  %v5866_v56 = vadd.f32 %v6520_v59, %v6476_v55 }
0x102a   :  { %v5857_v27 = vpop.f32.mrf.mxu0 }
0x102b   :  { %5876 = vst [vmem:[%s8459_s11 + $0x38] sm:$0xff] %v5866_v56  ;;  %v5858_v17 = vadd.f32 %v6476_v55, %v5857_v27 }
0x102d   :  { %5874 = vst [vmem:[%s8459_s11 + $0x28] sm:$0xff] %v5858_v17 }
0x102e   :  { %5889 = vsyncpa [#allocation5], 1 }
0x102f   :  { %5890 = vsyncpa [#allocation7], 1 }
0x1030   :  { %5891 = vsyncpa [#allocation10], 1 }

</bundles_post_ra>
